<compile_context>
chip_gen: v7x
topology: tpu7x:2x2x1
jax: 0.10.0
libtpu: 0.0.40
codegen_flags: <defaults>
</compile_context>

<pallas_src>
import math
from functools import partial
from typing import NamedTuple

import jax
import jax.numpy as jnp
from jax.experimental import pallas as pl
from jax.experimental.pallas import tpu as pltpu

LRELU_SLOPE = 0.1          # kpnet_nonlinear_activation_params['negative_slope']
INPUT_CONV_KSIZE = 5       # fixed by the reference module


def _round_up(x, m):
    return ((x + m - 1) // m) * m


# ---------------------------------------------------------------------------
# Fused whole-network Pallas kernel (one grid step = one batch element)
# ---------------------------------------------------------------------------
def _kp_fused_kernel(c_ref, w_in_ref, b_in_ref, w_res_ref, b_res_ref,
                     w_head_ref, b_head_ref, o_ref, hbuf, tbuf,
                     *, t, k_in, k_res, n_blocks, slope):
    """Runs the whole KernelPredictor conv stack for one batch element.

    c_ref     : (1, TIN_P, CIN_P)     bf16  conditioning, zero halo + alignment pad
    w_in_ref  : (k_in*CIN_P, CH_P)    bf16  folded im2col weight of input_conv
    b_in_ref  : (1, CH_P)             f32
    w_res_ref : (6, k_res*CH_P, CH_P) bf16  3 residual blocks x 2 convs
    b_res_ref : (6, 1, CH_P)          f32
    w_head_ref: (k_res*CH_P, COUT_P)  bf16  kernel_conv ++ bias_conv (fused head)
    b_head_ref: (1, COUT_P)           f32
    o_ref     : (1, TOUT_P, COUT_P)   f32   lane-dense output
    hbuf,tbuf : (t + k_res - 1, CH_P) f32   VMEM scratch with zero halo rows
    """
    def lrelu(v):
        return jnp.maximum(v, v * slope)       # valid LeakyReLU for 0 < slope < 1

    def conv(slice_fn, k, w, b):
        # Fold the k taps into the MXU contraction dim: one dot with K = k*C.
        cols = [slice_fn(j) for j in range(k)]
        a = cols[0] if k == 1 else jnp.concatenate(cols, axis=-1)
        return jnp.dot(a, w, preferred_element_type=jnp.float32) + b

    p = (k_res - 1) // 2

    # Zero the activation buffers so the halo rows / padded lanes read as zeros.
    hbuf[...] = jnp.zeros_like(hbuf)
    tbuf[...] = jnp.zeros_like(tbuf)

    # --- input_conv (k=5, 'same' pad=2) + LeakyReLU ----------------------------
    y = conv(lambda j: c_ref[0, j:j + t, :], k_in, w_in_ref[...], b_in_ref[...])
    hbuf[p:p + t, :] = lrelu(y)                    # skip-path kept in f32 in VMEM

    # --- 3 residual blocks: conv+act, conv+act, fused skip add -----------------
    for blk in range(n_blocks):
        h = conv(lambda j: hbuf[j:j + t, :].astype(jnp.bfloat16),
                 k_res, w_res_ref[2 * blk], b_res_ref[2 * blk])
        tbuf[p:p + t, :] = lrelu(h)
        h = conv(lambda j: tbuf[j:j + t, :].astype(jnp.bfloat16),
                 k_res, w_res_ref[2 * blk + 1], b_res_ref[2 * blk + 1])
        hbuf[p:p + t, :] = hbuf[p:p + t, :] + lrelu(h)     # residual add (f32)

    # --- fused head conv (kernel_conv ++ bias_conv), no activation -------------
    y = conv(lambda j: hbuf[j:j + t, :].astype(jnp.bfloat16),
             k_res, w_head_ref[...], b_head_ref[...])
    o_ref[0, 0:t, :] = y


# ---------------------------------------------------------------------------
# Config / params
# ---------------------------------------------------------------------------
class KPConfig(NamedTuple):
    cond_channels: int = 32
    conv_in_channels: int = 8
    conv_out_channels: int = 8
    conv_layers: int = 4
    conv_kernel_size: int = 3
    kpnet_hidden_channels: int = 64
    kpnet_conv_size: int = 3
    kpnet_dropout: float = 0.0


def _init_conv(key, cout, cin, k):
    # weight_norm at synthetic init is numerically identical to the raw weight.
    k1, k2 = jax.random.split(key)
    w = jax.random.normal(k1, (cout, cin, k), jnp.float32) / math.sqrt(cin * k)
    b = jax.random.normal(k2, (cout,), jnp.float32) * 0.01
    return w, b


def init_kernel_predictor(key, cfg: KPConfig):
    keys = jax.random.split(key, 9)
    params = {}
    params["input_conv"] = _init_conv(keys[0], cfg.kpnet_hidden_channels,
                                      cfg.cond_channels, INPUT_CONV_KSIZE)
    res = []
    for i in range(3):
        w1, b1 = _init_conv(keys[1 + 2 * i], cfg.kpnet_hidden_channels,
                            cfg.kpnet_hidden_channels, cfg.kpnet_conv_size)
        w2, b2 = _init_conv(keys[2 + 2 * i], cfg.kpnet_hidden_channels,
                            cfg.kpnet_hidden_channels, cfg.kpnet_conv_size)
        res.append((w1, b1, w2, b2))
    params["residual_convs"] = res
    ck = (cfg.conv_in_channels * cfg.conv_out_channels *
          cfg.conv_kernel_size * cfg.conv_layers)
    cb = cfg.conv_out_channels * cfg.conv_layers
    params["kernel_conv"] = _init_conv(keys[7], ck, cfg.kpnet_hidden_channels,
                                       cfg.kpnet_conv_size)
    params["bias_conv"] = _init_conv(keys[8], cb, cfg.kpnet_hidden_channels,
                                     cfg.kpnet_conv_size)
    return params


def prepare_params(cfg: KPConfig, params):
    """One-time weight layout prep (hoisted out of the forward pass).

    Every conv weight (Cout, Cin, k) becomes a folded im2col matrix
    (k * Cin_pad, Cout_pad) in bf16; biases become (1, Cout_pad) f32.
    kernel_conv and bias_conv are fused along Cout into a single head matmul.
    """
    assert INPUT_CONV_KSIZE % 2 == 1 and cfg.kpnet_conv_size % 2 == 1, \
        "'same' padding (k-1)//2 assumes odd kernel sizes"
    cin0_p = _round_up(cfg.cond_channels, 128)
    ch_p = _round_up(cfg.kpnet_hidden_channels, 128)
    ck = (cfg.conv_in_channels * cfg.conv_out_channels *
          cfg.conv_kernel_size * cfg.conv_layers)
    cb = cfg.conv_out_channels * cfg.conv_layers
    cout_head_p = _round_up(ck + cb, 128)

    def prep(w, b, cin_p, cout_p):
        cout, cin, k = w.shape
        wt = jnp.transpose(w, (2, 1, 0))                          # (k, cin, cout)
        wt = jnp.pad(wt, ((0, 0), (0, cin_p - cin), (0, cout_p - cout)))
        w_flat = wt.reshape(k * cin_p, cout_p).astype(jnp.bfloat16)
        b_p = jnp.pad(b, (0, cout_p - b.shape[0])).astype(jnp.float32).reshape(1, cout_p)
        return w_flat, b_p

    w_in, b_in = prep(*params["input_conv"], cin0_p, ch_p)
    w_res, b_res = [], []
    for (w1, b1, w2, b2) in params["residual_convs"]:
        wf, bp = prep(w1, b1, ch_p, ch_p); w_res.append(wf); b_res.append(bp)
        wf, bp = prep(w2, b2, ch_p, ch_p); w_res.append(wf); b_res.append(bp)
    w_res = jnp.stack(w_res)                 # (6, k*CH_P, CH_P)
    b_res = jnp.stack(b_res)                 # (6, 1, CH_P)

    kw, kb = params["kernel_conv"]
    bw, bb = params["bias_conv"]
    w_head, b_head = prep(jnp.concatenate([kw, bw], axis=0),
                          jnp.concatenate([kb, bb], axis=0), ch_p, cout_head_p)

    return dict(w_in=w_in, b_in=b_in, w_res=w_res, b_res=b_res,
                w_head=w_head, b_head=b_head)


# ---------------------------------------------------------------------------
# Forward (single fused pallas_call)
# ---------------------------------------------------------------------------
def kernel_predictor_forward(cfg: KPConfig, prepped, c_nct):
    """c_nct: (batch, cond_channels, cond_length) -> (kernels, bias)."""
    if cfg.kpnet_dropout != 0.0:
        # TODO(synk): train-mode nn.Dropout(p>0) not implemented; p=0.0 / eval is identity.
        raise NotImplementedError("kpnet_dropout > 0 is not supported")

    B, Cc, T = c_nct.shape
    k_in, k_res = INPUT_CONV_KSIZE, cfg.kpnet_conv_size
    pad0 = (k_in - 1) // 2
    cin0_p = prepped["w_in"].shape[0] // k_in
    ch_p = prepped["w_res"].shape[-1]
    cout_head_p = prepped["w_head"].shape[-1]
    n_blocks = prepped["w_res"].shape[0] // 2

    tin_p = _round_up(T + 2 * pad0, 8)
    tout_p = _round_up(T, 8)

    # Channels-last, zero halo for the k=5 input conv, aligned padding, bf16.
    x = jnp.transpose(c_nct, (0, 2, 1))
    x = jnp.pad(x, ((0, 0), (pad0, tin_p - T - pad0), (0, cin0_p - Cc)))
    x = x.astype(jnp.bfloat16)

    out = pl.pallas_call(
        partial(_kp_fused_kernel, t=T, k_in=k_in, k_res=k_res,
                n_blocks=n_blocks, slope=float(LRELU_SLOPE)),
        out_shape=jax.ShapeDtypeStruct((B, tout_p, cout_head_p), jnp.float32),
        grid=(B,),
        in_specs=[
            pl.BlockSpec((1, tin_p, cin0_p), lambda b: (b, 0, 0)),
            pl.BlockSpec(prepped["w_in"].shape, lambda b: (0, 0)),     # resident
            pl.BlockSpec(prepped["b_in"].shape, lambda b: (0, 0)),
            pl.BlockSpec(prepped["w_res"].shape, lambda b: (0, 0, 0)),
            pl.BlockSpec(prepped["b_res"].shape, lambda b: (0, 0, 0)),
            pl.BlockSpec(prepped["w_head"].shape, lambda b: (0, 0)),
            pl.BlockSpec(prepped["b_head"].shape, lambda b: (0, 0)),
        ],
        out_specs=pl.BlockSpec((1, tout_p, cout_head_p), lambda b: (b, 0, 0)),
        scratch_shapes=[
            pltpu.VMEM((T + k_res - 1, ch_p), jnp.float32),   # skip-path buffer
            pltpu.VMEM((T + k_res - 1, ch_p), jnp.float32),   # block-intermediate
        ],
        compiler_params=pltpu.CompilerParams(
            dimension_semantics=("parallel",),   # batch axis -> both v7x TCs
        ),
    )(x, prepped["w_in"], prepped["b_in"], prepped["w_res"], prepped["b_res"],
      prepped["w_head"], prepped["b_head"])

    ck = (cfg.conv_in_channels * cfg.conv_out_channels *
          cfg.conv_kernel_size * cfg.conv_layers)
    cb = cfg.conv_out_channels * cfg.conv_layers
    out = out[:, :T, :]
    k_out, b_out = out[..., :ck], out[..., ck:ck + cb]

    L, Ci, Co, Ks = (cfg.conv_layers, cfg.conv_in_channels,
                     cfg.conv_out_channels, cfg.conv_kernel_size)
    # Matches torch .view on contiguous (B, C, T): channels split as (L, Ci, Co, Ks).
    kernels = jnp.transpose(k_out.reshape(B, T, L, Ci, Co, Ks), (0, 2, 3, 4, 5, 1))
    bias = jnp.transpose(b_out.reshape(B, T, L, Co), (0, 2, 3, 1))
    return kernels, bias


# ---------------------------------------------------------------------------
# Pure-JAX f32 reference (for the numerical sanity check only)
# ---------------------------------------------------------------------------
def _reference_forward(cfg: KPConfig, params, c_nct):
    def conv(x, w, b):                       # x: (B, T, Cin) f32; w: (Cout, Cin, k)
        k = w.shape[-1]
        p = (k - 1) // 2
        T = x.shape[1]
        xp = jnp.pad(x, ((0, 0), (p, p), (0, 0)))
        cols = jnp.stack([xp[:, j:j + T, :] for j in range(k)], axis=-1)
        return jnp.einsum("btck,ock->bto", cols, w) + b

    def lrelu(v):
        return jnp.where(v >= 0, v, v * LRELU_SLOPE)

    B, _, T = c_nct.shape
    x = jnp.transpose(c_nct, (0, 2, 1))
    x = lrelu(conv(x, *params["input_conv"]))
    for (w1, b1, w2, b2) in params["residual_convs"]:
        h = lrelu(conv(x, w1, b1))
        h = lrelu(conv(h, w2, b2))
        x = x + h
    k_out = conv(x, *params["kernel_conv"])
    b_out = conv(x, *params["bias_conv"])
    L, Ci, Co, Ks = (cfg.conv_layers, cfg.conv_in_channels,
                     cfg.conv_out_channels, cfg.conv_kernel_size)
    kernels = jnp.transpose(k_out.reshape(B, T, L, Ci, Co, Ks), (0, 2, 3, 4, 5, 1))
    bias = jnp.transpose(b_out.reshape(B, T, L, Co), (0, 2, 3, 1))
    return kernels, bias


# ---------------------------------------------------------------------------
if __name__ == "__main__":
    cfg = KPConfig(cond_channels=32, conv_in_channels=8, conv_out_channels=8,
                   conv_layers=4, conv_kernel_size=3,
                   kpnet_hidden_channels=64, kpnet_conv_size=3, kpnet_dropout=0.0)
    key = jax.random.PRNGKey(0)
    kp_key, x_key = jax.random.split(key)
    params = init_kernel_predictor(kp_key, cfg)
    prepped = prepare_params(cfg, params)          # one-time layout prep (outside jit)

    batch, cond_length = 2, 48
    c = jax.random.normal(x_key, (batch, cfg.cond_channels, cond_length), jnp.float32)

    fwd = jax.jit(lambda p, x: kernel_predictor_forward(cfg, p, x))
    kernels, bias = fwd(prepped, c)
    jax.block_until_ready((kernels, bias))

    assert kernels.shape == (batch, cfg.conv_layers, cfg.conv_in_channels,
                             cfg.conv_out_channels, cfg.conv_kernel_size, cond_length)
    assert bias.shape == (batch, cfg.conv_layers, cfg.conv_out_channels, cond_length)

    # Sanity check vs. pure-JAX f32 reference (bf16 MXU operands -> loose tolerance).
    ref_k, ref_b = jax.jit(lambda p, x: _reference_forward(cfg, p, x))(params, c)

    def rel_err(a, b):
        a = a.astype(jnp.float32)
        b = b.astype(jnp.float32)
        return float(jnp.sqrt(jnp.sum((a - b) ** 2)) /
                     (jnp.sqrt(jnp.sum(b ** 2)) + 1e-6))

    assert rel_err(kernels, ref_k) < 5e-2, rel_err(kernels, ref_k)
    assert rel_err(bias, ref_b) < 5e-2, rel_err(bias, ref_b)

    print("KERNEL_OK")
</pallas_src>

<mosaic_0001>
module attributes {stable_mosaic.version = 11 : i64} {
  func.func @_kp_fused_kernel(%arg0: i32, %arg1: memref<1x56x128xbf16, #tpu.memory_space<vmem>>, %arg2: memref<640x128xbf16, #tpu.memory_space<vmem>>, %arg3: memref<1x128xf32, #tpu.memory_space<vmem>>, %arg4: memref<6x384x128xbf16, #tpu.memory_space<vmem>>, %arg5: memref<6x1x128xf32, #tpu.memory_space<vmem>>, %arg6: memref<384x896xbf16, #tpu.memory_space<vmem>>, %arg7: memref<1x896xf32, #tpu.memory_space<vmem>>, %arg8: memref<1x48x896xf32, #tpu.memory_space<vmem>>, %arg9: memref<50x128xf32, #tpu.memory_space<vmem>>, %arg10: memref<50x128xf32, #tpu.memory_space<vmem>>) attributes {dimension_semantics = [#tpu.dimension_semantics<parallel>], iteration_bounds = array<i64: 2>, scalar_prefetch = 0 : i64, scratch_operands = 2 : i64, tpu.core_type = #tpu.core_type<tc>, window_params = [{transform_indices = @transform_0, window_bounds = array<i64: 1, 56, 128>}, {pipeline_mode = #tpu.pipeline_mode<synchronous>, transform_indices = @transform_1, window_bounds = array<i64: 640, 128>}, {pipeline_mode = #tpu.pipeline_mode<synchronous>, transform_indices = @transform_2, window_bounds = array<i64: 1, 128>}, {pipeline_mode = #tpu.pipeline_mode<synchronous>, transform_indices = @transform_3, window_bounds = array<i64: 6, 384, 128>}, {pipeline_mode = #tpu.pipeline_mode<synchronous>, transform_indices = @transform_4, window_bounds = array<i64: 6, 1, 128>}, {pipeline_mode = #tpu.pipeline_mode<synchronous>, transform_indices = @transform_5, window_bounds = array<i64: 384, 896>}, {pipeline_mode = #tpu.pipeline_mode<synchronous>, transform_indices = @transform_6, window_bounds = array<i64: 1, 896>}, {transform_indices = @transform_7, window_bounds = array<i64: 1, 48, 896>}]} {
    %cst = arith.constant 0.000000e+00 : f32
    %0 = vector.broadcast %cst : f32 to vector<50x128xf32>
    %c0 = arith.constant 0 : index
    %c0_0 = arith.constant 0 : index
    %1 = vector.load %arg9[%c0, %c0_0] : memref<50x128xf32, #tpu.memory_space<vmem>>, vector<50x128xf32>
    tpu.vector_store %arg9[%c0, %c0_0], %0 {strides = array<i32>} : memref<50x128xf32, #tpu.memory_space<vmem>>, vector<50x128xf32>,
    %cst_1 = arith.constant 0.000000e+00 : f32
    %2 = vector.broadcast %cst_1 : f32 to vector<50x128xf32>
    %c0_2 = arith.constant 0 : index
    %c0_3 = arith.constant 0 : index
    %3 = vector.load %arg10[%c0_2, %c0_3] : memref<50x128xf32, #tpu.memory_space<vmem>>, vector<50x128xf32>
    tpu.vector_store %arg10[%c0_2, %c0_3], %2 {strides = array<i32>} : memref<50x128xf32, #tpu.memory_space<vmem>>, vector<50x128xf32>,
    %c0_4 = arith.constant 0 : index
    %c0_5 = arith.constant 0 : index
    %4 = vector.load %arg2[%c0_4, %c0_5] : memref<640x128xbf16, #tpu.memory_space<vmem>>, vector<640x128xbf16>
    %c0_6 = arith.constant 0 : index
    %c0_7 = arith.constant 0 : index
    %5 = vector.load %arg3[%c0_6, %c0_7] : memref<1x128xf32, #tpu.memory_space<vmem>>, vector<1x128xf32>
    %c0_8 = arith.constant 0 : index
    %c0_9 = arith.constant 0 : index
    %c0_10 = arith.constant 0 : index
    %6 = vector.load %arg1[%c0_8, %c0_9, %c0_10] : memref<1x56x128xbf16, #tpu.memory_space<vmem>>, vector<1x48x128xbf16>
    %7 = vector.shape_cast %6 : vector<1x48x128xbf16> to vector<48x128xbf16>
    %c0_11 = arith.constant 0 : index
    %c1 = arith.constant 1 : index
    %c0_12 = arith.constant 0 : index
    %8 = vector.load %arg1[%c0_11, %c1, %c0_12] : memref<1x56x128xbf16, #tpu.memory_space<vmem>>, vector<1x48x128xbf16>
    %9 = vector.shape_cast %8 : vector<1x48x128xbf16> to vector<48x128xbf16>
    %c0_13 = arith.constant 0 : index
    %c2 = arith.constant 2 : index
    %c0_14 = arith.constant 0 : index
    %10 = vector.load %arg1[%c0_13, %c2, %c0_14] : memref<1x56x128xbf16, #tpu.memory_space<vmem>>, vector<1x48x128xbf16>
    %11 = vector.shape_cast %10 : vector<1x48x128xbf16> to vector<48x128xbf16>
    %c0_15 = arith.constant 0 : index
    %c3 = arith.constant 3 : index
    %c0_16 = arith.constant 0 : index
    %12 = vector.load %arg1[%c0_15, %c3, %c0_16] : memref<1x56x128xbf16, #tpu.memory_space<vmem>>, vector<1x48x128xbf16>
    %13 = vector.shape_cast %12 : vector<1x48x128xbf16> to vector<48x128xbf16>
    %c0_17 = arith.constant 0 : index
    %c4 = arith.constant 4 : index
    %c0_18 = arith.constant 0 : index
    %14 = vector.load %arg1[%c0_17, %c4, %c0_18] : memref<1x56x128xbf16, #tpu.memory_space<vmem>>, vector<1x48x128xbf16>
    %15 = vector.shape_cast %14 : vector<1x48x128xbf16> to vector<48x128xbf16>
    %16 = tpu.concatenate %7, %9, %11, %13, %15 in 1 : vector<48x128xbf16>, vector<48x128xbf16>, vector<48x128xbf16>, vector<48x128xbf16>, vector<48x128xbf16> -> vector<48x640xbf16>
    %cst_19 = arith.constant dense<0.000000e+00> : vector<48x128xf32>
    %17 = tpu.matmul %16, %4, %cst_19 {dimension_numbers = #tpu.dot_dimension_numbers<[1], [0], [0], [1], [0, 0, 1, 1], [], []>} : vector<48x640xbf16>, vector<640x128xbf16>, vector<48x128xf32> -> vector<48x128xf32>
    %18 = vector.broadcast %5 : vector<1x128xf32> to vector<48x128xf32>
    %19 = arith.addf %17, %18 : vector<48x128xf32>
    %cst_20 = arith.constant 1.000000e-01 : f32
    %20 = vector.broadcast %cst_20 : f32 to vector<48x128xf32>
    %21 = arith.mulf %19, %20 : vector<48x128xf32>
    %22 = arith.maximumf %19, %21 : vector<48x128xf32>
    %c1_21 = arith.constant 1 : index
    %c0_22 = arith.constant 0 : index
    %23 = vector.load %arg9[%c1_21, %c0_22] : memref<50x128xf32, #tpu.memory_space<vmem>>, vector<48x128xf32>
    tpu.vector_store %arg9[%c1_21, %c0_22], %22 {strides = array<i32>} : memref<50x128xf32, #tpu.memory_space<vmem>>, vector<48x128xf32>,
    %c0_23 = arith.constant 0 : index
    %c0_24 = arith.constant 0 : index
    %c0_25 = arith.constant 0 : index
    %24 = vector.load %arg4[%c0_23, %c0_24, %c0_25] : memref<6x384x128xbf16, #tpu.memory_space<vmem>>, vector<1x384x128xbf16>
    %25 = vector.shape_cast %24 : vector<1x384x128xbf16> to vector<384x128xbf16>
    %c0_26 = arith.constant 0 : index
    %c0_27 = arith.constant 0 : index
    %c0_28 = arith.constant 0 : index
    %26 = vector.load %arg5[%c0_26, %c0_27, %c0_28] : memref<6x1x128xf32, #tpu.memory_space<vmem>>, vector<1x1x128xf32>
    %27 = vector.shape_cast %26 : vector<1x1x128xf32> to vector<1x128xf32>
    %c0_29 = arith.constant 0 : index
    %c0_30 = arith.constant 0 : index
    %28 = vector.load %arg9[%c0_29, %c0_30] : memref<50x128xf32, #tpu.memory_space<vmem>>, vector<48x128xf32>
    %29 = arith.truncf %28 : vector<48x128xf32> to vector<48x128xbf16>
    %c1_31 = arith.constant 1 : index
    %c0_32 = arith.constant 0 : index
    %30 = vector.load %arg9[%c1_31, %c0_32] : memref<50x128xf32, #tpu.memory_space<vmem>>, vector<48x128xf32>
    %31 = arith.truncf %30 : vector<48x128xf32> to vector<48x128xbf16>
    %c2_33 = arith.constant 2 : index
    %c0_34 = arith.constant 0 : index
    %32 = vector.load %arg9[%c2_33, %c0_34] : memref<50x128xf32, #tpu.memory_space<vmem>>, vector<48x128xf32>
    %33 = arith.truncf %32 : vector<48x128xf32> to vector<48x128xbf16>
    %34 = tpu.concatenate %29, %31, %33 in 1 : vector<48x128xbf16>, vector<48x128xbf16>, vector<48x128xbf16> -> vector<48x384xbf16>
    %cst_35 = arith.constant dense<0.000000e+00> : vector<48x128xf32>
    %35 = tpu.matmul %34, %25, %cst_35 {dimension_numbers = #tpu.dot_dimension_numbers<[1], [0], [0], [1], [0, 0, 1, 1], [], []>} : vector<48x384xbf16>, vector<384x128xbf16>, vector<48x128xf32> -> vector<48x128xf32>
    %36 = vector.broadcast %27 : vector<1x128xf32> to vector<48x128xf32>
    %37 = arith.addf %35, %36 : vector<48x128xf32>
    %cst_36 = arith.constant 1.000000e-01 : f32
    %38 = vector.broadcast %cst_36 : f32 to vector<48x128xf32>
    %39 = arith.mulf %37, %38 : vector<48x128xf32>
    %40 = arith.maximumf %37, %39 : vector<48x128xf32>
    %c1_37 = arith.constant 1 : index
    %c0_38 = arith.constant 0 : index
    %41 = vector.load %arg10[%c1_37, %c0_38] : memref<50x128xf32, #tpu.memory_space<vmem>>, vector<48x128xf32>
    tpu.vector_store %arg10[%c1_37, %c0_38], %40 {strides = array<i32>} : memref<50x128xf32, #tpu.memory_space<vmem>>, vector<48x128xf32>,
    %c1_39 = arith.constant 1 : index
    %c0_40 = arith.constant 0 : index
    %c0_41 = arith.constant 0 : index
    %42 = vector.load %arg4[%c1_39, %c0_40, %c0_41] : memref<6x384x128xbf16, #tpu.memory_space<vmem>>, vector<1x384x128xbf16>
    %43 = vector.shape_cast %42 : vector<1x384x128xbf16> to vector<384x128xbf16>
    %c1_42 = arith.constant 1 : index
    %c0_43 = arith.constant 0 : index
    %c0_44 = arith.constant 0 : index
    %44 = vector.load %arg5[%c1_42, %c0_43, %c0_44] : memref<6x1x128xf32, #tpu.memory_space<vmem>>, vector<1x1x128xf32>
    %45 = vector.shape_cast %44 : vector<1x1x128xf32> to vector<1x128xf32>
    %c0_45 = arith.constant 0 : index
    %c0_46 = arith.constant 0 : index
    %46 = vector.load %arg10[%c0_45, %c0_46] : memref<50x128xf32, #tpu.memory_space<vmem>>, vector<48x128xf32>
    %47 = arith.truncf %46 : vector<48x128xf32> to vector<48x128xbf16>
    %c1_47 = arith.constant 1 : index
    %c0_48 = arith.constant 0 : index
    %48 = vector.load %arg10[%c1_47, %c0_48] : memref<50x128xf32, #tpu.memory_space<vmem>>, vector<48x128xf32>
    %49 = arith.truncf %48 : vector<48x128xf32> to vector<48x128xbf16>
    %c2_49 = arith.constant 2 : index
    %c0_50 = arith.constant 0 : index
    %50 = vector.load %arg10[%c2_49, %c0_50] : memref<50x128xf32, #tpu.memory_space<vmem>>, vector<48x128xf32>
    %51 = arith.truncf %50 : vector<48x128xf32> to vector<48x128xbf16>
    %52 = tpu.concatenate %47, %49, %51 in 1 : vector<48x128xbf16>, vector<48x128xbf16>, vector<48x128xbf16> -> vector<48x384xbf16>
    %cst_51 = arith.constant dense<0.000000e+00> : vector<48x128xf32>
    %53 = tpu.matmul %52, %43, %cst_51 {dimension_numbers = #tpu.dot_dimension_numbers<[1], [0], [0], [1], [0, 0, 1, 1], [], []>} : vector<48x384xbf16>, vector<384x128xbf16>, vector<48x128xf32> -> vector<48x128xf32>
    %54 = vector.broadcast %45 : vector<1x128xf32> to vector<48x128xf32>
    %55 = arith.addf %53, %54 : vector<48x128xf32>
    %c1_52 = arith.constant 1 : index
    %c0_53 = arith.constant 0 : index
    %56 = vector.load %arg9[%c1_52, %c0_53] : memref<50x128xf32, #tpu.memory_space<vmem>>, vector<48x128xf32>
    %cst_54 = arith.constant 1.000000e-01 : f32
    %57 = vector.broadcast %cst_54 : f32 to vector<48x128xf32>
    %58 = arith.mulf %55, %57 : vector<48x128xf32>
    %59 = arith.maximumf %55, %58 : vector<48x128xf32>
    %60 = arith.addf %56, %59 : vector<48x128xf32>
    %c1_55 = arith.constant 1 : index
    %c0_56 = arith.constant 0 : index
    %61 = vector.load %arg9[%c1_55, %c0_56] : memref<50x128xf32, #tpu.memory_space<vmem>>, vector<48x128xf32>
    tpu.vector_store %arg9[%c1_55, %c0_56], %60 {strides = array<i32>} : memref<50x128xf32, #tpu.memory_space<vmem>>, vector<48x128xf32>,
    %c2_57 = arith.constant 2 : index
    %c0_58 = arith.constant 0 : index
    %c0_59 = arith.constant 0 : index
    %62 = vector.load %arg4[%c2_57, %c0_58, %c0_59] : memref<6x384x128xbf16, #tpu.memory_space<vmem>>, vector<1x384x128xbf16>
    %63 = vector.shape_cast %62 : vector<1x384x128xbf16> to vector<384x128xbf16>
    %c2_60 = arith.constant 2 : index
    %c0_61 = arith.constant 0 : index
    %c0_62 = arith.constant 0 : index
    %64 = vector.load %arg5[%c2_60, %c0_61, %c0_62] : memref<6x1x128xf32, #tpu.memory_space<vmem>>, vector<1x1x128xf32>
    %65 = vector.shape_cast %64 : vector<1x1x128xf32> to vector<1x128xf32>
    %c0_63 = arith.constant 0 : index
    %c0_64 = arith.constant 0 : index
    %66 = vector.load %arg9[%c0_63, %c0_64] : memref<50x128xf32, #tpu.memory_space<vmem>>, vector<48x128xf32>
    %67 = arith.truncf %66 : vector<48x128xf32> to vector<48x128xbf16>
    %c1_65 = arith.constant 1 : index
    %c0_66 = arith.constant 0 : index
    %68 = vector.load %arg9[%c1_65, %c0_66] : memref<50x128xf32, #tpu.memory_space<vmem>>, vector<48x128xf32>
    %69 = arith.truncf %68 : vector<48x128xf32> to vector<48x128xbf16>
    %c2_67 = arith.constant 2 : index
    %c0_68 = arith.constant 0 : index
    %70 = vector.load %arg9[%c2_67, %c0_68] : memref<50x128xf32, #tpu.memory_space<vmem>>, vector<48x128xf32>
    %71 = arith.truncf %70 : vector<48x128xf32> to vector<48x128xbf16>
    %72 = tpu.concatenate %67, %69, %71 in 1 : vector<48x128xbf16>, vector<48x128xbf16>, vector<48x128xbf16> -> vector<48x384xbf16>
    %cst_69 = arith.constant dense<0.000000e+00> : vector<48x128xf32>
    %73 = tpu.matmul %72, %63, %cst_69 {dimension_numbers = #tpu.dot_dimension_numbers<[1], [0], [0], [1], [0, 0, 1, 1], [], []>} : vector<48x384xbf16>, vector<384x128xbf16>, vector<48x128xf32> -> vector<48x128xf32>
    %74 = vector.broadcast %65 : vector<1x128xf32> to vector<48x128xf32>
    %75 = arith.addf %73, %74 : vector<48x128xf32>
    %cst_70 = arith.constant 1.000000e-01 : f32
    %76 = vector.broadcast %cst_70 : f32 to vector<48x128xf32>
    %77 = arith.mulf %75, %76 : vector<48x128xf32>
    %78 = arith.maximumf %75, %77 : vector<48x128xf32>
    %c1_71 = arith.constant 1 : index
    %c0_72 = arith.constant 0 : index
    %79 = vector.load %arg10[%c1_71, %c0_72] : memref<50x128xf32, #tpu.memory_space<vmem>>, vector<48x128xf32>
    tpu.vector_store %arg10[%c1_71, %c0_72], %78 {strides = array<i32>} : memref<50x128xf32, #tpu.memory_space<vmem>>, vector<48x128xf32>,
    %c3_73 = arith.constant 3 : index
    %c0_74 = arith.constant 0 : index
    %c0_75 = arith.constant 0 : index
    %80 = vector.load %arg4[%c3_73, %c0_74, %c0_75] : memref<6x384x128xbf16, #tpu.memory_space<vmem>>, vector<1x384x128xbf16>
    %81 = vector.shape_cast %80 : vector<1x384x128xbf16> to vector<384x128xbf16>
    %c3_76 = arith.constant 3 : index
    %c0_77 = arith.constant 0 : index
    %c0_78 = arith.constant 0 : index
    %82 = vector.load %arg5[%c3_76, %c0_77, %c0_78] : memref<6x1x128xf32, #tpu.memory_space<vmem>>, vector<1x1x128xf32>
    %83 = vector.shape_cast %82 : vector<1x1x128xf32> to vector<1x128xf32>
    %c0_79 = arith.constant 0 : index
    %c0_80 = arith.constant 0 : index
    %84 = vector.load %arg10[%c0_79, %c0_80] : memref<50x128xf32, #tpu.memory_space<vmem>>, vector<48x128xf32>
    %85 = arith.truncf %84 : vector<48x128xf32> to vector<48x128xbf16>
    %c1_81 = arith.constant 1 : index
    %c0_82 = arith.constant 0 : index
    %86 = vector.load %arg10[%c1_81, %c0_82] : memref<50x128xf32, #tpu.memory_space<vmem>>, vector<48x128xf32>
    %87 = arith.truncf %86 : vector<48x128xf32> to vector<48x128xbf16>
    %c2_83 = arith.constant 2 : index
    %c0_84 = arith.constant 0 : index
    %88 = vector.load %arg10[%c2_83, %c0_84] : memref<50x128xf32, #tpu.memory_space<vmem>>, vector<48x128xf32>
    %89 = arith.truncf %88 : vector<48x128xf32> to vector<48x128xbf16>
    %90 = tpu.concatenate %85, %87, %89 in 1 : vector<48x128xbf16>, vector<48x128xbf16>, vector<48x128xbf16> -> vector<48x384xbf16>
    %cst_85 = arith.constant dense<0.000000e+00> : vector<48x128xf32>
    %91 = tpu.matmul %90, %81, %cst_85 {dimension_numbers = #tpu.dot_dimension_numbers<[1], [0], [0], [1], [0, 0, 1, 1], [], []>} : vector<48x384xbf16>, vector<384x128xbf16>, vector<48x128xf32> -> vector<48x128xf32>
    %92 = vector.broadcast %83 : vector<1x128xf32> to vector<48x128xf32>
    %93 = arith.addf %91, %92 : vector<48x128xf32>
    %c1_86 = arith.constant 1 : index
    %c0_87 = arith.constant 0 : index
    %94 = vector.load %arg9[%c1_86, %c0_87] : memref<50x128xf32, #tpu.memory_space<vmem>>, vector<48x128xf32>
    %cst_88 = arith.constant 1.000000e-01 : f32
    %95 = vector.broadcast %cst_88 : f32 to vector<48x128xf32>
    %96 = arith.mulf %93, %95 : vector<48x128xf32>
    %97 = arith.maximumf %93, %96 : vector<48x128xf32>
    %98 = arith.addf %94, %97 : vector<48x128xf32>
    %c1_89 = arith.constant 1 : index
    %c0_90 = arith.constant 0 : index
    %99 = vector.load %arg9[%c1_89, %c0_90] : memref<50x128xf32, #tpu.memory_space<vmem>>, vector<48x128xf32>
    tpu.vector_store %arg9[%c1_89, %c0_90], %98 {strides = array<i32>} : memref<50x128xf32, #tpu.memory_space<vmem>>, vector<48x128xf32>,
    %c4_91 = arith.constant 4 : index
    %c0_92 = arith.constant 0 : index
    %c0_93 = arith.constant 0 : index
    %100 = vector.load %arg4[%c4_91, %c0_92, %c0_93] : memref<6x384x128xbf16, #tpu.memory_space<vmem>>, vector<1x384x128xbf16>
    %101 = vector.shape_cast %100 : vector<1x384x128xbf16> to vector<384x128xbf16>
    %c4_94 = arith.constant 4 : index
    %c0_95 = arith.constant 0 : index
    %c0_96 = arith.constant 0 : index
    %102 = vector.load %arg5[%c4_94, %c0_95, %c0_96] : memref<6x1x128xf32, #tpu.memory_space<vmem>>, vector<1x1x128xf32>
    %103 = vector.shape_cast %102 : vector<1x1x128xf32> to vector<1x128xf32>
    %c0_97 = arith.constant 0 : index
    %c0_98 = arith.constant 0 : index
    %104 = vector.load %arg9[%c0_97, %c0_98] : memref<50x128xf32, #tpu.memory_space<vmem>>, vector<48x128xf32>
    %105 = arith.truncf %104 : vector<48x128xf32> to vector<48x128xbf16>
    %c1_99 = arith.constant 1 : index
    %c0_100 = arith.constant 0 : index
    %106 = vector.load %arg9[%c1_99, %c0_100] : memref<50x128xf32, #tpu.memory_space<vmem>>, vector<48x128xf32>
    %107 = arith.truncf %106 : vector<48x128xf32> to vector<48x128xbf16>
    %c2_101 = arith.constant 2 : index
    %c0_102 = arith.constant 0 : index
    %108 = vector.load %arg9[%c2_101, %c0_102] : memref<50x128xf32, #tpu.memory_space<vmem>>, vector<48x128xf32>
    %109 = arith.truncf %108 : vector<48x128xf32> to vector<48x128xbf16>
    %110 = tpu.concatenate %105, %107, %109 in 1 : vector<48x128xbf16>, vector<48x128xbf16>, vector<48x128xbf16> -> vector<48x384xbf16>
    %cst_103 = arith.constant dense<0.000000e+00> : vector<48x128xf32>
    %111 = tpu.matmul %110, %101, %cst_103 {dimension_numbers = #tpu.dot_dimension_numbers<[1], [0], [0], [1], [0, 0, 1, 1], [], []>} : vector<48x384xbf16>, vector<384x128xbf16>, vector<48x128xf32> -> vector<48x128xf32>
    %112 = vector.broadcast %103 : vector<1x128xf32> to vector<48x128xf32>
    %113 = arith.addf %111, %112 : vector<48x128xf32>
    %cst_104 = arith.constant 1.000000e-01 : f32
    %114 = vector.broadcast %cst_104 : f32 to vector<48x128xf32>
    %115 = arith.mulf %113, %114 : vector<48x128xf32>
    %116 = arith.maximumf %113, %115 : vector<48x128xf32>
    %c1_105 = arith.constant 1 : index
    %c0_106 = arith.constant 0 : index
    %117 = vector.load %arg10[%c1_105, %c0_106] : memref<50x128xf32, #tpu.memory_space<vmem>>, vector<48x128xf32>
    tpu.vector_store %arg10[%c1_105, %c0_106], %116 {strides = array<i32>} : memref<50x128xf32, #tpu.memory_space<vmem>>, vector<48x128xf32>,
    %c5 = arith.constant 5 : index
    %c0_107 = arith.constant 0 : index
    %c0_108 = arith.constant 0 : index
    %118 = vector.load %arg4[%c5, %c0_107, %c0_108] : memref<6x384x128xbf16, #tpu.memory_space<vmem>>, vector<1x384x128xbf16>
    %119 = vector.shape_cast %118 : vector<1x384x128xbf16> to vector<384x128xbf16>
    %c5_109 = arith.constant 5 : index
    %c0_110 = arith.constant 0 : index
    %c0_111 = arith.constant 0 : index
    %120 = vector.load %arg5[%c5_109, %c0_110, %c0_111] : memref<6x1x128xf32, #tpu.memory_space<vmem>>, vector<1x1x128xf32>
    %121 = vector.shape_cast %120 : vector<1x1x128xf32> to vector<1x128xf32>
    %c0_112 = arith.constant 0 : index
    %c0_113 = arith.constant 0 : index
    %122 = vector.load %arg10[%c0_112, %c0_113] : memref<50x128xf32, #tpu.memory_space<vmem>>, vector<48x128xf32>
    %123 = arith.truncf %122 : vector<48x128xf32> to vector<48x128xbf16>
    %c1_114 = arith.constant 1 : index
    %c0_115 = arith.constant 0 : index
    %124 = vector.load %arg10[%c1_114, %c0_115] : memref<50x128xf32, #tpu.memory_space<vmem>>, vector<48x128xf32>
    %125 = arith.truncf %124 : vector<48x128xf32> to vector<48x128xbf16>
    %c2_116 = arith.constant 2 : index
    %c0_117 = arith.constant 0 : index
    %126 = vector.load %arg10[%c2_116, %c0_117] : memref<50x128xf32, #tpu.memory_space<vmem>>, vector<48x128xf32>
    %127 = arith.truncf %126 : vector<48x128xf32> to vector<48x128xbf16>
    %128 = tpu.concatenate %123, %125, %127 in 1 : vector<48x128xbf16>, vector<48x128xbf16>, vector<48x128xbf16> -> vector<48x384xbf16>
    %cst_118 = arith.constant dense<0.000000e+00> : vector<48x128xf32>
    %129 = tpu.matmul %128, %119, %cst_118 {dimension_numbers = #tpu.dot_dimension_numbers<[1], [0], [0], [1], [0, 0, 1, 1], [], []>} : vector<48x384xbf16>, vector<384x128xbf16>, vector<48x128xf32> -> vector<48x128xf32>
    %130 = vector.broadcast %121 : vector<1x128xf32> to vector<48x128xf32>
    %131 = arith.addf %129, %130 : vector<48x128xf32>
    %c1_119 = arith.constant 1 : index
    %c0_120 = arith.constant 0 : index
    %132 = vector.load %arg9[%c1_119, %c0_120] : memref<50x128xf32, #tpu.memory_space<vmem>>, vector<48x128xf32>
    %cst_121 = arith.constant 1.000000e-01 : f32
    %133 = vector.broadcast %cst_121 : f32 to vector<48x128xf32>
    %134 = arith.mulf %131, %133 : vector<48x128xf32>
    %135 = arith.maximumf %131, %134 : vector<48x128xf32>
    %136 = arith.addf %132, %135 : vector<48x128xf32>
    %c1_122 = arith.constant 1 : index
    %c0_123 = arith.constant 0 : index
    %137 = vector.load %arg9[%c1_122, %c0_123] : memref<50x128xf32, #tpu.memory_space<vmem>>, vector<48x128xf32>
    tpu.vector_store %arg9[%c1_122, %c0_123], %136 {strides = array<i32>} : memref<50x128xf32, #tpu.memory_space<vmem>>, vector<48x128xf32>,
    %c0_124 = arith.constant 0 : index
    %c0_125 = arith.constant 0 : index
    %138 = vector.load %arg6[%c0_124, %c0_125] : memref<384x896xbf16, #tpu.memory_space<vmem>>, vector<384x896xbf16>
    %c0_126 = arith.constant 0 : index
    %c0_127 = arith.constant 0 : index
    %139 = vector.load %arg7[%c0_126, %c0_127] : memref<1x896xf32, #tpu.memory_space<vmem>>, vector<1x896xf32>
    %c0_128 = arith.constant 0 : index
    %c0_129 = arith.constant 0 : index
    %140 = vector.load %arg9[%c0_128, %c0_129] : memref<50x128xf32, #tpu.memory_space<vmem>>, vector<48x128xf32>
    %141 = arith.truncf %140 : vector<48x128xf32> to vector<48x128xbf16>
    %c1_130 = arith.constant 1 : index
    %c0_131 = arith.constant 0 : index
    %142 = vector.load %arg9[%c1_130, %c0_131] : memref<50x128xf32, #tpu.memory_space<vmem>>, vector<48x128xf32>
    %143 = arith.truncf %142 : vector<48x128xf32> to vector<48x128xbf16>
    %c2_132 = arith.constant 2 : index
    %c0_133 = arith.constant 0 : index
    %144 = vector.load %arg9[%c2_132, %c0_133] : memref<50x128xf32, #tpu.memory_space<vmem>>, vector<48x128xf32>
    %145 = arith.truncf %144 : vector<48x128xf32> to vector<48x128xbf16>
    %146 = tpu.concatenate %141, %143, %145 in 1 : vector<48x128xbf16>, vector<48x128xbf16>, vector<48x128xbf16> -> vector<48x384xbf16>
    %cst_134 = arith.constant dense<0.000000e+00> : vector<48x896xf32>
    %147 = tpu.matmul %146, %138, %cst_134 {dimension_numbers = #tpu.dot_dimension_numbers<[1], [0], [0], [1], [0, 0, 1, 1], [], []>} : vector<48x384xbf16>, vector<384x896xbf16>, vector<48x896xf32> -> vector<48x896xf32>
    %148 = vector.broadcast %139 : vector<1x896xf32> to vector<48x896xf32>
    %149 = arith.addf %147, %148 : vector<48x896xf32>
    %c0_135 = arith.constant 0 : index
    %c0_136 = arith.constant 0 : index
    %c0_137 = arith.constant 0 : index
    %150 = vector.load %arg8[%c0_135, %c0_136, %c0_137] : memref<1x48x896xf32, #tpu.memory_space<vmem>>, vector<1x48x896xf32>
    %151 = vector.shape_cast %150 : vector<1x48x896xf32> to vector<48x896xf32>
    %152 = vector.shape_cast %149 : vector<48x896xf32> to vector<1x48x896xf32>
    tpu.vector_store %arg8[%c0_135, %c0_136, %c0_137], %152 {strides = array<i32>} : memref<1x48x896xf32, #tpu.memory_space<vmem>>, vector<1x48x896xf32>,
    return
  }
  func.func @transform_0(%arg0: i32) -> (i32, i32, i32) {
    %c0_i32 = arith.constant 0 : i32
    %c0_i32_0 = arith.constant 0 : i32
    %c0_i32_1 = arith.constant 0 : i32
    return %arg0, %c0_i32, %c0_i32_0 : i32, i32, i32
  }
  func.func @transform_1(%arg0: i32) -> (i32, i32) {
    %c0_i32 = arith.constant 0 : i32
    %c0_i32_0 = arith.constant 0 : i32
    %c0_i32_1 = arith.constant 0 : i32
    return %c0_i32, %c0_i32_0 : i32, i32
  }
  func.func @transform_2(%arg0: i32) -> (i32, i32) {
    %c0_i32 = arith.constant 0 : i32
    %c0_i32_0 = arith.constant 0 : i32
    %c0_i32_1 = arith.constant 0 : i32
    return %c0_i32, %c0_i32_0 : i32, i32
  }
  func.func @transform_3(%arg0: i32) -> (i32, i32, i32) {
    %c0_i32 = arith.constant 0 : i32
    %c0_i32_0 = arith.constant 0 : i32
    %c0_i32_1 = arith.constant 0 : i32
    %c0_i32_2 = arith.constant 0 : i32
    return %c0_i32, %c0_i32_0, %c0_i32_1 : i32, i32, i32
  }
  func.func @transform_4(%arg0: i32) -> (i32, i32, i32) {
    %c0_i32 = arith.constant 0 : i32
    %c0_i32_0 = arith.constant 0 : i32
    %c0_i32_1 = arith.constant 0 : i32
    %c0_i32_2 = arith.constant 0 : i32
    return %c0_i32, %c0_i32_0, %c0_i32_1 : i32, i32, i32
  }
  func.func @transform_5(%arg0: i32) -> (i32, i32) {
    %c0_i32 = arith.constant 0 : i32
    %c0_i32_0 = arith.constant 0 : i32
    %c0_i32_1 = arith.constant 0 : i32
    return %c0_i32, %c0_i32_0 : i32, i32
  }
  func.func @transform_6(%arg0: i32) -> (i32, i32) {
    %c0_i32 = arith.constant 0 : i32
    %c0_i32_0 = arith.constant 0 : i32
    %c0_i32_1 = arith.constant 0 : i32
    return %c0_i32, %c0_i32_0 : i32, i32
  }
  func.func @transform_7(%arg0: i32) -> (i32, i32, i32) {
    %c0_i32 = arith.constant 0 : i32
    %c0_i32_0 = arith.constant 0 : i32
    %c0_i32_1 = arith.constant 0 : i32
    return %arg0, %c0_i32, %c0_i32_0 : i32, i32, i32
  }
}

</mosaic_0001>

<bundles_post_ra>
// kernel: _lambda_.1
= control target key start
LH: loop header
LB: loop body
LE: loop exit
PB: predicated region body
PF: predicated region fallthrough
CT: control target
= control target key end

     0   :  { %12 = vsyncpa [#allocation5], 0  ;;  %s7184_s0 = inlined_call_operand.vmem [shape: bf16[2,56,128], index: 0, kind: input, shape index: {}]   ;;  %s7185_s1 = inlined_call_operand.hbm [shape: bf16[640,128], index: 1, kind: input, shape index: {}]   ;;  %s7186_s2 = inlined_call_operand.vmem [shape: f32[1,128], index: 2, kind: input, shape index: {}]   ;;  %s7187_s3 = inlined_call_operand.hbm [shape: bf16[6,384,128], index: 3, kind: input, shape index: {}]   ;;  %s7188_s4 = inlined_call_operand.vmem [shape: f32[6,1,128], index: 4, kind: input, shape index: {}]   ;;  %s7189_s5 = inlined_call_operand.hbm [shape: bf16[384,896], index: 5, kind: input, shape index: {}]   ;;  %s7190_s6 = inlined_call_operand.vmem [shape: f32[1,896], index: 6, kind: input, shape index: {}]   ;;  %s7191_s7 = inlined_call_operand.vmem [shape: f32[2,48,896], index: 7, kind: output, shape index: {}]  }
   0x1   :  { %13 = vsyncpa [#allocation7], 0  ;;  %s6644_s24 = smov 0  }
   0x2 LB: > { %s6650_s25 = sadd.s32 4294967295, %s6592_s24   ;;  %p4934_p0 = scmp.ge.s32.totalorder %s6592_s24, 1  ;;  %s6592_s24 = sphi %s6644_s24, %s19_s24  }
   0x3   : > { %p202_p1 = scmp.lt.s32.totalorder %s6592_s24, 3  ;;  %p6035_p2 = scmp.eq.s32.totalorder %s6650_s25, 0 }
   0x4   : > { %s6594_s27 = smov [#allocation6]   ;;  %s6595_s29 = smov [#allocation4]  }
   0x5   : > { %p6655_p3 = pnand %p4934_p0, %p202_p1  ;;  %s230_s28 = sshll.u32 %s6594_s27, 4  ;;  %s6659_s28 = int_to_ptr.vmem [resolvable:$true] %s230_s28 }
   0x6   : > { %s214_s30 = sshll.u32 %s6595_s29, 4  ;;  %s6596_s9 = smov [#allocation8]   ;;  %s6663_s30 = int_to_ptr.vmem [resolvable:$true] %s214_s30 }
   0x7   : > { %p6025_p4 = pneg %p6655_p3  ;;  %s246_s10 = sshll.u32 %s6596_s9, 4  ;;  %s6671_s10 = int_to_ptr.vmem [resolvable:$true] %s246_s10 }
   0x8   : > { %s6494_s13 = scalar_lea.hbm %s7187_s3, 18432 }
   0x9   : > { %p6667_p5 = pnand %p6035_p2, %p6025_p4  ;;  %p6495_p6 = scmp.ne.s32.totalorder %s7187_s3, %s6494_s13 }
   0xa   : > { %p6501_p10 = scmp.lt.u32.totalorder %s6494_s13, %s7187_s3 }
   0xb   : > { %p6681_p7 = pneg %p6667_p5 }
   0xd   : > { %p6497_p8 = pnand %p6681_p7, %p6495_p6 }
   0xf   : > { %p6498_p9 = pneg %p6497_p8 }
  0x11   : > { %p6503_p11 = pnand %p6501_p10, %p6498_p9 }
  0x13   : > { %6506 = shalt.err (!%p6503_p11)
}
  0x14   : > { %s6507_s19 = scalar_lea.vmem %s6659_s28, 18432  ;;  %p6515_p1 = scmp.lt.s32.totalorder %s6659_s28, %s6659_s28 }
  0x15   : > { %p6508_p12 = scmp.ne.s32.totalorder %s6659_s28, %s6507_s19  ;;  %p6516_p4 = scmp.lt.s32.totalorder %s6507_s19, %s6507_s19 }
  0x17   : > { %p6510_p13 = pnand %p6508_p12, %p6681_p7  ;;  %p6517_p6 = por %p6516_p4, %p6515_p1 }
  0x19   : > { %p6511_p0 = pneg %p6510_p13 }
  0x1b   : > { %p6518_p8 = pnand %p6517_p6, %p6511_p0 }
  0x1d   : > { %6521 = shalt.err (!%p6518_p8)
}
  0x1e   : > { %s6597_s20 = smov 64   ;;  %s6598_s21 = smov 4  }
  0x1f   : > { %6031 = dma.hbm_to_vmem [thread:$0]  (!%p6667_p5), %s7187_s3, 18432, %s6659_s28, [#allocation7], %s6597_s20, %s6597_s20, %s6598_s21  }
  0x20   : > { %s6522_s9 = scalar_lea.hbm %s7185_s1, 5120 }
  0x21   : > { %p6523_p9 = scmp.ne.s32.totalorder %s7185_s1, %s6522_s9  ;;  %p6529_p12 = scmp.lt.u32.totalorder %s6522_s9, %s7185_s1 }
  0x23   : > { %p6525_p10 = pnand %p6523_p9, %p6681_p7 }
  0x25   : > { %p6526_p11 = pneg %p6525_p10 }
  0x27   : > { %p6531_p13 = pnand %p6529_p12, %p6526_p11 }
  0x29   : > { %6534 = shalt.err (!%p6531_p13)
}
  0x2a   : > { %s6535_s28 = scalar_lea.vmem %s6663_s30, 5120  ;;  %p6543_p6 = scmp.lt.s32.totalorder %s6663_s30, %s6663_s30 }
  0x2b   : > { %p6536_p0 = scmp.ne.s32.totalorder %s6663_s30, %s6535_s28  ;;  %p6544_p8 = scmp.lt.s32.totalorder %s6535_s28, %s6535_s28 }
  0x2d   : > { %p6538_p1 = pnand %p6536_p0, %p6681_p7  ;;  %p6545_p9 = por %p6544_p8, %p6543_p6 }
  0x2f   : > { %p6539_p4 = pneg %p6538_p1 }
  0x31   : > { %p6546_p10 = pnand %p6545_p9, %p6539_p4 }
  0x33   : > { %6549 = shalt.err (!%p6546_p10)
}
  0x34   : > { %6028 = dma.hbm_to_vmem [thread:$0]  (!%p6667_p5), %s7185_s1, 5120, %s6663_s30, [#allocation5], %s6597_s20, %s6597_s20, %s6598_s21  }
  0x35   : > { %s6550_s22 = scalar_lea.hbm %s7189_s5, 21504 }
  0x36   : > { %p6551_p11 = scmp.ne.s32.totalorder %s7189_s5, %s6550_s22  ;;  %p6557_p0 = scmp.lt.u32.totalorder %s6550_s22, %s7189_s5 }
  0x38   : > { %p6553_p12 = pnand %p6551_p11, %p6681_p7 }
  0x3a   : > { %p6554_p13 = pneg %p6553_p12 }
  0x3c   : > { %p6559_p1 = pnand %p6557_p0, %p6554_p13 }
  0x3e   : > { %6562 = shalt.err (!%p6559_p1)
}
  0x3f   : > { %s6563_s30 = scalar_lea.vmem %s6671_s10, 21504  ;;  %p6571_p9 = scmp.lt.s32.totalorder %s6671_s10, %s6671_s10 }
  0x40   : > { %p6564_p4 = scmp.ne.s32.totalorder %s6671_s10, %s6563_s30  ;;  %p6572_p10 = scmp.lt.s32.totalorder %s6563_s30, %s6563_s30 }
  0x42   : > { %p6566_p6 = pnand %p6564_p4, %p6681_p7  ;;  %p6573_p11 = por %p6572_p10, %p6571_p9 }
  0x44   : > { %p6567_p8 = pneg %p6566_p6 }
  0x46   : > { %p6574_p12 = pnand %p6573_p11, %p6567_p8 }
  0x48   : > { %6577 = shalt.err (!%p6574_p12)
}
  0x49   : > { %s6599_s20 = smov 448   ;;  %s6600_s21 = smov 28  }
  0x4a   : > { %6034 = dma.hbm_to_vmem [thread:$0]  (!%p6667_p5), %s7189_s5, 21504, %s6671_s10, [#allocation7], %s6599_s20, %s6599_s20, %s6600_s21  }
  0x4b   : > { %273 = sbr.rel (%p6655_p3) target bundleno = 2165 (0x875), region = 48 }
  0x52   : > { %6583 = dma.done.wait (%p6035_p2), [#allocation5], 5120  }
  0x53   : > { %6585 = vsyncadd (%p6035_p2), [#allocation5], 4294962176 }
  0x54   : > { %6587 = dma.done.wait (%p6035_p2), [#allocation7], 39936  }
  0x55   : > { %6589 = vsyncadd (%p6035_p2), [#allocation7], 4294927360  ;;  %v6601_v0 = vmov 0.0   ;;  %v6059_v1 = vld [vmem:[#allocation4 + $0x40] sm:$0xff]   ;;  %v6063_v5 = vld [vmem:[#allocation4 + $0x48] sm:$0xff]   ;;  %p313_p2 = scmp.lt.s32.totalorder %s6650_s25, 1 }
  0x56   : > { %324 = vst [vmem:[#allocation2] sm:$0xff] %v6601_v0  ;;  %325 = vst [vmem:[#allocation2 + $0x8] sm:$0xff] %v6601_v0  ;;  %v6060_v2 = vld [vmem:[#allocation4] sm:$0xff]   ;;  %5321 = vmatprep.subr.bf16.mxu0 %v6059_v1  ;;  %v6064_v6 = vld [vmem:[#allocation4 + $0x8] sm:$0xff]   ;;  %vm471_vm0 = vsmask.f32 7424 }
  0x57   : > { %326 = vst [vmem:[#allocation2 + $0x10] sm:$0xff] %v6601_v0  ;;  %327 = vst [vmem:[#allocation2 + $0x18] sm:$0xff] %v6601_v0  ;;  %v6061_v3 = vld [vmem:[#allocation4 + $0xc0] sm:$0xff]   ;;  %5322 = vmatpush3.bf16.msra.mxu0 %v6060_v2  ;;  %v6065_v7 = vld [vmem:[#allocation4 + $0xc8] sm:$0xff]   ;;  %s7196_s25 = smov (!%p313_p2, %s6650_s25), 1  ;;  %vm506_vm2 = vcmask 1046528  }
  0x58   : > { %328 = vst [vmem:[#allocation2 + $0x20] sm:$0xff] %v6601_v0  ;;  %329 = vst [vmem:[#allocation2 + $0x28] sm:$0xff] %v6601_v0  ;;  %v6062_v4 = vld [vmem:[#allocation4 + $0x80] sm:$0xff]   ;;  %5355 = vmatprep.subr.bf16.mxu1 %v6061_v3  ;;  %5323 = vmatprep.subr.bf16.mxu0 %v6063_v5  ;;  %v6066_v8 = vld [vmem:[#allocation4 + $0x88] sm:$0xff]   ;;  %s6011_s26 = smul.u32 28, %s7196_s25  ;;  %vm6602_vm3 = vmmov 0  }
  0x59   : > { %330 = vst [vmem:[#allocation2 + $0x30] sm:$0x3] %v6601_v0  ;;  %331 = vst [vmem:[#allocation3] sm:$0xff] %v6601_v0  ;;  %5356 = vmatpush3.bf16.msra.mxu1 %v6062_v4  ;;  %v6067_v9 = vld [vmem:[#allocation4 + $0x50] sm:$0xff]   ;;  %v6071_v13 = vld [vmem:[#allocation4 + $0x58] sm:$0xff]   ;;  %vm552_vm4 = vcmask 1045504  }
  0x5a   : > { %332 = vst [vmem:[#allocation3 + $0x8] sm:$0xff] %v6601_v0  ;;  %333 = vst [vmem:[#allocation3 + $0x10] sm:$0xff] %v6601_v0  ;;  %5357 = vmatprep.subr.bf16.mxu1 %v6065_v7  ;;  %v6068_v10 = vld [vmem:[#allocation4 + $0x10] sm:$0xff]   ;;  %v6072_v14 = vld [vmem:[#allocation4 + $0x18] sm:$0xff]   ;;  %s6780_s16 = scalar_lea.vmem %s7184_s0, %s6011_s26  ;;  %vm520_vm1 = vsmask.f32 6400 }
  0x5b   : > { %334 = vst [vmem:[#allocation3 + $0x18] sm:$0xff] %v6601_v0  ;;  %335 = vst [vmem:[#allocation3 + $0x20] sm:$0xff] %v6601_v0  ;;  %5324 = vmatpush3.bf16.msra.mxu0 %v6064_v6  ;;  %v6069_v11 = vld [vmem:[#allocation4 + $0xd0] sm:$0xff]   ;;  %v6073_v15 = vld [vmem:[#allocation4 + $0xd8] sm:$0xff]   ;;  %s6012_s12 = smul.u32 336, %s7196_s25 }
  0x5c   : > { %336 = vst [vmem:[#allocation3 + $0x28] sm:$0xff] %v6601_v0  ;;  %337 = vst [vmem:[#allocation3 + $0x30] sm:$0x3] %v6601_v0  ;;  %5325 = vmatprep.subr.bf16.mxu0 %v6067_v9  ;;  %v6070_v12 = vld [vmem:[#allocation4 + $0x90] sm:$0xff]   ;;  %v6074_v16 = vld [vmem:[#allocation4 + $0x98] sm:$0xff]  }
  0x5d   : > { %5358 = vmatpush3.bf16.msra.mxu1 %v6066_v8  ;;  %v6075_v17 = vld [vmem:[#allocation4 + $0x60] sm:$0xff]   ;;  %v6079_v21 = vld [vmem:[#allocation4 + $0x68] sm:$0xff]   ;;  %v6083_v25 = vld [vmem:[#allocation4 + $0x70] sm:$0xff]   ;;  %s7107_s10 = scalar_lea.vmem %s7191_s7, %s6012_s12 }
  0x5e   : > { %5359 = vmatprep.subr.bf16.mxu1 %v6069_v11  ;;  %v6076_v18 = vld [vmem:[#allocation4 + $0x20] sm:$0xff]   ;;  %v6080_v22 = vld [vmem:[#allocation4 + $0x28] sm:$0xff]   ;;  %v6084_v26 = vld [vmem:[#allocation4 + $0x30] sm:$0xff]  }
  0x5f   : > { %5326 = vmatpush3.bf16.msra.mxu0 %v6068_v10  ;;  %v6077_v19 = vld [vmem:[#allocation4 + $0xe0] sm:$0xff]   ;;  %v6081_v23 = vld [vmem:[#allocation4 + $0xe8] sm:$0xff]   ;;  %v6085_v27 = vld [vmem:[#allocation4 + $0xf0] sm:$0xff]  }
  0x60   : > { %5327 = vmatprep.subr.bf16.mxu0 %v6071_v13  ;;  %v6078_v20 = vld [vmem:[#allocation4 + $0xa0] sm:$0xff]   ;;  %v6082_v24 = vld [vmem:[#allocation4 + $0xa8] sm:$0xff]   ;;  %v6086_v28 = vld [vmem:[#allocation4 + $0xb0] sm:$0xff]  }
  0x61   : > { %5360 = vmatpush3.bf16.msra.mxu1 %v6070_v12  ;;  %v6087_v29 = vld [vmem:[#allocation4 + $0x78] sm:$0xff]   ;;  %v425_v32 = vld [vmem:[%s6780_s16] sm:$0xf]  ;;  %v6784_v33 = vld [vmem:[%s6780_s16 + $0x4] sm:$0xf] }
  0x62   : > { %5361 = vmatprep.subr.bf16.mxu1 %v6073_v15  ;;  %v6088_v30 = vld [vmem:[#allocation4 + $0x38] sm:$0xff]   ;;  %v4948_v34 = vcombine.low %v425_v32, %v6784_v33  ;;  %v432_v40 = vld [vmem:[%s6780_s16] sm:$0xe]  ;;  %v6095_v52 = vld [vmem:[#allocation4 + $0x100] sm:$0xff]  }
  0x63   : > { %5328 = vmatpush3.bf16.msra.mxu0 %v6072_v14  ;;  %v6089_v31 = vld [vmem:[#allocation4 + $0xf8] sm:$0xff]   ;;  %v6093_v44 = vld [vmem:[%s6780_s16] sm:$0xff]   ;;  %v4952_v45 = vcombine.low %v432_v40, %v6784_v33  ;;  %v6799_v58 = vld [vmem:[%s6780_s16 + $0x10] sm:$0xff]  }
  0x64   : > { %5329 = vmatprep.subr.bf16.mxu0 %v6075_v17  ;;  %v6788_v35 = vld [vmem:[%s6780_s16 + $0x8] sm:$0xff]   ;;  %v473_v37 = vshrl.u32 %v4948_v34, 16  ;;  %v475_v38 = vshll.u32 %v4948_v34, 16  ;;  %v488_v61 = vshll.u32 %v6799_v58, 16  ;;  %v492_v62 = vshrl.u32 %v6799_v58, 16  ;;  %v6096_v1 = vld [vmem:[#allocation4 + $0x108] sm:$0xff]  }
  0x65   : > { %5362 = vmatpush3.bf16.msra.mxu1 %v6074_v16  ;;  %v6092_v36 = vld [vmem:[#allocation4 + $0xb8] sm:$0xff]   ;;  %v480_v39 = vshll.u32 %v6788_v35, 16  ;;  %v484_v41 = vshrl.u32 %v6788_v35, 16  ;;  %v508_v48 = vrot.slane %v6788_v35, 1  ;;  %v522_v50 = vshrl.u32 %v4952_v45, 16  ;;  %v6097_v7 = vld [vmem:[#allocation4 + $0x110] sm:$0xff]  }
  0x66   : > { %5363 = vmatprep.subr.bf16.mxu1 %v6077_v19  ;;  %v477_v42 = vrot.slane %v475_v38, 1  ;;  %v525_v51 = vshll.u32 %v4952_v45, 16  ;;  %v507_v53 = vrot.slane %v4952_v45, 1  ;;  %v490_v3 = vrot.slane %v488_v61, 1  ;;  %v6099_v10 = vld [vmem:[%s6780_s16 + $0x8] sm:$0xff]   ;;  %v6112_v45 = vld [vmem:[#allocation6 + $0x8] sm:$0xff]  }
  0x67   : > { %5330 = vmatpush3.bf16.msra.mxu0 %v6076_v18  ;;  %v482_v43 = vrot.slane %v480_v39, 1  ;;  %v530_v46 = vrot.slane %v480_v39, 2  ;;  %v529_v47 = vrot.slane %v484_v41, 1  ;;  %v524_v55 = vrot.slane %v522_v50, 1  ;;  %v6100_v19 = vld [vmem:[#allocation4 + $0x118] sm:$0xff]   ;;  %v6839_v50 = vld [vmem:[#allocation2] sm:$0xff] }
  0x68   : > { %5331 = vmatprep.subr.bf16.mxu0 %v6079_v21  ;;  %v478_v49 = vor.u32 %v477_v42, %v473_v37  ;;  %v527_v56 = vrot.slane %v525_v51, 2  ;;  %v509_v63 = vsel %vm506_vm2, %v507_v53, %v508_v48  ;;  %v533_v4 = vrot.slane %v492_v62, 1  ;;  %v6102_v6 = vld [vmem:[%s6780_s16 + $0x18] ss:$0 sps:$4 sm:$0x11]   ;;  %v6107_v38 = vld [vmem:[#allocation4 + $0x138] sm:$0xff]  }
  0x69   : > { %5364 = vmatpush3.bf16.msra.mxu1 %v6078_v20  ;;  %v531_v57 = vor.u32 %v530_v46, %v529_v47  ;;  %v486_v60 = vor.u32 %v484_v41, %v482_v43  ;;  %v534_v5 = vrot.slane %v488_v61, 2  ;;  %v510_v8 = vrot.slane %v6799_v58, 1  ;;  %v6105_v14 = vld [vmem:[%s6780_s16 + $0x18] ss:$0 sps:$4 sm:$0x33]   ;;  %v6109_v42 = vld [vmem:[#allocation6 + $0x40] sm:$0xff]  }
  0x6a   : > { %5365 = vmatprep.subr.bf16.mxu1 %v6081_v23  ;;  %v483_v54 = vsel %vm471_vm0, %v478_v49, %v482_v43  ;;  %v528_v59 = vor.u32 %v527_v56, %v524_v55  ;;  %v494_v12 = vor.u32 %v492_v62, %v490_v3  ;;  %v496_v13 = vshll.u32 %v6102_v6, 16  ;;  %v6110_v43 = vld [vmem:[#allocation6] sm:$0xff]   ;;  %v6114_v47 = vld [vmem:[#allocation6 + $0x50] sm:$0xff]   ;;  %v6116_v49 = vld [vmem:[#allocation6 + $0x88] sm:$0xff]  }
  0x6b   : > { %5332 = vmatpush3.bf16.msra.mxu0 %v6080_v22  ;;  %841 = vmatprep.mubr.bf16.mxu0 %v483_v54  ;;  %v491_v9 = vsel %vm471_vm0, %v486_v60, %v490_v3  ;;  %v535_v11 = vor.u32 %v534_v5, %v533_v4  ;;  %v554_v15 = vrot.slane %v6788_v35, 2  ;;  %v556_v18 = vrot.slane %v6799_v58, 2  ;;  %v6113_v46 = vld [vmem:[#allocation6 + $0x80] sm:$0xff]   ;;  %v6118_v51 = vld [vmem:[#allocation6 + $0x18] sm:$0xff]   ;;  %v6123_v56 = vld [vmem:[#allocation6 + $0x68] sm:$0xff]  }
  0x6c   : > { %5333 = vmatprep.subr.bf16.mxu0 %v6083_v25  ;;  %v532_v2 = vsel %vm520_vm1, %v528_v59, %v531_v57  ;;  %v498_v17 = vrot.slane %v496_v13, 1  ;;  %v538_v20 = vshrl.u32 %v6105_v14, 16  ;;  %v541_v21 = vshll.u32 %v6105_v14, 16  ;;  %v6120_v53 = vld [vmem:[#allocation6 + $0x60] sm:$0xff]   ;;  %v6122_v55 = vld [vmem:[#allocation6 + $0x98] sm:$0xff]   ;;  %v6126_v59 = vld [vmem:[#allocation6 + $0x70] sm:$0xff]  }
  0x6d   : > { %5366 = vmatpush3.bf16.msra.mxu1 %v6082_v24  ;;  %898 = vmatprep.mubr.bf16.mxu1 %v532_v2  ;;  %v536_v16 = vsel %vm520_vm1, %v531_v57, %v535_v11  ;;  %v512_v23 = vrot.slane %v6102_v6, 1  ;;  %v434_v24 = vld [vmem:[%s6780_s16] sm:$0xc]  ;;  %v558_v25 = vrot.slane %v6105_v14, 2  ;;  %v557_v40 = vsel %vm552_vm4, %v554_v15, %v556_v18  ;;  %v6121_v54 = vld [vmem:[#allocation6 + $0x20] sm:$0xff]   ;;  %v6124_v57 = vld [vmem:[#allocation6 + $0x28] sm:$0xff]  }
  0x6e   : > { %5367 = vmatprep.subr.bf16.mxu1 %v6085_v27  ;;  %v499_v22 = vsel %vm471_vm0, %v494_v12, %v498_v17  ;;  %v540_v27 = vrot.slane %v538_v20, 1  ;;  %v6125_v58 = vld [vmem:[#allocation6 + $0xa0] sm:$0xff]   ;;  %v6127_v60 = vld [vmem:[#allocation6 + $0x30] sm:$0xff]   ;;  %v6128_v61 = vld [vmem:[#allocation6 + $0xa8] sm:$0xff]  }
  0x6f   : > { %5334 = vmatpush3.bf16.msra.mxu0 %v6084_v26  ;;  %v511_v26 = vsel %vm506_vm2, %v508_v48, %v510_v8  ;;  %v513_v37 = vsel %vm506_vm2, %v510_v8, %v512_v23  ;;  %v559_v41 = vsel %vm552_vm4, %v556_v18, %v558_v25  ;;  %v6115_v48 = vld [vmem:[#allocation6 + $0x10] sm:$0xff]   ;;  %v6129_v62 = vld [vmem:[#allocation6 + $0x78] sm:$0xff]   ;;  %v6133_v3 = vld [vmem:[#allocation6 + $0x100] sm:$0xff]  }
  0x70   : > { %5335 = vmatprep.subr.bf16.mxu0 %v6087_v29  ;;  %v4954_v29 = vcombine.low %v434_v24, %v6784_v33  ;;  %v6106_v33 = vld [vmem:[#allocation4 + $0x130] sm:$0xff]   ;;  %v6132_v2 = vld [vmem:[#allocation6 + $0xb8] sm:$0xff]  }
  0x71   : > { %5368 = vmatpush3.bf16.msra.mxu1 %v6086_v28  ;;  %v543_v28 = vrot.slane %v541_v21, 2  ;;  %v4955_v5 = vld [vmem:[%s7186_s2] ss:$0 sm:$0xff] }
  0x72   : > { %5369 = vmatprep.subr.bf16.mxu1 %v6089_v31  ;;  %v6101_v31 = vld [vmem:[#allocation4 + $0x120] sm:$0xff]   ;;  %v553_v34 = vrot.slane %v4954_v29, 2 }
  0x73   : > { %5336 = vmatpush3.bf16.msra.mxu0 %v6088_v30  ;;  %v6103_v30 = vld [vmem:[%s6780_s16 + $0x10] sm:$0xff]   ;;  %v544_v32 = vor.u32 %v543_v28, %v540_v27 }
  0x74   : > { %5715 = vmatprep.subr.bf16.mxu0 %v6601_v0  ;;  %v555_v39 = vsel %vm552_vm4, %v553_v34, %v554_v15 }
  0x75   : > { %5370 = vmatpush3.bf16.msra.mxu1 %v6092_v36  ;;  %v545_v35 = vsel %vm520_vm1, %v535_v11, %v544_v32  ;;  %v6104_v36 = vld [vmem:[#allocation4 + $0x128] sm:$0xff]  }
  0x76   : > { %842 = vmatmul.mubr.bf16.vlgmr.msra.gmra.mrb[0].mxu0 %v6093_v44  ;;  %5400 = vmatprep.subr.bf16.mxu1 %v6109_v42  ;;  %v6111_v44 = vld [vmem:[#allocation6 + $0x48] sm:$0xff]  }
  0x77   : > { %5716 = vmatpush3.bf16.msra.mxu0 %v6095_v52  ;;  %849 = vmatprep.mubr.bf16.mxu0 %v491_v9  ;;  %v6119_v52 = vld [vmem:[#allocation6 + $0x90] sm:$0xff]  }
  0x78   : > { %5717 = vmatprep.subr.bf16.mxu0 %v6601_v0  ;;  %899 = vmatmul.mubr.bf16.vlgmr.msra.gmra.mrb[0].mxu1 %v509_v63  ;;  %v6130_v63 = vld [vmem:[#allocation6 + $0x38] sm:$0xff]  }
  0x79   : > { %906 = vmatprep.mubr.bf16.mxu1 %v536_v16  ;;  %5401 = vmatpush3.bf16.msra.mxu1 %v6110_v43 }
  0x7a   : > { %5402 = vmatprep.subr.bf16.mxu1 %v6111_v44 }
  0x7b   : > { %5718 = vmatpush3.bf16.msra.mxu0 %v6096_v1  ;;  %v6131_v1 = vld [vmem:[#allocation6 + $0xb0] sm:$0xff]  }
  0x7c   : > { %5719 = vmatprep.subr.bf16.mxu0 %v6601_v0 }
  0x7d   : > { %5403 = vmatpush3.bf16.msra.mxu1 %v6112_v45 }
  0x7e   : > { %850 = vmatmul.mubr.bf16.gmra.mrb[4].mxu0 %v6099_v10  ;;  %5404 = vmatprep.subr.bf16.mxu1 %v6114_v47 }
  0x7f   : > { %5720 = vmatpush3.bf16.msra.mxu0 %v6097_v7  ;;  %857 = vmatprep.mubr.bf16.mxu0 %v499_v22 }
  0x80   : > { %5721 = vmatprep.subr.bf16.mxu0 %v6601_v0  ;;  %907 = vmatmul.mubr.bf16.gmra.mrb[4].mxu1 %v511_v26 }
  0x81   : > { %914 = vmatprep.mubr.bf16.mxu1 %v545_v35  ;;  %5405 = vmatpush3.bf16.msra.mxu1 %v6115_v48 }
  0x83   : > { %5722 = vmatpush3.bf16.msra.mxu0 %v6100_v19 }
  0x84   : > { %5723 = vmatprep.subr.bf16.mxu0 %v6601_v0 }
  0x86   : > { %858 = vmatmul.mubr.bf16.gmra.mrb[8].mxu0 %v6103_v30 }
  0x87   : > { %5724 = vmatpush3.bf16.msra.mxu0 %v6101_v31  ;;  %5731 = vmatprep.mubr.msk.bf16.mxu0 %vm6602_vm3, %v6601_v0 }
  0x88   : > { %5725 = vmatprep.subr.bf16.mxu0 %v6601_v0  ;;  %915 = vmatmul.mubr.bf16.gmra.mrb[8].mxu1 %v513_v37 }
  0x8b   : > { %5726 = vmatpush3.bf16.msra.mxu0 %v6104_v36 }
  0x8c   : > { %5727 = vmatprep.subr.bf16.mxu0 %v6601_v0 }
  0x8f   : > { %5728 = vmatpush3.bf16.msra.mxu0 %v6106_v33 }
  0x90   : > { %5729 = vmatprep.subr.bf16.mxu0 %v6601_v0 }
  0x93   : > { %5730 = vmatpush3.bf16.msra.mxu0 %v6107_v38 }
  0x94   : > { %5743 = vmatprep.subr.bf16.mxu0 %v6601_v0 }
  0x96   : > { %5732 = vmatmul.mubr.bf16.vlgmr.msra.gmra.mrb[12].mxu0 %v555_v39 }
  0x97   : > { %5735 = vmatprep.mubr.msk.bf16.mxu0 %vm6602_vm3, %v6601_v0  ;;  %5744 = vmatpush3.bf16.msra.mxu0 %v6113_v46 }
  0x98   : > { %5745 = vmatprep.subr.bf16.mxu0 %v6839_v50 }
  0x9b   : > { %5746 = vmatpush3.bf16.msra.mxu0 %v6116_v49 }
  0x9c   : > { %5747 = vmatprep.subr.bf16.mxu0 %v6839_v50 }
  0x9e   : > { %5736 = vmatmul.mubr.bf16.gmra.mrb[16].mxu0 %v557_v40 }
  0x9f   : > { %5739 = vmatprep.mubr.msk.bf16.mxu0 %vm6602_vm3, %v6601_v0  ;;  %5748 = vmatpush3.bf16.msra.mxu0 %v6119_v52 }
  0xa0   : > { %5749 = vmatprep.subr.bf16.mxu0 %v6839_v50 }
  0xa3   : > { %5750 = vmatpush3.bf16.msra.mxu0 %v6122_v55 }
  0xa4   : > { %5751 = vmatprep.subr.bf16.mxu0 %v6839_v50 }
  0xa6   : > { %5740 = vmatmul.mubr.bf16.gmra.mrb[20].mxu0 %v559_v41 }
  0xa7   : > { %5759 = vmatprep.mubr.msk.bf16.mxu0 %vm6602_vm3, %v6601_v0  ;;  %v6117_v0 = vld [vmem:[#allocation6 + $0x58] sm:$0xff]   ;;  %5752 = vmatpush3.bf16.msra.mxu0 %v6125_v58 }
  0xa8   : > { %5406 = vmatprep.subr.bf16.mxu1 %v6117_v0  ;;  %5753 = vmatprep.subr.bf16.mxu0 %v6839_v50 }
  0xa9   : > { %5407 = vmatpush3.bf16.msra.mxu1 %v6118_v51 }
  0xaa   : > { %5408 = vmatprep.subr.bf16.mxu1 %v6120_v53 }
  0xab   : > { %5754 = vmatpush3.bf16.msra.mxu0 %v6128_v61 }
  0xac   : > { %5755 = vmatprep.subr.bf16.mxu0 %v6839_v50 }
  0xad   : > { %5409 = vmatpush3.bf16.msra.mxu1 %v6121_v54 }
  0xae   : > { %5410 = vmatprep.subr.bf16.mxu1 %v6123_v56 }
  0xaf   : > { %5756 = vmatpush3.bf16.msra.mxu0 %v6131_v1 }
  0xb0   : > { %5757 = vmatprep.subr.bf16.mxu0 %v6839_v50 }
  0xb1   : > { %5411 = vmatpush3.bf16.msra.mxu1 %v6124_v57 }
  0xb2   : > { %5412 = vmatprep.subr.bf16.mxu1 %v6126_v59 }
  0xb3   : > { %5758 = vmatpush3.bf16.msra.mxu0 %v6132_v2 }
  0xb4   : > { %5771 = vmatprep.subr.bf16.mxu0 %v6839_v50 }
  0xb5   : > { %5413 = vmatpush3.bf16.msra.mxu1 %v6127_v60 }
  0xb6   : > { %5414 = vmatprep.subr.bf16.mxu1 %v6129_v62 }
  0xb9   : > { %5415 = vmatpush3.bf16.msra.mxu1 %v6130_v63 }
  0xba   : > { %5445 = vmatprep.subr.bf16.mxu1 %v6133_v3 }
 0x149   : > { %v5337_v4 = vpop.f32.mrb[0].mxu0 }
 0x14a   : > { %v5338_v6 = vpop.f32.mrb[1].mxu0 }
 0x14b   : > { %v5339_v7 = vadd.f32 %v5338_v6, %v5337_v4  ;;  %v5340_v8 = vpop.f32.mrb[2].mxu0  ;;  %v5371_v11 = vpop.f32.mrb[0].mxu1 }
 0x14c   : > { %v5341_v9 = vpop.f32.mrb[3].mxu0  ;;  %v5372_v13 = vpop.f32.mrb[1].mxu1 }
 0x14d   : > { %v844_v10 = vadd.f32 %v5339_v7, %v4955_v5  ;;  %v5342_v12 = vadd.f32 %v5341_v9, %v5340_v8  ;;  %v5373_v15 = vadd.f32 %v5372_v13, %v5371_v11  ;;  %v5374_v16 = vpop.f32.mrb[2].mxu1 }
 0x14e   : > { %v5375_v17 = vpop.f32.mrb[3].mxu1 }
 0x14f   : > { %v847_v14 = vadd.f32 %v5342_v12, %v4955_v5  ;;  %v5376_v18 = vadd.f32 %v5375_v17, %v5374_v16  ;;  %v901_v20 = vadd.f32 %v5373_v15, %v844_v10 }
 0x151   : > { %v5343_v19 = vpop.f32.mrb[4].mxu0  ;;  %v904_v24 = vadd.f32 %v5376_v18, %v847_v14  ;;  %v6134_v14 = vld [vmem:[#allocation6 + $0xc0] sm:$0xff]  }
 0x152   : > { %v5344_v21 = vpop.f32.mrb[5].mxu0 }
 0x153   : > { %v5345_v22 = vadd.f32 %v5344_v21, %v5343_v19  ;;  %v5346_v23 = vpop.f32.mrb[6].mxu0  ;;  %v5377_v27 = vpop.f32.mrb[4].mxu1  ;;  %v6135_v19 = vld [vmem:[#allocation6 + $0x108] sm:$0xff]  }
 0x154   : > { %v5347_v25 = vpop.f32.mrb[7].mxu0  ;;  %v5378_v29 = vpop.f32.mrb[5].mxu1 }
 0x155   : > { %v852_v26 = vadd.f32 %v5345_v22, %v4955_v5  ;;  %v5348_v28 = vadd.f32 %v5347_v25, %v5346_v23  ;;  %v5379_v31 = vadd.f32 %v5378_v29, %v5377_v27  ;;  %v5380_v32 = vpop.f32.mrb[6].mxu1  ;;  %v6137_v29 = vld [vmem:[#allocation6 + $0x140] sm:$0xff]  }
 0x156   : > { %v5381_v34 = vpop.f32.mrb[7].mxu1 }
 0x157   : > { %v855_v30 = vadd.f32 %v5348_v28, %v4955_v5  ;;  %v5382_v35 = vadd.f32 %v5381_v34, %v5380_v32  ;;  %v909_v37 = vadd.f32 %v5379_v31, %v852_v26 }
 0x159   : > { %v5349_v36 = vpop.f32.mrb[8].mxu0  ;;  %v912_v40 = vadd.f32 %v5382_v35, %v855_v30 }
 0x15a   : > { %v5350_v33 = vpop.f32.mrb[9].mxu0 }
 0x15b   : > { %v5351_v38 = vadd.f32 %v5350_v33, %v5349_v36  ;;  %v5352_v39 = vpop.f32.mrb[10].mxu0  ;;  %v5383_v43 = vpop.f32.mrb[8].mxu1 }
 0x15c   : > { %v5353_v41 = vpop.f32.mrb[11].mxu0  ;;  %v5384_v45 = vpop.f32.mrb[9].mxu1 }
 0x15d   : > { %v860_v42 = vadd.f32 %v5351_v38, %v4955_v5  ;;  %v5354_v44 = vadd.f32 %v5353_v41, %v5352_v39  ;;  %v5385_v47 = vadd.f32 %v5384_v45, %v5383_v43  ;;  %v5386_v48 = vpop.f32.mrb[10].mxu1  ;;  %v6138_v45 = vld [vmem:[#allocation6 + $0x110] sm:$0xff]  }
 0x15e   : > { %v5387_v49 = vpop.f32.mrb[11].mxu1 }
 0x15f   : > { %v863_v46 = vadd.f32 %v5354_v44, %v4955_v5  ;;  %v5388_v0 = vadd.f32 %v5387_v49, %v5386_v48  ;;  %v917_v51 = vadd.f32 %v5385_v47, %v860_v42  ;;  %v6140_v47 = vld [vmem:[#allocation6 + $0x148] sm:$0xff]   ;;  %v6141_v48 = vld [vmem:[#allocation6 + $0x118] sm:$0xff]  }
 0x160   : > { %v6142_v49 = vld [vmem:[#allocation6 + $0xd8] sm:$0xff]  }
 0x161   : > { %v920_v52 = vadd.f32 %v5388_v0, %v863_v46  ;;  %v6139_v46 = vld [vmem:[#allocation6 + $0xd0] sm:$0xff]  }
 0x162   : > { %v6143_v0 = vld [vmem:[#allocation6 + $0x150] sm:$0xff]  }
 0x169   : > { %v957_v53 = vpop.f32.mrb[12].mxu0 }
 0x16a   : > { %v958_v54 = vadd.f32 %v957_v53, %v901_v20  ;;  %v5733_v55 = vpop.f32.mrb[13].mxu0  ;;  %v6146_v53 = vld [vmem:[#allocation6 + $0x158] sm:$0xff]  }
 0x16b   : > { %v960_v56 = vpop.f32.mrb[14].mxu0  ;;  %v6148_v55 = vld [vmem:[#allocation6 + $0xe8] sm:$0xff]  }
 0x16c   : > { %v980_v57 = vmul.f32 0.1, %v958_v54  ;;  %v961_v58 = vadd.f32 %v960_v56, %v904_v24  ;;  %v5734_v59 = vpop.f32.mrb[15].mxu0  ;;  %v6136_v24 = vld [vmem:[#allocation6 + $0xc8] sm:$0xff]   ;;  %v6149_v56 = vld [vmem:[#allocation6 + $0x160] sm:$0xff]  }
 0x16d   : > { %v6152_v59 = vld [vmem:[#allocation6 + $0x168] sm:$0xff]  }
 0x16e   : > { %v6852_v60 = vmax.f32 %v958_v54, %v980_v57  ;;  %v981_v61 = vmul.f32 0.1, %v961_v58  ;;  %v6147_v54 = vld [vmem:[#allocation6 + $0x128] sm:$0xff]   ;;  %v6150_v57 = vld [vmem:[#allocation6 + $0x130] sm:$0xff]  }
 0x170   : > { %992 = vst [vmem:[#allocation2 + $0x1] sm:$0xff] %v6852_v60  ;;  %v6855_v62 = vmax.f32 %v961_v58, %v981_v61  ;;  %v6151_v58 = vld [vmem:[#allocation6 + $0xf0] sm:$0xff]   ;;  %v6153_v61 = vld [vmem:[#allocation6 + $0x138] sm:$0xff]  }
 0x171   : > { %v965_v63 = vpop.f32.mrb[16].mxu0 }
 0x172   : > { %993 = vst [vmem:[#allocation2 + $0x9] sm:$0xff] %v6855_v62  ;;  %v966_v1 = vadd.f32 %v965_v63, %v909_v37  ;;  %v5737_v2 = vpop.f32.mrb[17].mxu0  ;;  %v1062_v3 = vpack.c.bf16 %v6855_v62, %v6852_v60  ;;  %v6154_v63 = vld [vmem:[#allocation6 + $0xf8] sm:$0xff]  }
 0x173   : > { %v968_v4 = vpop.f32.mrb[18].mxu0  ;;  %v6156_v2 = vld [vmem:[#allocation6 + $0x178] sm:$0xff]  }
 0x174   : > { %v982_v5 = vmul.f32 0.1, %v966_v1  ;;  %v969_v6 = vadd.f32 %v968_v4, %v912_v40  ;;  %v5738_v7 = vpop.f32.mrb[19].mxu0  ;;  %1256 = vmatprep.mubr.bf16.mxu1 %v1062_v3  ;;  %v6157_v3 = vld [vmem:[#allocation6 + $0x1c0] sm:$0xff]  }
 0x176   : > { %v6860_v8 = vmax.f32 %v966_v1, %v982_v5  ;;  %v983_v9 = vmul.f32 0.1, %v969_v6  ;;  %v6155_v1 = vld [vmem:[#allocation6 + $0x170] sm:$0xff]  }
 0x177   : > { %v1047_v12 = vld [vmem:[#allocation2] sm:$0xff] }
 0x178   : > { %994 = vst [vmem:[#allocation2 + $0x11] sm:$0xff] %v6860_v8  ;;  %v6863_v10 = vmax.f32 %v969_v6, %v983_v9  ;;  %v4996_v6 = vld [vmem:[%s7188_s4] ss:$0 sm:$0xff] }
 0x179   : > { %v973_v11 = vpop.f32.mrb[20].mxu0  ;;  %v1048_v13 = vld [vmem:[#allocation2 + $0x8] sm:$0xff] }
 0x17a   : > { %995 = vst [vmem:[#allocation2 + $0x19] sm:$0xff] %v6863_v10  ;;  %v974_v15 = vadd.f32 %v973_v11, %v917_v51  ;;  %v5741_v16 = vpop.f32.mrb[21].mxu0  ;;  %v1053_v17 = vpack.c.bf16 %v1048_v13, %v1047_v12  ;;  %v1063_v18 = vpack.c.bf16 %v6863_v10, %v6860_v8  ;;  %v1065_v27 = vld [vmem:[#allocation2 + $0x2] sm:$0xff]  ;;  %v6144_v51 = vld [vmem:[#allocation6 + $0x120] sm:$0xff]  }
 0x17b   : > { %v976_v20 = vpop.f32.mrb[22].mxu0 }
 0x17c   : > { %v984_v21 = vmul.f32 0.1, %v974_v15  ;;  %v977_v22 = vadd.f32 %v976_v20, %v920_v52  ;;  %v5742_v23 = vpop.f32.mrb[23].mxu0  ;;  %1257 = vmatmul.mubr.bf16.vlgmr.msra.gmra.mrb[12].mxu1 %v1053_v17  ;;  %v6145_v52 = vld [vmem:[#allocation6 + $0xe0] sm:$0xff]  }
 0x17d   : > { %1264 = vmatprep.mubr.bf16.mxu1 %v1063_v18  ;;  %5446 = vmatpush3.bf16.msra.mxu1 %v6134_v14 }
 0x17e   : > { %v6868_v25 = vmax.f32 %v974_v15, %v984_v21  ;;  %v985_v26 = vmul.f32 0.1, %v977_v22  ;;  %5447 = vmatprep.subr.bf16.mxu1 %v6135_v19 }
 0x17f   : > { %v1066_v28 = vld [vmem:[#allocation2 + $0xa] sm:$0xff] }
 0x180   : > { %996 = vst [vmem:[#allocation2 + $0x21] sm:$0xff] %v6868_v25  ;;  %v6871_v30 = vmax.f32 %v977_v22, %v985_v26  ;;  %v1071_v31 = vpack.c.bf16 %v1066_v28, %v1065_v27  ;;  %v1049_v32 = vld [vmem:[#allocation2 + $0x10] sm:$0xff] }
 0x181   : > { %v1050_v34 = vld [vmem:[#allocation2 + $0x18] sm:$0xff]  ;;  %5448 = vmatpush3.bf16.msra.mxu1 %v6136_v24 }
 0x182   : > { %997 = vst [vmem:[#allocation2 + $0x29] sm:$0xff] %v6871_v30  ;;  %5760 = vmatmul.mubr.bf16.vlgmr.msra.gmra.mrb[24].mxu0 %v1071_v31  ;;  %v1054_v35 = vpack.c.bf16 %v1050_v34, %v1049_v32  ;;  %v1064_v36 = vpack.c.bf16 %v6871_v30, %v6868_v25  ;;  %v1067_v37 = vld [vmem:[#allocation2 + $0x12] sm:$0xff]  ;;  %5449 = vmatprep.subr.bf16.mxu1 %v6138_v45 }
 0x183   : > { %5763 = vmatprep.mubr.msk.bf16.mxu0 %vm6602_vm3, %v6839_v50  ;;  %5772 = vmatpush3.bf16.msra.mxu0 %v6137_v29 }
 0x184   : > { %1265 = vmatmul.mubr.bf16.gmra.mrb[16].mxu1 %v1054_v35  ;;  %5773 = vmatprep.subr.bf16.mxu0 %v6839_v50 }
 0x185   : > { %1272 = vmatprep.mubr.bf16.mxu1 %v1064_v36  ;;  %5450 = vmatpush3.bf16.msra.mxu1 %v6139_v46 }
 0x186   : > { %5451 = vmatprep.subr.bf16.mxu1 %v6141_v48 }
 0x187   : > { %v1068_v33 = vld [vmem:[#allocation2 + $0x1a] sm:$0xff]  ;;  %5774 = vmatpush3.bf16.msra.mxu0 %v6140_v47 }
 0x188   : > { %v1072_v38 = vpack.c.bf16 %v1068_v33, %v1067_v37  ;;  %v1051_v39 = vld [vmem:[#allocation2 + $0x20] sm:$0xff]  ;;  %5775 = vmatprep.subr.bf16.mxu0 %v6839_v50 }
 0x189   : > { %v1052_v40 = vld [vmem:[#allocation2 + $0x28] sm:$0xff]  ;;  %5452 = vmatpush3.bf16.msra.mxu1 %v6142_v49 }
 0x18a   : > { %5764 = vmatmul.mubr.bf16.gmra.mrb[28].mxu0 %v1072_v38  ;;  %v1055_v41 = vpack.c.bf16 %v1052_v40, %v1051_v39  ;;  %v1069_v42 = vld [vmem:[#allocation2 + $0x22] sm:$0xff]  ;;  %v1070_v43 = vld [vmem:[#allocation2 + $0x2a] sm:$0xff]  ;;  %5453 = vmatprep.subr.bf16.mxu1 %v6144_v51 }
 0x18b   : > { %5767 = vmatprep.mubr.msk.bf16.mxu0 %vm6602_vm3, %v6839_v50  ;;  %v1073_v44 = vpack.c.bf16 %v1070_v43, %v1069_v42  ;;  %5776 = vmatpush3.bf16.msra.mxu0 %v6143_v0 }
 0x18c   : > { %1273 = vmatmul.mubr.bf16.gmra.mrb[20].mxu1 %v1055_v41  ;;  %5777 = vmatprep.subr.bf16.mxu0 %v6839_v50 }
 0x18d   : > { %5454 = vmatpush3.bf16.msra.mxu1 %v6145_v52 }
 0x18e   : > { %5455 = vmatprep.subr.bf16.mxu1 %v6147_v54 }
 0x18f   : > { %5778 = vmatpush3.bf16.msra.mxu0 %v6146_v53 }
 0x190   : > { %5779 = vmatprep.subr.bf16.mxu0 %v6839_v50 }
 0x191   : > { %5456 = vmatpush3.bf16.msra.mxu1 %v6148_v55 }
 0x192   : > { %5768 = vmatmul.mubr.bf16.gmra.mrb[32].mxu0 %v1073_v44  ;;  %5457 = vmatprep.subr.bf16.mxu1 %v6150_v57  ;;  %v6158_v57 = vld [vmem:[#allocation6 + $0x180] sm:$0xff]  }
 0x193   : > { %5787 = vmatprep.mubr.msk.bf16.mxu0 %vm6602_vm3, %v6839_v50  ;;  %5780 = vmatpush3.bf16.msra.mxu0 %v6149_v56 }
 0x194   : > { %5781 = vmatprep.subr.bf16.mxu0 %v6839_v50 }
 0x195   : > { %5458 = vmatpush3.bf16.msra.mxu1 %v6151_v58 }
 0x196   : > { %5459 = vmatprep.subr.bf16.mxu1 %v6153_v61 }
 0x197   : > { %5782 = vmatpush3.bf16.msra.mxu0 %v6152_v59 }
 0x198   : > { %5783 = vmatprep.subr.bf16.mxu0 %v6839_v50 }
 0x199   : > { %5460 = vmatpush3.bf16.msra.mxu1 %v6154_v63 }
 0x19a   : > { %5490 = vmatprep.subr.bf16.mxu1 %v6157_v3 }
 0x19b   : > { %5784 = vmatpush3.bf16.msra.mxu0 %v6155_v1  ;;  %v6159_v1 = vld [vmem:[#allocation6 + $0x1c8] sm:$0xff]  }
 0x19c   : > { %5785 = vmatprep.subr.bf16.mxu0 %v6839_v50 }
 0x19f   : > { %5786 = vmatpush3.bf16.msra.mxu0 %v6156_v2 }
 0x1a0   : > { %5799 = vmatprep.subr.bf16.mxu0 %v6839_v50 }
 0x24f   : > { %v5416_v4 = vpop.f32.mrb[12].mxu1 }
 0x250   : > { %v5417_v5 = vpop.f32.mrb[13].mxu1 }
 0x251   : > { %v5418_v7 = vadd.f32 %v5417_v5, %v5416_v4  ;;  %v5419_v9 = vpop.f32.mrb[14].mxu1 }
 0x252   : > { %v5420_v11 = vpop.f32.mrb[15].mxu1 }
 0x253   : > { %v5421_v12 = vadd.f32 %v5420_v11, %v5419_v9  ;;  %v1259_v13 = vadd.f32 %v5418_v7, %v4996_v6 }
 0x255   : > { %v1315_v14 = vpop.f32.mrb[24].mxu0  ;;  %v1262_v15 = vadd.f32 %v5421_v12, %v4996_v6 }
 0x256   : > { %v1316_v16 = vadd.f32 %v1315_v14, %v1259_v13  ;;  %v5761_v17 = vpop.f32.mrb[25].mxu0 }
 0x257   : > { %v1318_v18 = vpop.f32.mrb[26].mxu0  ;;  %v5422_v19 = vpop.f32.mrb[16].mxu1 }
 0x258   : > { %v1338_v20 = vmul.f32 0.1, %v1316_v16  ;;  %v1319_v21 = vadd.f32 %v1318_v18, %v1262_v15  ;;  %v5762_v22 = vpop.f32.mrb[27].mxu0  ;;  %v5423_v23 = vpop.f32.mrb[17].mxu1 }
 0x259   : > { %v5424_v24 = vadd.f32 %v5423_v23, %v5422_v19  ;;  %v5425_v26 = vpop.f32.mrb[18].mxu1 }
 0x25a   : > { %v1344_v27 = vmax.f32 %v1316_v16, %v1338_v20  ;;  %v1339_v28 = vmul.f32 0.1, %v1319_v21  ;;  %v5426_v29 = vpop.f32.mrb[19].mxu1 }
 0x25b   : > { %v5427_v31 = vadd.f32 %v5426_v29, %v5425_v26  ;;  %v1267_v32 = vadd.f32 %v5424_v24, %v4996_v6  ;;  %v6161_v29 = vld [vmem:[#allocation6 + $0x200] sm:$0xff]  }
 0x25c   : > { %1350 = vst [vmem:[#allocation3 + $0x1] sm:$0xff] %v1344_v27  ;;  %v1345_v34 = vmax.f32 %v1319_v21, %v1339_v28  ;;  %v6160_v28 = vld [vmem:[#allocation6 + $0x188] sm:$0xff]  }
 0x25d   : > { %v1323_v35 = vpop.f32.mrb[28].mxu0  ;;  %v1270_v36 = vadd.f32 %v5427_v31, %v4996_v6  ;;  %v6162_v31 = vld [vmem:[#allocation6 + $0x1d0] sm:$0xff]  }
 0x25e   : > { %1351 = vst [vmem:[#allocation3 + $0x9] sm:$0xff] %v1345_v34  ;;  %v1324_v37 = vadd.f32 %v1323_v35, %v1267_v32  ;;  %v5765_v33 = vpop.f32.mrb[29].mxu0  ;;  %v1422_v38 = vpack.c.bf16 %v1345_v34, %v1344_v27  ;;  %v6163_v32 = vld [vmem:[#allocation6 + $0x190] sm:$0xff]   ;;  %v6164_v34 = vld [vmem:[#allocation6 + $0x208] sm:$0xff]   ;;  %v6165_v35 = vld [vmem:[#allocation6 + $0x1d8] sm:$0xff]  }
 0x25f   : > { %v1326_v39 = vpop.f32.mrb[30].mxu0  ;;  %v5428_v40 = vpop.f32.mrb[20].mxu1  ;;  %v6168_v33 = vld [vmem:[#allocation6 + $0x1e0] sm:$0xff]  }
 0x260   : > { %v1340_v41 = vmul.f32 0.1, %v1324_v37  ;;  %v1327_v42 = vadd.f32 %v1326_v39, %v1270_v36  ;;  %v5766_v43 = vpop.f32.mrb[31].mxu0  ;;  %v5429_v44 = vpop.f32.mrb[21].mxu1  ;;  %1616 = vmatprep.mubr.bf16.mxu1 %v1422_v38  ;;  %v6166_v36 = vld [vmem:[#allocation6 + $0x198] sm:$0xff]   ;;  %v6169_v38 = vld [vmem:[#allocation6 + $0x1a0] sm:$0xff]  }
 0x261   : > { %v5430_v45 = vadd.f32 %v5429_v44, %v5428_v40  ;;  %v5431_v46 = vpop.f32.mrb[22].mxu1  ;;  %v6170_v39 = vld [vmem:[#allocation6 + $0x218] sm:$0xff]   ;;  %v6171_v40 = vld [vmem:[#allocation6 + $0x1e8] sm:$0xff]   ;;  %v6174_v43 = vld [vmem:[#allocation6 + $0x1f0] sm:$0xff]  }
 0x262   : > { %v1346_v47 = vmax.f32 %v1324_v37, %v1340_v41  ;;  %v1341_v48 = vmul.f32 0.1, %v1327_v42  ;;  %v5432_v49 = vpop.f32.mrb[23].mxu1  ;;  %v6167_v37 = vld [vmem:[#allocation6 + $0x210] sm:$0xff]   ;;  %v6172_v41 = vld [vmem:[#allocation6 + $0x1a8] sm:$0xff]  }
 0x263   : > { %v5433_v0 = vadd.f32 %v5432_v49, %v5431_v46  ;;  %v1275_v51 = vadd.f32 %v5430_v45, %v4996_v6  ;;  %v1407_v55 = vld [vmem:[#allocation3] sm:$0xff]  ;;  %v6175_v44 = vld [vmem:[#allocation6 + $0x1b0] sm:$0xff]   ;;  %v6177_v46 = vld [vmem:[#allocation6 + $0x1f8] sm:$0xff]  }
 0x264   : > { %1352 = vst [vmem:[#allocation3 + $0x11] sm:$0xff] %v1346_v47  ;;  %v1347_v52 = vmax.f32 %v1327_v42, %v1341_v48  ;;  %v6173_v42 = vld [vmem:[#allocation6 + $0x220] sm:$0xff]   ;;  %v6176_v45 = vld [vmem:[#allocation6 + $0x228] sm:$0xff]   ;;  %v6179_v48 = vld [vmem:[#allocation6 + $0x230] sm:$0xff]  }
 0x265   : > { %v1331_v53 = vpop.f32.mrb[32].mxu0  ;;  %v1278_v54 = vadd.f32 %v5433_v0, %v4996_v6  ;;  %v1408_v56 = vld [vmem:[#allocation3 + $0x8] sm:$0xff]  ;;  %v6180_v49 = vld [vmem:[#allocation6 + $0x238] sm:$0xff]   ;;  %v6181_v0 = vld [vmem:[#allocation6 + $0x280] sm:$0xff]  }
 0x266   : > { %1353 = vst [vmem:[#allocation3 + $0x19] sm:$0xff] %v1347_v52  ;;  %v1332_v58 = vadd.f32 %v1331_v53, %v1275_v51  ;;  %v5769_v59 = vpop.f32.mrb[33].mxu0  ;;  %v1413_v61 = vpack.c.bf16 %v1408_v56, %v1407_v55  ;;  %v1423_v63 = vpack.c.bf16 %v1347_v52, %v1346_v47  ;;  %v1425_v6 = vld [vmem:[#allocation3 + $0x2] sm:$0xff]  ;;  %v6178_v47 = vld [vmem:[#allocation6 + $0x1b8] sm:$0xff]  }
 0x267   : > { %v1334_v2 = vpop.f32.mrb[34].mxu0  ;;  %v5022_v53 = vld [vmem:[%s7188_s4 + $0x1] ss:$0 sm:$0xff] }
 0x268   : > { %v1342_v3 = vmul.f32 0.1, %v1332_v58  ;;  %v1335_v4 = vadd.f32 %v1334_v2, %v1278_v54  ;;  %v5770_v5 = vpop.f32.mrb[35].mxu0  ;;  %1617 = vmatmul.mubr.bf16.vlgmr.msra.gmra.mrb[24].mxu1 %v1413_v61 }
 0x269   : > { %1624 = vmatprep.mubr.bf16.mxu1 %v1423_v63  ;;  %5491 = vmatpush3.bf16.msra.mxu1 %v6158_v57 }
 0x26a   : > { %v1348_v7 = vmax.f32 %v1332_v58, %v1342_v3  ;;  %v1343_v9 = vmul.f32 0.1, %v1335_v4  ;;  %5492 = vmatprep.subr.bf16.mxu1 %v6159_v1 }
 0x26b   : > { %v1426_v11 = vld [vmem:[#allocation3 + $0xa] sm:$0xff] }
 0x26c   : > { %1354 = vst [vmem:[#allocation3 + $0x21] sm:$0xff] %v1348_v7  ;;  %v1349_v12 = vmax.f32 %v1335_v4, %v1343_v9  ;;  %v1431_v13 = vpack.c.bf16 %v1426_v11, %v1425_v6  ;;  %v1409_v14 = vld [vmem:[#allocation3 + $0x10] sm:$0xff] }
 0x26d   : > { %v1410_v15 = vld [vmem:[#allocation3 + $0x18] sm:$0xff]  ;;  %5493 = vmatpush3.bf16.msra.mxu1 %v6160_v28 }
 0x26e   : > { %1355 = vst [vmem:[#allocation3 + $0x29] sm:$0xff] %v1349_v12  ;;  %5788 = vmatmul.mubr.bf16.vlgmr.msra.gmra.mrb[36].mxu0 %v1431_v13  ;;  %v1414_v16 = vpack.c.bf16 %v1410_v15, %v1409_v14  ;;  %v1424_v17 = vpack.c.bf16 %v1349_v12, %v1348_v7  ;;  %v1427_v18 = vld [vmem:[#allocation3 + $0x12] sm:$0xff]  ;;  %5494 = vmatprep.subr.bf16.mxu1 %v6162_v31 }
 0x26f   : > { %5791 = vmatprep.mubr.msk.bf16.mxu0 %vm6602_vm3, %v6839_v50  ;;  %5800 = vmatpush3.bf16.msra.mxu0 %v6161_v29 }
 0x270   : > { %1625 = vmatmul.mubr.bf16.gmra.mrb[28].mxu1 %v1414_v16  ;;  %5801 = vmatprep.subr.bf16.mxu0 %v6839_v50 }
 0x271   : > { %1632 = vmatprep.mubr.bf16.mxu1 %v1424_v17  ;;  %5495 = vmatpush3.bf16.msra.mxu1 %v6163_v32 }
 0x272   : > { %5496 = vmatprep.subr.bf16.mxu1 %v6165_v35 }
 0x273   : > { %v1428_v19 = vld [vmem:[#allocation3 + $0x1a] sm:$0xff]  ;;  %5802 = vmatpush3.bf16.msra.mxu0 %v6164_v34 }
 0x274   : > { %v1432_v20 = vpack.c.bf16 %v1428_v19, %v1427_v18  ;;  %v1411_v21 = vld [vmem:[#allocation3 + $0x20] sm:$0xff]  ;;  %5803 = vmatprep.subr.bf16.mxu0 %v6839_v50 }
 0x275   : > { %v1412_v22 = vld [vmem:[#allocation3 + $0x28] sm:$0xff]  ;;  %5497 = vmatpush3.bf16.msra.mxu1 %v6166_v36 }
 0x276   : > { %5792 = vmatmul.mubr.bf16.gmra.mrb[40].mxu0 %v1432_v20  ;;  %v1415_v23 = vpack.c.bf16 %v1412_v22, %v1411_v21  ;;  %v1429_v24 = vld [vmem:[#allocation3 + $0x22] sm:$0xff]  ;;  %v1430_v26 = vld [vmem:[#allocation3 + $0x2a] sm:$0xff]  ;;  %5498 = vmatprep.subr.bf16.mxu1 %v6168_v33 }
 0x277   : > { %5795 = vmatprep.mubr.msk.bf16.mxu0 %vm6602_vm3, %v6839_v50  ;;  %v1433_v27 = vpack.c.bf16 %v1430_v26, %v1429_v24  ;;  %5804 = vmatpush3.bf16.msra.mxu0 %v6167_v37 }
 0x278   : > { %1633 = vmatmul.mubr.bf16.gmra.mrb[32].mxu1 %v1415_v23  ;;  %5805 = vmatprep.subr.bf16.mxu0 %v6839_v50 }
 0x279   : > { %5499 = vmatpush3.bf16.msra.mxu1 %v6169_v38 }
 0x27a   : > { %5500 = vmatprep.subr.bf16.mxu1 %v6171_v40 }
 0x27b   : > { %5806 = vmatpush3.bf16.msra.mxu0 %v6170_v39 }
 0x27c   : > { %5807 = vmatprep.subr.bf16.mxu0 %v6839_v50 }
 0x27d   : > { %5501 = vmatpush3.bf16.msra.mxu1 %v6172_v41 }
 0x27e   : > { %5796 = vmatmul.mubr.bf16.gmra.mrb[44].mxu0 %v1433_v27  ;;  %5502 = vmatprep.subr.bf16.mxu1 %v6174_v43 }
 0x27f   : > { %5815 = vmatprep.mubr.msk.bf16.mxu0 %vm6602_vm3, %v6839_v50  ;;  %5808 = vmatpush3.bf16.msra.mxu0 %v6173_v42 }
 0x280   : > { %5809 = vmatprep.subr.bf16.mxu0 %v6839_v50 }
 0x281   : > { %5503 = vmatpush3.bf16.msra.mxu1 %v6175_v44 }
 0x282   : > { %5504 = vmatprep.subr.bf16.mxu1 %v6177_v46 }
 0x283   : > { %5810 = vmatpush3.bf16.msra.mxu0 %v6176_v45 }
 0x284   : > { %5811 = vmatprep.subr.bf16.mxu0 %v6839_v50 }
 0x285   : > { %5505 = vmatpush3.bf16.msra.mxu1 %v6178_v47 }
 0x286   : > { %5535 = vmatprep.subr.bf16.mxu1 %v6181_v0 }
 0x287   : > { %5812 = vmatpush3.bf16.msra.mxu0 %v6179_v48  ;;  %v6182_v48 = vld [vmem:[#allocation6 + $0x240] sm:$0xff]  }
 0x288   : > { %5813 = vmatprep.subr.bf16.mxu0 %v6839_v50 }
 0x28b   : > { %5814 = vmatpush3.bf16.msra.mxu0 %v6180_v49 }
 0x28c   : > { %5827 = vmatprep.subr.bf16.mxu0 %v6839_v50 }
 0x33b   : > { %v5461_v51 = vpop.f32.mrb[24].mxu1 }
 0x33c   : > { %v5462_v52 = vpop.f32.mrb[25].mxu1 }
 0x33d   : > { %v5463_v54 = vadd.f32 %v5462_v52, %v5461_v51  ;;  %v5464_v55 = vpop.f32.mrb[26].mxu1 }
 0x33e   : > { %v5465_v56 = vpop.f32.mrb[27].mxu1 }
 0x33f   : > { %v5466_v57 = vadd.f32 %v5465_v56, %v5464_v55  ;;  %v1619_v58 = vadd.f32 %v5463_v54, %v5022_v53 }
 0x341   : > { %v1675_v59 = vpop.f32.mrb[36].mxu0  ;;  %v1622_v61 = vadd.f32 %v5466_v57, %v5022_v53 }
 0x342   : > { %v1676_v63 = vadd.f32 %v1675_v59, %v1619_v58  ;;  %v5789_v1 = vpop.f32.mrb[37].mxu0 }
 0x343   : > { %v1678_v2 = vpop.f32.mrb[38].mxu0  ;;  %v5467_v3 = vpop.f32.mrb[28].mxu1 }
 0x344   : > { %v1704_v4 = vmul.f32 0.1, %v1676_v63  ;;  %v1679_v5 = vadd.f32 %v1678_v2, %v1622_v61  ;;  %v5790_v7 = vpop.f32.mrb[39].mxu0  ;;  %v5468_v9 = vpop.f32.mrb[29].mxu1  ;;  %v6185_v61 = vld [vmem:[#allocation6 + $0x2c0] sm:$0xff]  }
 0x345   : > { %v5469_v6 = vadd.f32 %v5468_v9, %v5467_v3  ;;  %v5470_v11 = vpop.f32.mrb[30].mxu1 }
 0x346   : > { %v1710_v12 = vmax.f32 %v1676_v63, %v1704_v4  ;;  %v1705_v13 = vmul.f32 0.1, %v1679_v5  ;;  %v5471_v14 = vpop.f32.mrb[31].mxu1 }
 0x347   : > { %v5472_v15 = vadd.f32 %v5471_v14, %v5470_v11  ;;  %v1627_v16 = vadd.f32 %v5469_v6, %v5022_v53 }
 0x348   : > { %v6911_v17 = vadd.f32 %v1710_v12, %v6852_v60  ;;  %v1711_v18 = vmax.f32 %v1679_v5, %v1705_v13 }
 0x349   : > { %v1683_v19 = vpop.f32.mrb[40].mxu0  ;;  %v1630_v20 = vadd.f32 %v5472_v15, %v5022_v53  ;;  %v6186_v15 = vld [vmem:[#allocation6 + $0x290] sm:$0xff]  }
 0x34a   : > { %1722 = vst [vmem:[#allocation2 + $0x1] sm:$0xff] %v6911_v17  ;;  %v6915_v21 = vadd.f32 %v1711_v18, %v6855_v62  ;;  %v1684_v22 = vadd.f32 %v1683_v19, %v1627_v16  ;;  %v5793_v23 = vpop.f32.mrb[41].mxu0  ;;  %v6187_v16 = vld [vmem:[#allocation6 + $0x250] sm:$0xff]   ;;  %v6188_v18 = vld [vmem:[#allocation6 + $0x2c8] sm:$0xff]   ;;  %v6189_v19 = vld [vmem:[#allocation6 + $0x298] sm:$0xff]  }
 0x34b   : > { %v1686_v24 = vpop.f32.mrb[42].mxu0  ;;  %v5473_v26 = vpop.f32.mrb[32].mxu1  ;;  %v6192_v23 = vld [vmem:[#allocation6 + $0x2a0] sm:$0xff]  }
 0x34c   : > { %1723 = vst [vmem:[#allocation2 + $0x9] sm:$0xff] %v6915_v21  ;;  %v1706_v27 = vmul.f32 0.1, %v1684_v22  ;;  %v1687_v28 = vadd.f32 %v1686_v24, %v1630_v20  ;;  %v5794_v29 = vpop.f32.mrb[43].mxu0  ;;  %v5474_v31 = vpop.f32.mrb[33].mxu1  ;;  %v1794_v60 = vpack.c.bf16 %v6915_v21, %v6911_v17  ;;  %v6190_v20 = vld [vmem:[#allocation6 + $0x258] sm:$0xff]  }
 0x34d   : > { %v5475_v32 = vadd.f32 %v5474_v31, %v5473_v26  ;;  %v5476_v34 = vpop.f32.mrb[34].mxu1  ;;  %v6193_v24 = vld [vmem:[#allocation6 + $0x260] sm:$0xff]   ;;  %v6194_v26 = vld [vmem:[#allocation6 + $0x2d8] sm:$0xff]   ;;  %v6198_v31 = vld [vmem:[#allocation6 + $0x2b0] sm:$0xff]  }
 0x34e   : > { %v1712_v35 = vmax.f32 %v1684_v22, %v1706_v27  ;;  %v1707_v36 = vmul.f32 0.1, %v1687_v28  ;;  %v5477_v37 = vpop.f32.mrb[35].mxu1  ;;  %1988 = vmatprep.mubr.bf16.mxu1 %v1794_v60  ;;  %v6191_v22 = vld [vmem:[#allocation6 + $0x2d0] sm:$0xff]   ;;  %v6195_v27 = vld [vmem:[#allocation6 + $0x2a8] sm:$0xff]   ;;  %v6197_v29 = vld [vmem:[#allocation6 + $0x2e0] sm:$0xff]  }
 0x34f   : > { %v5478_v62 = vadd.f32 %v5477_v37, %v5476_v34  ;;  %v1635_v33 = vadd.f32 %v5475_v32, %v5022_v53  ;;  %v6199_v60 = vld [vmem:[#allocation6 + $0x270] sm:$0xff]   ;;  %v6200_v32 = vld [vmem:[#allocation6 + $0x2e8] sm:$0xff]   ;;  %v6201_v34 = vld [vmem:[#allocation6 + $0x2b8] sm:$0xff]  }
 0x350   : > { %v6921_v38 = vadd.f32 %v1712_v35, %v6860_v8  ;;  %v1713_v39 = vmax.f32 %v1687_v28, %v1707_v36  ;;  %v6196_v28 = vld [vmem:[#allocation6 + $0x268] sm:$0xff]   ;;  %v6202_v35 = vld [vmem:[#allocation6 + $0x278] sm:$0xff]   ;;  %v6203_v36 = vld [vmem:[#allocation6 + $0x2f0] sm:$0xff]  }
 0x351   : > { %v1691_v40 = vpop.f32.mrb[44].mxu0  ;;  %v1638_v41 = vadd.f32 %v5478_v62, %v5022_v53  ;;  %v1779_v46 = vld [vmem:[#allocation2] sm:$0xff]  ;;  %v6183_v53 = vld [vmem:[#allocation6 + $0x288] sm:$0xff]   ;;  %v6204_v37 = vld [vmem:[#allocation6 + $0x2f8] sm:$0xff]  }
 0x352   : > { %1724 = vst [vmem:[#allocation2 + $0x11] sm:$0xff] %v6921_v38  ;;  %v6925_v42 = vadd.f32 %v1713_v39, %v6863_v10  ;;  %v1692_v43 = vadd.f32 %v1691_v40, %v1635_v33  ;;  %v5797_v44 = vpop.f32.mrb[45].mxu0  ;;  %v6184_v10 = vld [vmem:[#allocation6 + $0x248] sm:$0xff]   ;;  %v6205_v62 = vld [vmem:[#allocation6 + $0x340] sm:$0xff]   ;;  %v5048_v40 = vld [vmem:[%s7188_s4 + $0x2] ss:$0 sm:$0xff] }
 0x353   : > { %v1694_v45 = vpop.f32.mrb[46].mxu0  ;;  %v1780_v47 = vld [vmem:[#allocation2 + $0x8] sm:$0xff] }
 0x354   : > { %1725 = vst [vmem:[#allocation2 + $0x19] sm:$0xff] %v6925_v42  ;;  %v1708_v49 = vmul.f32 0.1, %v1692_v43  ;;  %v1695_v0 = vadd.f32 %v1694_v45, %v1638_v41  ;;  %v5798_v8 = vpop.f32.mrb[47].mxu0  ;;  %v1785_v51 = vpack.c.bf16 %v1780_v47, %v1779_v46  ;;  %v1795_v52 = vpack.c.bf16 %v6925_v42, %v6921_v38  ;;  %v1797_v58 = vld [vmem:[#allocation2 + $0x2] sm:$0xff] }
 0x356   : > { %v1714_v54 = vmax.f32 %v1692_v43, %v1708_v49  ;;  %v1709_v55 = vmul.f32 0.1, %v1695_v0  ;;  %1989 = vmatmul.mubr.bf16.vlgmr.msra.gmra.mrb[36].mxu1 %v1785_v51 }
 0x357   : > { %1996 = vmatprep.mubr.bf16.mxu1 %v1795_v52  ;;  %5536 = vmatpush3.bf16.msra.mxu1 %v6182_v48 }
 0x358   : > { %v6931_v56 = vadd.f32 %v1714_v54, %v6868_v25  ;;  %v1715_v57 = vmax.f32 %v1695_v0, %v1709_v55  ;;  %5537 = vmatprep.subr.bf16.mxu1 %v6183_v53 }
 0x359   : > { %v1798_v59 = vld [vmem:[#allocation2 + $0xa] sm:$0xff] }
 0x35a   : > { %1726 = vst [vmem:[#allocation2 + $0x21] sm:$0xff] %v6931_v56  ;;  %v6935_v63 = vadd.f32 %v1715_v57, %v6871_v30  ;;  %v1803_v1 = vpack.c.bf16 %v1798_v59, %v1797_v58  ;;  %v1781_v2 = vld [vmem:[#allocation2 + $0x10] sm:$0xff] }
 0x35b   : > { %v1782_v3 = vld [vmem:[#allocation2 + $0x18] sm:$0xff]  ;;  %5538 = vmatpush3.bf16.msra.mxu1 %v6184_v10 }
 0x35c   : > { %1727 = vst [vmem:[#allocation2 + $0x29] sm:$0xff] %v6935_v63  ;;  %5816 = vmatmul.mubr.bf16.vlgmr.msra.gmra.mrb[48].mxu0 %v1803_v1  ;;  %v1786_v4 = vpack.c.bf16 %v1782_v3, %v1781_v2  ;;  %v1796_v25 = vpack.c.bf16 %v6935_v63, %v6931_v56  ;;  %v1799_v30 = vld [vmem:[#allocation2 + $0x12] sm:$0xff]  ;;  %5539 = vmatprep.subr.bf16.mxu1 %v6186_v15 }
 0x35d   : > { %5819 = vmatprep.mubr.msk.bf16.mxu0 %vm6602_vm3, %v6839_v50  ;;  %5828 = vmatpush3.bf16.msra.mxu0 %v6185_v61 }
 0x35e   : > { %1997 = vmatmul.mubr.bf16.gmra.mrb[40].mxu1 %v1786_v4  ;;  %5829 = vmatprep.subr.bf16.mxu0 %v6839_v50 }
 0x35f   : > { %2004 = vmatprep.mubr.bf16.mxu1 %v1796_v25  ;;  %5540 = vmatpush3.bf16.msra.mxu1 %v6187_v16 }
 0x360   : > { %5541 = vmatprep.subr.bf16.mxu1 %v6189_v19 }
 0x361   : > { %v1800_v5 = vld [vmem:[#allocation2 + $0x1a] sm:$0xff]  ;;  %5830 = vmatpush3.bf16.msra.mxu0 %v6188_v18 }
 0x362   : > { %v1804_v7 = vpack.c.bf16 %v1800_v5, %v1799_v30  ;;  %v1783_v9 = vld [vmem:[#allocation2 + $0x20] sm:$0xff]  ;;  %5831 = vmatprep.subr.bf16.mxu0 %v6839_v50 }
 0x363   : > { %v1784_v6 = vld [vmem:[#allocation2 + $0x28] sm:$0xff]  ;;  %5542 = vmatpush3.bf16.msra.mxu1 %v6190_v20 }
 0x364   : > { %5820 = vmatmul.mubr.bf16.gmra.mrb[52].mxu0 %v1804_v7  ;;  %v1787_v11 = vpack.c.bf16 %v1784_v6, %v1783_v9  ;;  %v1801_v12 = vld [vmem:[#allocation2 + $0x22] sm:$0xff]  ;;  %v1802_v13 = vld [vmem:[#allocation2 + $0x2a] sm:$0xff]  ;;  %5543 = vmatprep.subr.bf16.mxu1 %v6192_v23 }
 0x365   : > { %5823 = vmatprep.mubr.msk.bf16.mxu0 %vm6602_vm3, %v6839_v50  ;;  %v1805_v14 = vpack.c.bf16 %v1802_v13, %v1801_v12  ;;  %5832 = vmatpush3.bf16.msra.mxu0 %v6191_v22 }
 0x366   : > { %2005 = vmatmul.mubr.bf16.gmra.mrb[44].mxu1 %v1787_v11  ;;  %5833 = vmatprep.subr.bf16.mxu0 %v6839_v50 }
 0x367   : > { %5544 = vmatpush3.bf16.msra.mxu1 %v6193_v24 }
 0x368   : > { %5545 = vmatprep.subr.bf16.mxu1 %v6195_v27 }
 0x369   : > { %5834 = vmatpush3.bf16.msra.mxu0 %v6194_v26 }
 0x36a   : > { %5835 = vmatprep.subr.bf16.mxu0 %v6839_v50 }
 0x36b   : > { %5546 = vmatpush3.bf16.msra.mxu1 %v6196_v28 }
 0x36c   : > { %5824 = vmatmul.mubr.bf16.gmra.mrb[56].mxu0 %v1805_v14  ;;  %5547 = vmatprep.subr.bf16.mxu1 %v6198_v31  ;;  %v6206_v31 = vld [vmem:[#allocation6 + $0x300] sm:$0xff]  }
 0x36d   : > { %5843 = vmatprep.mubr.msk.bf16.mxu0 %vm6602_vm3, %v6839_v50  ;;  %5836 = vmatpush3.bf16.msra.mxu0 %v6197_v29 }
 0x36e   : > { %5837 = vmatprep.subr.bf16.mxu0 %v6839_v50 }
 0x36f   : > { %5548 = vmatpush3.bf16.msra.mxu1 %v6199_v60 }
 0x370   : > { %5549 = vmatprep.subr.bf16.mxu1 %v6201_v34 }
 0x371   : > { %5838 = vmatpush3.bf16.msra.mxu0 %v6200_v32 }
 0x372   : > { %5839 = vmatprep.subr.bf16.mxu0 %v6839_v50 }
 0x373   : > { %5550 = vmatpush3.bf16.msra.mxu1 %v6202_v35 }
 0x374   : > { %5580 = vmatprep.subr.bf16.mxu1 %v6205_v62 }
 0x375   : > { %5840 = vmatpush3.bf16.msra.mxu0 %v6203_v36  ;;  %v6207_v36 = vld [vmem:[#allocation6 + $0x348] sm:$0xff]  }
 0x376   : > { %5841 = vmatprep.subr.bf16.mxu0 %v6839_v50 }
 0x379   : > { %5842 = vmatpush3.bf16.msra.mxu0 %v6204_v37 }
 0x37a   : > { %5855 = vmatprep.subr.bf16.mxu0 %v6839_v50 }
 0x429   : > { %v5506_v33 = vpop.f32.mrb[36].mxu1 }
 0x42a   : > { %v5507_v39 = vpop.f32.mrb[37].mxu1 }
 0x42b   : > { %v5508_v41 = vadd.f32 %v5507_v39, %v5506_v33  ;;  %v5509_v43 = vpop.f32.mrb[38].mxu1 }
 0x42c   : > { %v5510_v44 = vpop.f32.mrb[39].mxu1 }
 0x42d   : > { %v5511_v45 = vadd.f32 %v5510_v44, %v5509_v43  ;;  %v1991_v46 = vadd.f32 %v5508_v41, %v5048_v40 }
 0x42f   : > { %v2047_v47 = vpop.f32.mrb[48].mxu0  ;;  %v1994_v48 = vadd.f32 %v5511_v45, %v5048_v40 }
 0x430   : > { %v2048_v49 = vadd.f32 %v2047_v47, %v1991_v46  ;;  %v5817_v0 = vpop.f32.mrb[49].mxu0 }
 0x431   : > { %v2050_v8 = vpop.f32.mrb[50].mxu0  ;;  %v5512_v51 = vpop.f32.mrb[40].mxu1 }
 0x432   : > { %v2070_v52 = vmul.f32 0.1, %v2048_v49  ;;  %v2051_v53 = vadd.f32 %v2050_v8, %v1994_v48  ;;  %v5818_v54 = vpop.f32.mrb[51].mxu0  ;;  %v5513_v55 = vpop.f32.mrb[41].mxu1 }
 0x433   : > { %v5514_v10 = vadd.f32 %v5513_v55, %v5512_v51  ;;  %v5515_v57 = vpop.f32.mrb[42].mxu1 }
 0x434   : > { %v2076_v58 = vmax.f32 %v2048_v49, %v2070_v52  ;;  %v2071_v59 = vmul.f32 0.1, %v2051_v53  ;;  %v5516_v61 = vpop.f32.mrb[43].mxu1 }
 0x435   : > { %v5517_v1 = vadd.f32 %v5516_v61, %v5515_v57  ;;  %v1999_v2 = vadd.f32 %v5514_v10, %v5048_v40  ;;  %v6209_v61 = vld [vmem:[#allocation6 + $0x380] sm:$0xff]  }
 0x436   : > { %2082 = vst [vmem:[#allocation3 + $0x1] sm:$0xff] %v2076_v58  ;;  %v2077_v3 = vmax.f32 %v2051_v53, %v2071_v59  ;;  %v6208_v59 = vld [vmem:[#allocation6 + $0x308] sm:$0xff]  }
 0x437   : > { %v2055_v4 = vpop.f32.mrb[52].mxu0  ;;  %v2002_v25 = vadd.f32 %v5517_v1, %v5048_v40  ;;  %v6210_v1 = vld [vmem:[#allocation6 + $0x350] sm:$0xff]  }
 0x438   : > { %2083 = vst [vmem:[#allocation3 + $0x9] sm:$0xff] %v2077_v3  ;;  %v2056_v30 = vadd.f32 %v2055_v4, %v1999_v2  ;;  %v5821_v5 = vpop.f32.mrb[53].mxu0  ;;  %v2154_v7 = vpack.c.bf16 %v2077_v3, %v2076_v58  ;;  %v6211_v2 = vld [vmem:[#allocation6 + $0x310] sm:$0xff]   ;;  %v6212_v3 = vld [vmem:[#allocation6 + $0x388] sm:$0xff]   ;;  %v6213_v4 = vld [vmem:[#allocation6 + $0x358] sm:$0xff]  }
 0x439   : > { %v2058_v9 = vpop.f32.mrb[54].mxu0  ;;  %v5518_v6 = vpop.f32.mrb[44].mxu1  ;;  %v6216_v5 = vld [vmem:[#allocation6 + $0x360] sm:$0xff]  }
 0x43a   : > { %v2072_v11 = vmul.f32 0.1, %v2056_v30  ;;  %v2059_v12 = vadd.f32 %v2058_v9, %v2002_v25  ;;  %v5822_v13 = vpop.f32.mrb[55].mxu0  ;;  %v5519_v14 = vpop.f32.mrb[45].mxu1  ;;  %2348 = vmatprep.mubr.bf16.mxu1 %v2154_v7  ;;  %v6214_v25 = vld [vmem:[#allocation6 + $0x318] sm:$0xff]   ;;  %v6217_v7 = vld [vmem:[#allocation6 + $0x320] sm:$0xff]  }
 0x43b   : > { %v5520_v15 = vadd.f32 %v5519_v14, %v5518_v6  ;;  %v5521_v16 = vpop.f32.mrb[46].mxu1  ;;  %v6218_v9 = vld [vmem:[#allocation6 + $0x398] sm:$0xff]   ;;  %v6219_v6 = vld [vmem:[#allocation6 + $0x368] sm:$0xff]   ;;  %v6222_v13 = vld [vmem:[#allocation6 + $0x370] sm:$0xff]  }
 0x43c   : > { %v2078_v18 = vmax.f32 %v2056_v30, %v2072_v11  ;;  %v2073_v19 = vmul.f32 0.1, %v2059_v12  ;;  %v5522_v20 = vpop.f32.mrb[47].mxu1  ;;  %v6215_v30 = vld [vmem:[#allocation6 + $0x390] sm:$0xff]   ;;  %v6220_v11 = vld [vmem:[#allocation6 + $0x328] sm:$0xff]  }
 0x43d   : > { %v5523_v22 = vadd.f32 %v5522_v20, %v5521_v16  ;;  %v2007_v23 = vadd.f32 %v5520_v15, %v5048_v40  ;;  %v2139_v28 = vld [vmem:[#allocation3] sm:$0xff]  ;;  %v6223_v14 = vld [vmem:[#allocation6 + $0x330] sm:$0xff]   ;;  %v6225_v16 = vld [vmem:[#allocation6 + $0x378] sm:$0xff]  }
 0x43e   : > { %2084 = vst [vmem:[#allocation3 + $0x11] sm:$0xff] %v2078_v18  ;;  %v2079_v24 = vmax.f32 %v2059_v12, %v2073_v19  ;;  %v6221_v12 = vld [vmem:[#allocation6 + $0x3a0] sm:$0xff]   ;;  %v6224_v15 = vld [vmem:[#allocation6 + $0x3a8] sm:$0xff]   ;;  %v6227_v19 = vld [vmem:[#allocation6 + $0x3b0] sm:$0xff]  }
 0x43f   : > { %v2063_v26 = vpop.f32.mrb[56].mxu0  ;;  %v2010_v27 = vadd.f32 %v5523_v22, %v5048_v40  ;;  %v2140_v29 = vld [vmem:[#allocation3 + $0x8] sm:$0xff]  ;;  %v6228_v20 = vld [vmem:[#allocation6 + $0x3b8] sm:$0xff]   ;;  %v6229_v22 = vld [vmem:[#allocation6 + $0x400] sm:$0xff]  }
 0x440   : > { %2085 = vst [vmem:[#allocation3 + $0x19] sm:$0xff] %v2079_v24  ;;  %v2064_v60 = vadd.f32 %v2063_v26, %v2007_v23  ;;  %v5825_v32 = vpop.f32.mrb[57].mxu0  ;;  %v2145_v34 = vpack.c.bf16 %v2140_v29, %v2139_v28  ;;  %v2155_v35 = vpack.c.bf16 %v2079_v24, %v2078_v18  ;;  %v2157_v40 = vld [vmem:[#allocation3 + $0x2] sm:$0xff]  ;;  %v6226_v18 = vld [vmem:[#allocation6 + $0x338] sm:$0xff]   ;;  %v5074_v26 = vld [vmem:[%s7188_s4 + $0x3] ss:$0 sm:$0xff] }
 0x441   : > { %v2066_v37 = vpop.f32.mrb[58].mxu0 }
 0x442   : > { %v2074_v62 = vmul.f32 0.1, %v2064_v60  ;;  %v2067_v33 = vadd.f32 %v2066_v37, %v2010_v27  ;;  %v5826_v39 = vpop.f32.mrb[59].mxu0  ;;  %2349 = vmatmul.mubr.bf16.vlgmr.msra.gmra.mrb[48].mxu1 %v2145_v34 }
 0x443   : > { %2356 = vmatprep.mubr.bf16.mxu1 %v2155_v35  ;;  %5581 = vmatpush3.bf16.msra.mxu1 %v6206_v31 }
 0x444   : > { %v2080_v41 = vmax.f32 %v2064_v60, %v2074_v62  ;;  %v2075_v43 = vmul.f32 0.1, %v2067_v33  ;;  %5582 = vmatprep.subr.bf16.mxu1 %v6207_v36 }
 0x445   : > { %v2158_v44 = vld [vmem:[#allocation3 + $0xa] sm:$0xff] }
 0x446   : > { %2086 = vst [vmem:[#allocation3 + $0x21] sm:$0xff] %v2080_v41  ;;  %v2081_v45 = vmax.f32 %v2067_v33, %v2075_v43  ;;  %v2163_v46 = vpack.c.bf16 %v2158_v44, %v2157_v40  ;;  %v2141_v47 = vld [vmem:[#allocation3 + $0x10] sm:$0xff] }
 0x447   : > { %v2142_v48 = vld [vmem:[#allocation3 + $0x18] sm:$0xff]  ;;  %5583 = vmatpush3.bf16.msra.mxu1 %v6208_v59 }
 0x448   : > { %2087 = vst [vmem:[#allocation3 + $0x29] sm:$0xff] %v2081_v45  ;;  %5844 = vmatmul.mubr.bf16.vlgmr.msra.gmra.mrb[60].mxu0 %v2163_v46  ;;  %v2146_v49 = vpack.c.bf16 %v2142_v48, %v2141_v47  ;;  %v2156_v0 = vpack.c.bf16 %v2081_v45, %v2080_v41  ;;  %v2159_v8 = vld [vmem:[#allocation3 + $0x12] sm:$0xff]  ;;  %5584 = vmatprep.subr.bf16.mxu1 %v6210_v1 }
 0x449   : > { %5847 = vmatprep.mubr.msk.bf16.mxu0 %vm6602_vm3, %v6839_v50  ;;  %5856 = vmatpush3.bf16.msra.mxu0 %v6209_v61 }
 0x44a   : > { %2357 = vmatmul.mubr.bf16.gmra.mrb[52].mxu1 %v2146_v49  ;;  %5857 = vmatprep.subr.bf16.mxu0 %v6839_v50 }
 0x44b   : > { %2364 = vmatprep.mubr.bf16.mxu1 %v2156_v0  ;;  %5585 = vmatpush3.bf16.msra.mxu1 %v6211_v2 }
 0x44c   : > { %5586 = vmatprep.subr.bf16.mxu1 %v6213_v4 }
 0x44d   : > { %v2160_v51 = vld [vmem:[#allocation3 + $0x1a] sm:$0xff]  ;;  %5858 = vmatpush3.bf16.msra.mxu0 %v6212_v3 }
 0x44e   : > { %v2164_v52 = vpack.c.bf16 %v2160_v51, %v2159_v8  ;;  %v2143_v53 = vld [vmem:[#allocation3 + $0x20] sm:$0xff]  ;;  %5859 = vmatprep.subr.bf16.mxu0 %v6839_v50 }
 0x44f   : > { %v2144_v54 = vld [vmem:[#allocation3 + $0x28] sm:$0xff]  ;;  %5587 = vmatpush3.bf16.msra.mxu1 %v6214_v25 }
 0x450   : > { %5848 = vmatmul.mubr.bf16.gmra.mrb[64].mxu0 %v2164_v52  ;;  %v2147_v55 = vpack.c.bf16 %v2144_v54, %v2143_v53  ;;  %v2161_v10 = vld [vmem:[#allocation3 + $0x22] sm:$0xff]  ;;  %v2162_v57 = vld [vmem:[#allocation3 + $0x2a] sm:$0xff]  ;;  %5588 = vmatprep.subr.bf16.mxu1 %v6216_v5 }
 0x451   : > { %5851 = vmatprep.mubr.msk.bf16.mxu0 %vm6602_vm3, %v6839_v50  ;;  %v2165_v58 = vpack.c.bf16 %v2162_v57, %v2161_v10  ;;  %5860 = vmatpush3.bf16.msra.mxu0 %v6215_v30 }
 0x452   : > { %2365 = vmatmul.mubr.bf16.gmra.mrb[56].mxu1 %v2147_v55  ;;  %5861 = vmatprep.subr.bf16.mxu0 %v6839_v50 }
 0x453   : > { %5589 = vmatpush3.bf16.msra.mxu1 %v6217_v7 }
 0x454   : > { %5590 = vmatprep.subr.bf16.mxu1 %v6219_v6 }
 0x455   : > { %5862 = vmatpush3.bf16.msra.mxu0 %v6218_v9 }
 0x456   : > { %5863 = vmatprep.subr.bf16.mxu0 %v6839_v50 }
 0x457   : > { %5591 = vmatpush3.bf16.msra.mxu1 %v6220_v11 }
 0x458   : > { %5852 = vmatmul.mubr.bf16.gmra.mrb[68].mxu0 %v2165_v58  ;;  %5592 = vmatprep.subr.bf16.mxu1 %v6222_v13 }
 0x459   : > { %5871 = vmatprep.mubr.msk.bf16.mxu0 %vm6602_vm3, %v6839_v50  ;;  %5864 = vmatpush3.bf16.msra.mxu0 %v6221_v12 }
 0x45a   : > { %5865 = vmatprep.subr.bf16.mxu0 %v6839_v50 }
 0x45b   : > { %5593 = vmatpush3.bf16.msra.mxu1 %v6223_v14 }
 0x45c   : > { %5594 = vmatprep.subr.bf16.mxu1 %v6225_v16 }
 0x45d   : > { %5866 = vmatpush3.bf16.msra.mxu0 %v6224_v15 }
 0x45e   : > { %5867 = vmatprep.subr.bf16.mxu0 %v6839_v50 }
 0x45f   : > { %5595 = vmatpush3.bf16.msra.mxu1 %v6226_v18 }
 0x460   : > { %5625 = vmatprep.subr.bf16.mxu1 %v6229_v22 }
 0x461   : > { %5868 = vmatpush3.bf16.msra.mxu0 %v6227_v19  ;;  %v6230_v19 = vld [vmem:[#allocation6 + $0x3c0] sm:$0xff]  }
 0x462   : > { %5869 = vmatprep.subr.bf16.mxu0 %v6839_v50 }
 0x465   : > { %5870 = vmatpush3.bf16.msra.mxu0 %v6228_v20 }
 0x466   : > { %5883 = vmatprep.subr.bf16.mxu0 %v6839_v50 }
 0x515   : > { %v5551_v23 = vpop.f32.mrb[48].mxu1 }
 0x516   : > { %v5552_v24 = vpop.f32.mrb[49].mxu1 }
 0x517   : > { %v5553_v27 = vadd.f32 %v5552_v24, %v5551_v23  ;;  %v5554_v28 = vpop.f32.mrb[50].mxu1 }
 0x518   : > { %v5555_v29 = vpop.f32.mrb[51].mxu1 }
 0x519   : > { %v5556_v31 = vadd.f32 %v5555_v29, %v5554_v28  ;;  %v2351_v60 = vadd.f32 %v5553_v27, %v5074_v26  ;;  %v6231_v28 = vld [vmem:[#allocation6 + $0x408] sm:$0xff]  }
 0x51b   : > { %v2407_v32 = vpop.f32.mrb[60].mxu0  ;;  %v2354_v34 = vadd.f32 %v5556_v31, %v5074_v26 }
 0x51c   : > { %v2408_v35 = vadd.f32 %v2407_v32, %v2351_v60  ;;  %v5845_v36 = vpop.f32.mrb[61].mxu0 }
 0x51d   : > { %v2410_v37 = vpop.f32.mrb[62].mxu0  ;;  %v5557_v62 = vpop.f32.mrb[52].mxu1 }
 0x51e   : > { %v2436_v33 = vmul.f32 0.1, %v2408_v35  ;;  %v2411_v39 = vadd.f32 %v2410_v37, %v2354_v34  ;;  %v5846_v41 = vpop.f32.mrb[63].mxu0  ;;  %v5558_v43 = vpop.f32.mrb[53].mxu1  ;;  %v6233_v34 = vld [vmem:[#allocation6 + $0x440] sm:$0xff]  }
 0x51f   : > { %v5559_v40 = vadd.f32 %v5558_v43, %v5557_v62  ;;  %v5560_v44 = vpop.f32.mrb[54].mxu1 }
 0x520   : > { %v2442_v45 = vmax.f32 %v2408_v35, %v2436_v33  ;;  %v2437_v46 = vmul.f32 0.1, %v2411_v39  ;;  %v5561_v47 = vpop.f32.mrb[55].mxu1 }
 0x521   : > { %v5562_v48 = vadd.f32 %v5561_v47, %v5560_v44  ;;  %v2359_v49 = vadd.f32 %v5559_v40, %v5074_v26 }
 0x522   : > { %v2448_v0 = vadd.f32 %v2442_v45, %v6911_v17  ;;  %v2443_v8 = vmax.f32 %v2411_v39, %v2437_v46 }
 0x523   : > { %v2415_v51 = vpop.f32.mrb[64].mxu0  ;;  %v2362_v52 = vadd.f32 %v5562_v48, %v5074_v26  ;;  %v6234_v48 = vld [vmem:[#allocation6 + $0x410] sm:$0xff]  }
 0x524   : > { %2454 = vst [vmem:[#allocation2 + $0x1] sm:$0xff] %v2448_v0  ;;  %v2449_v53 = vadd.f32 %v2443_v8, %v6915_v21  ;;  %v2416_v54 = vadd.f32 %v2415_v51, %v2359_v49  ;;  %v5849_v55 = vpop.f32.mrb[65].mxu0  ;;  %v6235_v49 = vld [vmem:[#allocation6 + $0x3d0] sm:$0xff]   ;;  %v6237_v8 = vld [vmem:[#allocation6 + $0x418] sm:$0xff]  }
 0x525   : > { %v2418_v10 = vpop.f32.mrb[66].mxu0  ;;  %v5563_v57 = vpop.f32.mrb[56].mxu1  ;;  %v6238_v51 = vld [vmem:[#allocation6 + $0x3d8] sm:$0xff]  }
 0x526   : > { %2455 = vst [vmem:[#allocation2 + $0x9] sm:$0xff] %v2449_v53  ;;  %v2438_v58 = vmul.f32 0.1, %v2416_v54  ;;  %v2419_v59 = vadd.f32 %v2418_v10, %v2362_v52  ;;  %v5850_v61 = vpop.f32.mrb[67].mxu0  ;;  %v5564_v1 = vpop.f32.mrb[57].mxu1  ;;  %v2526_v2 = vpack.c.bf16 %v2449_v53, %v2448_v0  ;;  %v6236_v0 = vld [vmem:[#allocation6 + $0x448] sm:$0xff]  }
 0x527   : > { %v5565_v3 = vadd.f32 %v5564_v1, %v5563_v57  ;;  %v5566_v4 = vpop.f32.mrb[58].mxu1  ;;  %v6239_v52 = vld [vmem:[#allocation6 + $0x450] sm:$0xff]   ;;  %v6240_v53 = vld [vmem:[#allocation6 + $0x420] sm:$0xff]   ;;  %v6242_v55 = vld [vmem:[#allocation6 + $0x458] sm:$0xff]  }
 0x528   : > { %v2444_v25 = vmax.f32 %v2416_v54, %v2438_v58  ;;  %v2439_v17 = vmul.f32 0.1, %v2419_v59  ;;  %v5567_v30 = vpop.f32.mrb[59].mxu1  ;;  %2720 = vmatprep.mubr.bf16.mxu1 %v2526_v2  ;;  %v6241_v54 = vld [vmem:[#allocation6 + $0x3e0] sm:$0xff]   ;;  %v6243_v10 = vld [vmem:[#allocation6 + $0x428] sm:$0xff]   ;;  %v6247_v61 = vld [vmem:[#allocation6 + $0x3f0] sm:$0xff]  }
 0x529   : > { %v5568_v5 = vadd.f32 %v5567_v30, %v5566_v4  ;;  %v2367_v7 = vadd.f32 %v5565_v3, %v5074_v26  ;;  %v6244_v57 = vld [vmem:[#allocation6 + $0x3e8] sm:$0xff]   ;;  %v6245_v58 = vld [vmem:[#allocation6 + $0x460] sm:$0xff]   ;;  %v6249_v2 = vld [vmem:[#allocation6 + $0x438] sm:$0xff]  }
 0x52a   : > { %v2450_v21 = vadd.f32 %v2444_v25, %v6921_v38  ;;  %v2445_v9 = vmax.f32 %v2419_v59, %v2439_v17  ;;  %v6246_v59 = vld [vmem:[#allocation6 + $0x430] sm:$0xff]   ;;  %v6248_v1 = vld [vmem:[#allocation6 + $0x468] sm:$0xff]   ;;  %v6250_v3 = vld [vmem:[#allocation6 + $0x3f8] sm:$0xff]  }
 0x52b   : > { %v2423_v6 = vpop.f32.mrb[68].mxu0  ;;  %v2370_v11 = vadd.f32 %v5568_v5, %v5074_v26  ;;  %v2511_v16 = vld [vmem:[#allocation2] sm:$0xff]  ;;  %v6232_v26 = vld [vmem:[#allocation6 + $0x3c8] sm:$0xff]   ;;  %v6252_v25 = vld [vmem:[#allocation6 + $0x478] sm:$0xff]  }
 0x52c   : > { %2456 = vst [vmem:[#allocation2 + $0x11] sm:$0xff] %v2450_v21  ;;  %v2451_v12 = vadd.f32 %v2445_v9, %v6925_v42  ;;  %v2424_v13 = vadd.f32 %v2423_v6, %v2367_v7  ;;  %v5853_v14 = vpop.f32.mrb[69].mxu0  ;;  %v6251_v4 = vld [vmem:[#allocation6 + $0x470] sm:$0xff]   ;;  %v6255_v17 = vld [vmem:[#allocation8 + $0x4] ss:$28 sps:$4 sm:$0xff]  }
 0x52d   : > { %v2426_v15 = vpop.f32.mrb[70].mxu0  ;;  %v2512_v18 = vld [vmem:[#allocation2 + $0x8] sm:$0xff]  ;;  %v6258_v30 = vld [vmem:[#allocation8 + $0xc] ss:$28 sps:$4 sm:$0xff]  }
 0x52e   : > { %2457 = vst [vmem:[#allocation2 + $0x19] sm:$0xff] %v2451_v12  ;;  %v2440_v20 = vmul.f32 0.1, %v2424_v13  ;;  %v2427_v22 = vadd.f32 %v2426_v15, %v2370_v11  ;;  %v5854_v23 = vpop.f32.mrb[71].mxu0  ;;  %v2517_v24 = vpack.c.bf16 %v2512_v18, %v2511_v16  ;;  %v2527_v27 = vpack.c.bf16 %v2451_v12, %v2450_v21  ;;  %v2529_v60 = vld [vmem:[#allocation2 + $0x2] sm:$0xff] }
 0x52f   : > { %v5100_v21 = vld [vmem:[%s7188_s4 + $0x4] ss:$0 sm:$0xff] }
 0x530   : > { %v2446_v38 = vmax.f32 %v2424_v13, %v2440_v20  ;;  %v2441_v29 = vmul.f32 0.1, %v2427_v22  ;;  %2721 = vmatmul.mubr.bf16.vlgmr.msra.gmra.mrb[60].mxu1 %v2517_v24 }
 0x531   : > { %2728 = vmatprep.mubr.bf16.mxu1 %v2527_v27  ;;  %5626 = vmatpush3.bf16.msra.mxu1 %v6230_v19 }
 0x532   : > { %v2452_v42 = vadd.f32 %v2446_v38, %v6931_v56  ;;  %v2447_v31 = vmax.f32 %v2427_v22, %v2441_v29  ;;  %5627 = vmatprep.subr.bf16.mxu1 %v6231_v28 }
 0x533   : > { %v2530_v32 = vld [vmem:[#allocation2 + $0xa] sm:$0xff] }
 0x534   : > { %2458 = vst [vmem:[#allocation2 + $0x21] sm:$0xff] %v2452_v42  ;;  %v2453_v35 = vadd.f32 %v2447_v31, %v6935_v63  ;;  %v2535_v36 = vpack.c.bf16 %v2530_v32, %v2529_v60  ;;  %v2513_v37 = vld [vmem:[#allocation2 + $0x10] sm:$0xff] }
 0x535   : > { %v2514_v62 = vld [vmem:[#allocation2 + $0x18] sm:$0xff]  ;;  %5628 = vmatpush3.bf16.msra.mxu1 %v6232_v26 }
 0x536   : > { %2459 = vst [vmem:[#allocation2 + $0x29] sm:$0xff] %v2453_v35  ;;  %5872 = vmatmul.mubr.bf16.vlgmr.msra.gmra.mrb[72].mxu0 %v2535_v36  ;;  %v2518_v33 = vpack.c.bf16 %v2514_v62, %v2513_v37  ;;  %v2528_v39 = vpack.c.bf16 %v2453_v35, %v2452_v42  ;;  %v2531_v56 = vld [vmem:[#allocation2 + $0x12] sm:$0xff]  ;;  %5629 = vmatprep.subr.bf16.mxu1 %v6234_v48 }
 0x537   : > { %5875 = vmatprep.mubr.msk.bf16.mxu0 %vm6602_vm3, %v6839_v50  ;;  %5884 = vmatpush3.bf16.msra.mxu0 %v6233_v34 }
 0x538   : > { %2729 = vmatmul.mubr.bf16.gmra.mrb[64].mxu1 %v2518_v33  ;;  %5885 = vmatprep.subr.bf16.mxu0 %v6839_v50 }
 0x539   : > { %2736 = vmatprep.mubr.bf16.mxu1 %v2528_v39  ;;  %5630 = vmatpush3.bf16.msra.mxu1 %v6235_v49 }
 0x53a   : > { %5631 = vmatprep.subr.bf16.mxu1 %v6237_v8 }
 0x53b   : > { %v2532_v41 = vld [vmem:[#allocation2 + $0x1a] sm:$0xff]  ;;  %5886 = vmatpush3.bf16.msra.mxu0 %v6236_v0 }
 0x53c   : > { %v2536_v43 = vpack.c.bf16 %v2532_v41, %v2531_v56  ;;  %v2515_v63 = vld [vmem:[#allocation2 + $0x20] sm:$0xff]  ;;  %5887 = vmatprep.subr.bf16.mxu0 %v6839_v50 }
 0x53d   : > { %v2516_v40 = vld [vmem:[#allocation2 + $0x28] sm:$0xff]  ;;  %5632 = vmatpush3.bf16.msra.mxu1 %v6238_v51 }
 0x53e   : > { %5876 = vmatmul.mubr.bf16.gmra.mrb[76].mxu0 %v2536_v43  ;;  %v2519_v44 = vpack.c.bf16 %v2516_v40, %v2515_v63  ;;  %v2533_v45 = vld [vmem:[#allocation2 + $0x22] sm:$0xff]  ;;  %v2534_v46 = vld [vmem:[#allocation2 + $0x2a] sm:$0xff]  ;;  %5633 = vmatprep.subr.bf16.mxu1 %v6240_v53 }
 0x53f   : > { %5879 = vmatprep.mubr.msk.bf16.mxu0 %vm6602_vm3, %v6839_v50  ;;  %v2537_v47 = vpack.c.bf16 %v2534_v46, %v2533_v45  ;;  %5888 = vmatpush3.bf16.msra.mxu0 %v6239_v52 }
 0x540   : > { %2737 = vmatmul.mubr.bf16.gmra.mrb[68].mxu1 %v2519_v44  ;;  %5889 = vmatprep.subr.bf16.mxu0 %v6839_v50 }
 0x541   : > { %5634 = vmatpush3.bf16.msra.mxu1 %v6241_v54  ;;  %v6253_v54 = vld [vmem:[#allocation8] ss:$28 sps:$4 sm:$0xff]  }
 0x542   : > { %5635 = vmatprep.subr.bf16.mxu1 %v6243_v10 }
 0x543   : > { %5890 = vmatpush3.bf16.msra.mxu0 %v6242_v55 }
 0x544   : > { %5891 = vmatprep.subr.bf16.mxu0 %v6839_v50 }
 0x545   : > { %5636 = vmatpush3.bf16.msra.mxu1 %v6244_v57 }
 0x546   : > { %5880 = vmatmul.mubr.bf16.gmra.mrb[80].mxu0 %v2537_v47  ;;  %5637 = vmatprep.subr.bf16.mxu1 %v6246_v59  ;;  %v6261_v59 = vld [vmem:[#allocation8 + $0x3c] ss:$28 sps:$4 sm:$0xff]  }
 0x547   : > { %5899 = vmatprep.mubr.msk.bf16.mxu0 %vm6602_vm3, %v6839_v50  ;;  %5892 = vmatpush3.bf16.msra.mxu0 %v6245_v58 }
 0x548   : > { %5893 = vmatprep.subr.bf16.mxu0 %v6839_v50 }
 0x549   : > { %5638 = vmatpush3.bf16.msra.mxu1 %v6247_v61 }
 0x54a   : > { %5639 = vmatprep.subr.bf16.mxu1 %v6249_v2 }
 0x54b   : > { %5894 = vmatpush3.bf16.msra.mxu0 %v6248_v1 }
 0x54c   : > { %5895 = vmatprep.subr.bf16.mxu0 %v6839_v50 }
 0x54d   : > { %5640 = vmatpush3.bf16.msra.mxu1 %v6250_v3 }
 0x54e   : > { %4312 = vmatprep.subr.bf16.mxu1 %v6255_v17 }
 0x54f   : > { %5896 = vmatpush3.bf16.msra.mxu0 %v6251_v4  ;;  %v6259_v4 = vld [vmem:[#allocation8 + $0x38] ss:$28 sps:$4 sm:$0xff]  }
 0x550   : > { %5897 = vmatprep.subr.bf16.mxu0 %v6839_v50 }
 0x553   : > { %5898 = vmatpush3.bf16.msra.mxu0 %v6252_v25 }
 0x554   : > { %4438 = vmatprep.subr.bf16.mxu0 %v6258_v30  ;;  %v6267_v30 = vld [vmem:[#allocation8 + $0x74] ss:$28 sps:$4 sm:$0xff]  }
 0x603   : > { %v5596_v5 = vpop.f32.mrb[60].mxu1 }
 0x604   : > { %v5597_v7 = vpop.f32.mrb[61].mxu1 }
 0x605   : > { %v5598_v9 = vadd.f32 %v5597_v7, %v5596_v5  ;;  %v5599_v6 = vpop.f32.mrb[62].mxu1 }
 0x606   : > { %v5600_v11 = vpop.f32.mrb[63].mxu1 }
 0x607   : > { %v5601_v12 = vadd.f32 %v5600_v11, %v5599_v6  ;;  %v2723_v13 = vadd.f32 %v5598_v9, %v5100_v21  ;;  %v6264_v11 = vld [vmem:[#allocation8 + $0x44] ss:$28 sps:$4 sm:$0xff]  }
 0x609   : > { %v2779_v14 = vpop.f32.mrb[72].mxu0  ;;  %v2726_v15 = vadd.f32 %v5601_v12, %v5100_v21 }
 0x60a   : > { %v2780_v16 = vadd.f32 %v2779_v14, %v2723_v13  ;;  %v5873_v18 = vpop.f32.mrb[73].mxu0  ;;  %v6265_v14 = vld [vmem:[#allocation8 + $0x70] ss:$28 sps:$4 sm:$0xff]  }
 0x60b   : > { %v2782_v19 = vpop.f32.mrb[74].mxu0  ;;  %v5602_v20 = vpop.f32.mrb[64].mxu1  ;;  %v6273_v18 = vld [vmem:[#allocation8 + $0xac] ss:$28 sps:$4 sm:$0xff]  }
 0x60c   : > { %v2802_v22 = vmul.f32 0.1, %v2780_v16  ;;  %v2783_v23 = vadd.f32 %v2782_v19, %v2726_v15  ;;  %v5874_v24 = vpop.f32.mrb[75].mxu0  ;;  %v5603_v27 = vpop.f32.mrb[65].mxu1  ;;  %v6262_v19 = vld [vmem:[#allocation8 + $0x40] ss:$28 sps:$4 sm:$0xff]  }
 0x60d   : > { %v5604_v28 = vadd.f32 %v5603_v27, %v5602_v20  ;;  %v5605_v38 = vpop.f32.mrb[66].mxu1  ;;  %v6270_v20 = vld [vmem:[#allocation8 + $0x7c] ss:$28 sps:$4 sm:$0xff]  }
 0x60e   : > { %v2808_v29 = vmax.f32 %v2780_v16, %v2802_v22  ;;  %v2803_v26 = vmul.f32 0.1, %v2783_v23  ;;  %v5606_v42 = vpop.f32.mrb[67].mxu1  ;;  %v6271_v22 = vld [vmem:[#allocation8 + $0xa8] ss:$28 sps:$4 sm:$0xff]  }
 0x60f   : > { %v5607_v31 = vadd.f32 %v5606_v42, %v5605_v38  ;;  %v2731_v60 = vadd.f32 %v5604_v28, %v5100_v21  ;;  %v6268_v28 = vld [vmem:[#allocation8 + $0x78] ss:$28 sps:$4 sm:$0xff]  }
 0x610   : > { %2814 = vst [vmem:[#allocation3 + $0x1] sm:$0xff] %v2808_v29  ;;  %v2809_v32 = vmax.f32 %v2783_v23, %v2803_v26  ;;  %v6279_v23 = vld [vmem:[#allocation8 + $0xe4] ss:$28 sps:$4 sm:$0xff]  }
 0x611   : > { %v2787_v34 = vpop.f32.mrb[76].mxu0  ;;  %v2734_v35 = vadd.f32 %v5607_v31, %v5100_v21  ;;  %v6277_v31 = vld [vmem:[#allocation8 + $0xe0] ss:$28 sps:$4 sm:$0xff]  }
 0x612   : > { %2815 = vst [vmem:[#allocation3 + $0x9] sm:$0xff] %v2809_v32  ;;  %v2788_v36 = vadd.f32 %v2787_v34, %v2731_v60  ;;  %v5877_v37 = vpop.f32.mrb[77].mxu0  ;;  %v2886_v62 = vpack.c.bf16 %v2809_v32, %v2808_v29  ;;  %v6276_v29 = vld [vmem:[#allocation8 + $0xb4] ss:$28 sps:$4 sm:$0xff]   ;;  %v6285_v32 = vld [vmem:[#allocation8 + $0x11c] ss:$28 sps:$4 sm:$0xff]  }
 0x613   : > { %v2790_v33 = vpop.f32.mrb[78].mxu0  ;;  %v5608_v39 = vpop.f32.mrb[68].mxu1  ;;  %v6274_v34 = vld [vmem:[#allocation8 + $0xb0] ss:$28 sps:$4 sm:$0xff]  }
 0x614   : > { %v2804_v56 = vmul.f32 0.1, %v2788_v36  ;;  %v2791_v41 = vadd.f32 %v2790_v33, %v2734_v35  ;;  %v5878_v43 = vpop.f32.mrb[79].mxu0  ;;  %v5609_v63 = vpop.f32.mrb[69].mxu1  ;;  %3080 = vmatprep.mubr.bf16.mxu1 %v2886_v62  ;;  %v6282_v35 = vld [vmem:[#allocation8 + $0xec] ss:$28 sps:$4 sm:$0xff]  }
 0x615   : > { %v5610_v40 = vadd.f32 %v5609_v63, %v5608_v39  ;;  %v5611_v44 = vpop.f32.mrb[70].mxu1  ;;  %v6283_v62 = vld [vmem:[#allocation8 + $0x118] ss:$28 sps:$4 sm:$0xff]   ;;  %v6280_v39 = vld [vmem:[#allocation8 + $0xe8] ss:$28 sps:$4 sm:$0xff]  }
 0x616   : > { %v2810_v45 = vmax.f32 %v2788_v36, %v2804_v56  ;;  %v2805_v46 = vmul.f32 0.1, %v2791_v41  ;;  %v5612_v47 = vpop.f32.mrb[71].mxu1  ;;  %v6291_v33 = vld [vmem:[#allocation8 + $0x154] ss:$28 sps:$4 sm:$0xff]  }
 0x617   : > { %v5613_v48 = vadd.f32 %v5612_v47, %v5611_v44  ;;  %v2739_v49 = vadd.f32 %v5610_v40, %v5100_v21  ;;  %v2871_v52 = vld [vmem:[#allocation3] sm:$0xff]  ;;  %v6286_v40 = vld [vmem:[#allocation8 + $0x120] ss:$28 sps:$4 sm:$0xff]   ;;  %v6292_v47 = vld [vmem:[#allocation8 + $0x158] ss:$28 sps:$4 sm:$0xff]  }
 0x618   : > { %2816 = vst [vmem:[#allocation3 + $0x11] sm:$0xff] %v2810_v45  ;;  %v2811_v0 = vmax.f32 %v2791_v41, %v2805_v46  ;;  %v6288_v41 = vld [vmem:[#allocation8 + $0x124] ss:$28 sps:$4 sm:$0xff]   ;;  %v6289_v43 = vld [vmem:[#allocation8 + $0x150] ss:$28 sps:$4 sm:$0xff]  }
 0x619   : > { %v2795_v8 = vpop.f32.mrb[80].mxu0  ;;  %v2742_v51 = vadd.f32 %v5613_v48, %v5100_v21  ;;  %v2872_v53 = vld [vmem:[#allocation3 + $0x8] sm:$0xff]  ;;  %v6256_v21 = vld [vmem:[#allocation8 + $0x8] ss:$28 sps:$4 sm:$0xff]   ;;  %v6294_v44 = vld [vmem:[#allocation8 + $0x15c] ss:$28 sps:$4 sm:$0xff]  }
 0x61a   : > { %2817 = vst [vmem:[#allocation3 + $0x19] sm:$0xff] %v2811_v0  ;;  %v2796_v55 = vadd.f32 %v2795_v8, %v2739_v49  ;;  %v5881_v10 = vpop.f32.mrb[81].mxu0  ;;  %v2877_v57 = vpack.c.bf16 %v2872_v53, %v2871_v52  ;;  %v2887_v58 = vpack.c.bf16 %v2811_v0, %v2810_v45  ;;  %v2889_v5 = vld [vmem:[#allocation3 + $0x2] sm:$0xff]  ;;  %v6303_v46 = vld [vmem:[#allocation8 + $0x1c4] ss:$28 sps:$4 sm:$0xff]  }
 0x61b   : > { %v2798_v61 = vpop.f32.mrb[82].mxu0  ;;  %v6297_v63 = vld [vmem:[#allocation8 + $0x18c] ss:$28 sps:$4 sm:$0xff]   ;;  %v6300_v48 = vld [vmem:[#allocation8 + $0x194] ss:$28 sps:$4 sm:$0xff]  }
 0x61c   : > { %v2806_v1 = vmul.f32 0.1, %v2796_v55  ;;  %v2799_v2 = vadd.f32 %v2798_v61, %v2742_v51  ;;  %v5882_v3 = vpop.f32.mrb[83].mxu0  ;;  %3081 = vmatmul.mubr.bf16.vlgmr.msra.gmra.mrb[72].mxu1 %v2877_v57  ;;  %v6295_v45 = vld [vmem:[#allocation8 + $0x188] ss:$28 sps:$4 sm:$0xff]  }
 0x61d   : > { %3088 = vmatprep.mubr.bf16.mxu1 %v2887_v58  ;;  %4313 = vmatpush1.bf16.msra.mxu1 %v6253_v54  ;;  %v6301_v49 = vld [vmem:[#allocation8 + $0x1c0] ss:$28 sps:$4 sm:$0xff]   ;;  %v6298_v8 = vld [vmem:[#allocation8 + $0x190] ss:$28 sps:$4 sm:$0xff]   ;;  %v6307_v52 = vld [vmem:[#allocation8 + $0x1f8] ss:$28 sps:$4 sm:$0xff]  }
 0x61e   : > { %v2812_v25 = vmax.f32 %v2796_v55, %v2806_v1  ;;  %v2807_v17 = vmul.f32 0.1, %v2799_v2  ;;  %4314 = vmatprep.subr.bf16.mxu1 %v6261_v59  ;;  %v6309_v0 = vld [vmem:[#allocation8 + $0x1fc] ss:$28 sps:$4 sm:$0xff]   ;;  %v6306_v51 = vld [vmem:[#allocation8 + $0x1cc] ss:$28 sps:$4 sm:$0xff]  }
 0x61f   : > { %v2890_v7 = vld [vmem:[#allocation3 + $0xa] sm:$0xff]  ;;  %v6304_v53 = vld [vmem:[#allocation8 + $0x1c8] ss:$28 sps:$4 sm:$0xff]   ;;  %v6310_v55 = vld [vmem:[#allocation8 + $0x200] ss:$28 sps:$4 sm:$0xff]  }
 0x620   : > { %2818 = vst [vmem:[#allocation3 + $0x21] sm:$0xff] %v2812_v25  ;;  %v2813_v9 = vmax.f32 %v2799_v2, %v2807_v17  ;;  %v2895_v6 = vpack.c.bf16 %v2890_v7, %v2889_v5  ;;  %v2873_v12 = vld [vmem:[#allocation3 + $0x10] sm:$0xff]  ;;  %v6312_v54 = vld [vmem:[#allocation8 + $0x204] ss:$28 sps:$4 sm:$0xff]   ;;  %v6313_v10 = vld [vmem:[#allocation8 + $0x230] ss:$28 sps:$4 sm:$0xff]  }
 0x621   : > { %v2874_v13 = vld [vmem:[#allocation3 + $0x18] sm:$0xff]  ;;  %4315 = vmatpush1.bf16.msra.mxu1 %v6259_v4  ;;  %v6315_v57 = vld [vmem:[#allocation8 + $0x234] ss:$28 sps:$4 sm:$0xff]   ;;  %v6318_v59 = vld [vmem:[#allocation8 + $0x23c] ss:$28 sps:$4 sm:$0xff]  }
 0x622   : > { %2819 = vst [vmem:[#allocation3 + $0x29] sm:$0xff] %v2813_v9  ;;  %5900 = vmatmul.mubr.bf16.vlgmr.msra.gmra.mrb[84].mxu0 %v2895_v6  ;;  %v2878_v15 = vpack.c.bf16 %v2874_v13, %v2873_v12  ;;  %v2888_v16 = vpack.c.bf16 %v2813_v9, %v2812_v25  ;;  %4316 = vmatprep.subr.bf16.mxu1 %v6267_v30  ;;  %v2891_v24 = vld [vmem:[#allocation3 + $0x12] sm:$0xff]  ;;  %v6321_v61 = vld [vmem:[#allocation8 + $0x26c] ss:$28 sps:$4 sm:$0xff]   ;;  %v6324_v1 = vld [vmem:[#allocation8 + $0x274] ss:$28 sps:$4 sm:$0xff]  }
 0x623   : > { %5903 = vmatprep.mubr.msk.bf16.mxu0 %vm6602_vm3, %v6839_v50  ;;  %4439 = vmatpush1.bf16.msra.mxu0 %v6256_v21  ;;  %v6316_v58 = vld [vmem:[#allocation8 + $0x238] ss:$28 sps:$4 sm:$0xff]   ;;  %v6319_v2 = vld [vmem:[#allocation8 + $0x268] ss:$28 sps:$4 sm:$0xff]   ;;  %v6322_v3 = vld [vmem:[#allocation8 + $0x270] ss:$28 sps:$4 sm:$0xff]  }
 0x624   : > { %3089 = vmatmul.mubr.bf16.gmra.mrb[76].mxu1 %v2878_v15  ;;  %4440 = vmatprep.subr.bf16.mxu0 %v6264_v11  ;;  %v6327_v4 = vld [vmem:[#allocation8 + $0x2a4] ss:$28 sps:$4 sm:$0xff]   ;;  %v6330_v25 = vld [vmem:[#allocation8 + $0x2ac] ss:$28 sps:$4 sm:$0xff]   ;;  %v6333_v5 = vld [vmem:[#allocation8 + $0x2dc] ss:$28 sps:$4 sm:$0xff]  }
 0x625   : > { %3096 = vmatprep.mubr.bf16.mxu1 %v2888_v16  ;;  %4317 = vmatpush1.bf16.msra.mxu1 %v6265_v14  ;;  %v6325_v17 = vld [vmem:[#allocation8 + $0x2a0] ss:$28 sps:$4 sm:$0xff]   ;;  %v6328_v30 = vld [vmem:[#allocation8 + $0x2a8] ss:$28 sps:$4 sm:$0xff]   ;;  %v6331_v21 = vld [vmem:[#allocation8 + $0x2d8] ss:$28 sps:$4 sm:$0xff]  }
 0x626   : > { %4318 = vmatprep.subr.bf16.mxu1 %v6273_v18  ;;  %v6336_v7 = vld [vmem:[#allocation8 + $0x2e4] ss:$28 sps:$4 sm:$0xff]   ;;  %v6339_v6 = vld [vmem:[#allocation8 + $0x314] ss:$28 sps:$4 sm:$0xff]   ;;  %v6342_v11 = vld [vmem:[#allocation8 + $0x31c] ss:$28 sps:$4 sm:$0xff]  }
 0x627   : > { %v2892_v27 = vld [vmem:[#allocation3 + $0x1a] sm:$0xff]  ;;  %4441 = vmatpush1.bf16.msra.mxu0 %v6262_v19  ;;  %v6337_v12 = vld [vmem:[#allocation8 + $0x310] ss:$28 sps:$4 sm:$0xff]   ;;  %v6340_v13 = vld [vmem:[#allocation8 + $0x318] ss:$28 sps:$4 sm:$0xff]  }
 0x628   : > { %v2896_v38 = vpack.c.bf16 %v2892_v27, %v2891_v24  ;;  %4442 = vmatprep.subr.bf16.mxu0 %v6270_v20  ;;  %v2875_v26 = vld [vmem:[#allocation3 + $0x20] sm:$0xff]  ;;  %v6334_v9 = vld [vmem:[#allocation8 + $0x2e0] ss:$28 sps:$4 sm:$0xff]   ;;  %v6348_v15 = vld [vmem:[#allocation8 + $0x354] ss:$28 sps:$4 sm:$0xff]  }
 0x629   : > { %v2876_v42 = vld [vmem:[#allocation3 + $0x28] sm:$0xff]  ;;  %4319 = vmatpush1.bf16.msra.mxu1 %v6271_v22  ;;  %v6345_v14 = vld [vmem:[#allocation8 + $0x34c] ss:$28 sps:$4 sm:$0xff]   ;;  %v6351_v19 = vld [vmem:[#allocation8 + $0x384] ss:$28 sps:$4 sm:$0xff]  }
 0x62a   : > { %5904 = vmatmul.mubr.bf16.gmra.mrb[88].mxu0 %v2896_v38  ;;  %v2879_v60 = vpack.c.bf16 %v2876_v42, %v2875_v26  ;;  %4320 = vmatprep.subr.bf16.mxu1 %v6279_v23  ;;  %v2893_v36 = vld [vmem:[#allocation3 + $0x22] sm:$0xff]  ;;  %v2894_v37 = vld [vmem:[#allocation3 + $0x2a] sm:$0xff] }
 0x62b   : > { %5907 = vmatprep.mubr.msk.bf16.mxu0 %vm6602_vm3, %v6839_v50  ;;  %4443 = vmatpush1.bf16.msra.mxu0 %v6268_v28  ;;  %v2897_v56 = vpack.c.bf16 %v2894_v37, %v2893_v36  ;;  %v6343_v16 = vld [vmem:[#allocation8 + $0x348] ss:$28 sps:$4 sm:$0xff]   ;;  %v6346_v18 = vld [vmem:[#allocation8 + $0x350] ss:$28 sps:$4 sm:$0xff]   ;;  %v5126_v24 = vld [vmem:[%s7188_s4 + $0x5] ss:$0 sm:$0xff] }
 0x62c   : > { %3097 = vmatmul.mubr.bf16.gmra.mrb[80].mxu1 %v2879_v60  ;;  %4444 = vmatprep.subr.bf16.mxu0 %v6276_v29  ;;  %v6354_v20 = vld [vmem:[#allocation8 + $0x38c] ss:$28 sps:$4 sm:$0xff]  }
 0x62d   : > { %4321 = vmatpush1.bf16.msra.mxu1 %v6277_v31 }
 0x62e   : > { %4322 = vmatprep.subr.bf16.mxu1 %v6285_v32 }
 0x62f   : > { %4445 = vmatpush1.bf16.msra.mxu0 %v6274_v34 }
 0x630   : > { %4446 = vmatprep.subr.bf16.mxu0 %v6282_v35 }
 0x631   : > { %4323 = vmatpush1.bf16.msra.mxu1 %v6283_v62 }
 0x632   : > { %5908 = vmatmul.mubr.bf16.gmra.mrb[92].mxu0 %v2897_v56  ;;  %4324 = vmatprep.subr.bf16.mxu1 %v6291_v33 }
 0x633   : > { %4447 = vmatpush1.bf16.msra.mxu0 %v6280_v39 }
 0x634   : > { %4448 = vmatprep.subr.bf16.mxu0 %v6288_v41 }
 0x635   : > { %4325 = vmatpush1.bf16.msra.mxu1 %v6289_v43 }
 0x636   : > { %4326 = vmatprep.subr.bf16.mxu1 %v6297_v63 }
 0x637   : > { %4449 = vmatpush1.bf16.msra.mxu0 %v6286_v40  ;;  %v3162_v40 = vld [vmem:[#allocation2 + $0x1] sm:$0xff] }
 0x638   : > { %4450 = vmatprep.subr.bf16.mxu0 %v6294_v44 }
 0x639   : > { %4327 = vmatpush1.bf16.msra.mxu1 %v6295_v45 }
 0x63a   : > { %4328 = vmatprep.subr.bf16.mxu1 %v6303_v46 }
 0x63b   : > { %4451 = vmatpush1.bf16.msra.mxu0 %v6292_v47 }
 0x63c   : > { %4452 = vmatprep.subr.bf16.mxu0 %v6300_v48  ;;  %v3163_v48 = vld [vmem:[#allocation2 + $0x9] sm:$0xff] }
 0x63d   : > { %4329 = vmatpush1.bf16.msra.mxu1 %v6301_v49 }
 0x63e   : > { %4330 = vmatprep.subr.bf16.mxu1 %v6309_v0 }
 0x63f   : > { %4453 = vmatpush1.bf16.msra.mxu0 %v6298_v8 }
 0x640   : > { %4454 = vmatprep.subr.bf16.mxu0 %v6306_v51 }
 0x641   : > { %4331 = vmatpush1.bf16.msra.mxu1 %v6307_v52 }
 0x642   : > { %4332 = vmatprep.subr.bf16.mxu1 %v6315_v57 }
 0x643   : > { %4455 = vmatpush1.bf16.msra.mxu0 %v6304_v53 }
 0x644   : > { %4456 = vmatprep.subr.bf16.mxu0 %v6312_v54 }
 0x645   : > { %4333 = vmatpush1.bf16.msra.mxu1 %v6313_v10 }
 0x646   : > { %4334 = vmatprep.subr.bf16.mxu1 %v6321_v61 }
 0x647   : > { %4457 = vmatpush1.bf16.msra.mxu0 %v6310_v55 }
 0x648   : > { %4458 = vmatprep.subr.bf16.mxu0 %v6318_v59 }
 0x649   : > { %4335 = vmatpush1.bf16.msra.mxu1 %v6319_v2 }
 0x64a   : > { %4336 = vmatprep.subr.bf16.mxu1 %v6327_v4 }
 0x64b   : > { %4459 = vmatpush1.bf16.msra.mxu0 %v6316_v58 }
 0x64c   : > { %4460 = vmatprep.subr.bf16.mxu0 %v6324_v1 }
 0x64d   : > { %4337 = vmatpush1.bf16.msra.mxu1 %v6325_v17 }
 0x64e   : > { %4338 = vmatprep.subr.bf16.mxu1 %v6333_v5 }
 0x64f   : > { %4461 = vmatpush1.bf16.msra.mxu0 %v6322_v3 }
 0x650   : > { %4462 = vmatprep.subr.bf16.mxu0 %v6330_v25  ;;  %v3164_v25 = vld [vmem:[#allocation2 + $0x11] sm:$0xff] }
 0x651   : > { %4339 = vmatpush1.bf16.msra.mxu1 %v6331_v21  ;;  %v3165_v21 = vld [vmem:[#allocation2 + $0x19] sm:$0xff] }
 0x652   : > { %4340 = vmatprep.subr.bf16.mxu1 %v6339_v6 }
 0x653   : > { %4463 = vmatpush1.bf16.msra.mxu0 %v6328_v30 }
 0x654   : > { %4464 = vmatprep.subr.bf16.mxu0 %v6336_v7 }
 0x655   : > { %4341 = vmatpush1.bf16.msra.mxu1 %v6337_v12 }
 0x656   : > { %4342 = vmatprep.subr.bf16.mxu1 %v6345_v14  ;;  %v6349_v14 = vld [vmem:[#allocation8 + $0x380] ss:$28 sps:$4 sm:$0xff]  }
 0x657   : > { %4465 = vmatpush1.bf16.msra.mxu0 %v6334_v9 }
 0x658   : > { %4466 = vmatprep.subr.bf16.mxu0 %v6342_v11 }
 0x659   : > { %4343 = vmatpush1.bf16.msra.mxu1 %v6343_v16 }
 0x65a   : > { %4375 = vmatprep.subr.bf16.mxu1 %v6351_v19 }
 0x65b   : > { %4467 = vmatpush1.bf16.msra.mxu0 %v6340_v13 }
 0x65c   : > { %4468 = vmatprep.subr.bf16.mxu0 %v6348_v15  ;;  %v6352_v15 = vld [vmem:[#allocation8 + $0x388] ss:$28 sps:$4 sm:$0xff]  }
 0x65f   : > { %4469 = vmatpush1.bf16.msra.mxu0 %v6346_v18 }
 0x660   : > { %4501 = vmatprep.subr.bf16.mxu0 %v6354_v20  ;;  %v6357_v20 = vld [vmem:[#allocation8 + $0x3bc] ss:$28 sps:$4 sm:$0xff]  }
 0x6ef   : > { %v5641_v22 = vpop.f32.mrb[72].mxu1 }
 0x6f0   : > { %v5642_v23 = vpop.f32.mrb[73].mxu1 }
 0x6f1   : > { %v5643_v27 = vadd.f32 %v5642_v23, %v5641_v22  ;;  %v5644_v28 = vpop.f32.mrb[74].mxu1 }
 0x6f2   : > { %v5645_v38 = vpop.f32.mrb[75].mxu1 }
 0x6f3   : > { %v5646_v29 = vadd.f32 %v5645_v38, %v5644_v28  ;;  %v3083_v26 = vadd.f32 %v5643_v27, %v5126_v24  ;;  %v6360_v38 = vld [vmem:[#allocation8 + $0x3c4] ss:$28 sps:$4 sm:$0xff]  }
 0x6f5   : > { %v3139_v42 = vpop.f32.mrb[84].mxu0  ;;  %v3086_v31 = vadd.f32 %v5646_v29, %v5126_v24 }
 0x6f6   : > { %v3140_v60 = vadd.f32 %v3139_v42, %v3083_v26  ;;  %v5901_v32 = vpop.f32.mrb[85].mxu0  ;;  %v3166_v42 = vld [vmem:[#allocation2 + $0x21] sm:$0xff] }
 0x6f7   : > { %v3142_v34 = vpop.f32.mrb[86].mxu0  ;;  %v5647_v35 = vpop.f32.mrb[76].mxu1 }
 0x6f8   : > { %v3168_v36 = vmul.f32 0.1, %v3140_v60  ;;  %v3143_v37 = vadd.f32 %v3142_v34, %v3086_v31  ;;  %v5902_v62 = vpop.f32.mrb[87].mxu0  ;;  %v5648_v33 = vpop.f32.mrb[77].mxu1  ;;  %v6355_v31 = vld [vmem:[#allocation8 + $0x3b8] ss:$28 sps:$4 sm:$0xff]  }
 0x6f9   : > { %v5649_v39 = vadd.f32 %v5648_v33, %v5647_v35  ;;  %v5650_v56 = vpop.f32.mrb[78].mxu1  ;;  %v6363_v35 = vld [vmem:[#allocation8 + $0x3f4] ss:$28 sps:$4 sm:$0xff]  }
 0x6fa   : > { %v3174_v41 = vmax.f32 %v3140_v60, %v3168_v36  ;;  %v3169_v43 = vmul.f32 0.1, %v3143_v37  ;;  %v5651_v63 = vpop.f32.mrb[79].mxu1  ;;  %v6358_v60 = vld [vmem:[#allocation8 + $0x3c0] ss:$28 sps:$4 sm:$0xff]  }
 0x6fb   : > { %v5652_v44 = vadd.f32 %v5651_v63, %v5650_v56  ;;  %v3091_v45 = vadd.f32 %v5649_v39, %v5126_v24  ;;  %v6366_v36 = vld [vmem:[#allocation8 + $0x3fc] ss:$28 sps:$4 sm:$0xff]   ;;  %v6361_v33 = vld [vmem:[#allocation8 + $0x3f0] ss:$28 sps:$4 sm:$0xff]  }
 0x6fc   : > { %v3180_v46 = vadd.f32 %v3174_v41, %v3162_v40  ;;  %v3175_v47 = vmax.f32 %v3143_v37, %v3169_v43  ;;  %v3167_v37 = vld [vmem:[#allocation2 + $0x29] sm:$0xff]  ;;  %v6369_v63 = vld [vmem:[#allocation8 + $0x42c] ss:$28 sps:$4 sm:$0xff]   ;;  %v6372_v40 = vld [vmem:[#allocation8 + $0x434] ss:$28 sps:$4 sm:$0xff]  }
 0x6fd   : > { %v3147_v49 = vpop.f32.mrb[88].mxu0  ;;  %v3094_v0 = vadd.f32 %v5652_v44, %v5126_v24  ;;  %v6364_v39 = vld [vmem:[#allocation8 + $0x3f8] ss:$28 sps:$4 sm:$0xff]  }
 0x6fe   : > { %3186 = vst [vmem:[#allocation2 + $0x1] sm:$0xff] %v3180_v46  ;;  %v3181_v8 = vadd.f32 %v3175_v47, %v3163_v48  ;;  %v3148_v51 = vadd.f32 %v3147_v49, %v3091_v45  ;;  %v5905_v52 = vpop.f32.mrb[89].mxu0  ;;  %v6367_v45 = vld [vmem:[#allocation8 + $0x428] ss:$28 sps:$4 sm:$0xff]   ;;  %v6373_v49 = vld [vmem:[#allocation8 + $0x460] ss:$28 sps:$4 sm:$0xff]  }
 0x6ff   : > { %v3150_v53 = vpop.f32.mrb[90].mxu0  ;;  %v5653_v54 = vpop.f32.mrb[80].mxu1  ;;  %v6375_v47 = vld [vmem:[#allocation8 + $0x464] ss:$28 sps:$4 sm:$0xff]   ;;  %v6378_v48 = vld [vmem:[#allocation8 + $0x46c] ss:$28 sps:$4 sm:$0xff]  }
 0x700   : > { %3187 = vst [vmem:[#allocation2 + $0x9] sm:$0xff] %v3181_v8  ;;  %v3170_v55 = vmul.f32 0.1, %v3148_v51  ;;  %v3151_v10 = vadd.f32 %v3150_v53, %v3094_v0  ;;  %v5906_v57 = vpop.f32.mrb[91].mxu0  ;;  %v5654_v58 = vpop.f32.mrb[81].mxu1  ;;  %v7003_v59 = vpack.c.bf16 %v3181_v8, %v3180_v46 }
 0x701   : > { %v5655_v61 = vadd.f32 %v5654_v58, %v5653_v54  ;;  %v5656_v1 = vpop.f32.mrb[82].mxu1  ;;  %v6370_v46 = vld [vmem:[#allocation8 + $0x430] ss:$28 sps:$4 sm:$0xff]   ;;  %v6376_v0 = vld [vmem:[#allocation8 + $0x468] ss:$28 sps:$4 sm:$0xff]  }
 0x702   : > { %v3176_v2 = vmax.f32 %v3148_v51, %v3170_v55  ;;  %v3171_v3 = vmul.f32 0.1, %v3151_v10  ;;  %v5657_v4 = vpop.f32.mrb[83].mxu1  ;;  %4344 = vmatprep.mubr.bf16.mxu1 %v7003_v59  ;;  %4470 = vmatprep.mubr.bf16.mxu0 %v7003_v59  ;;  %v6381_v53 = vld [vmem:[#allocation8 + $0x49c] ss:$28 sps:$4 sm:$0xff]  }
 0x703   : > { %v5658_v17 = vadd.f32 %v5657_v4, %v5656_v1  ;;  %v3099_v30 = vadd.f32 %v5655_v61, %v5126_v24  ;;  %v6384_v54 = vld [vmem:[#allocation8 + $0x4a4] ss:$28 sps:$4 sm:$0xff]   ;;  %v6379_v55 = vld [vmem:[#allocation8 + $0x498] ss:$28 sps:$4 sm:$0xff]   ;;  %v6603_v61 = vmov 0  }
 0x704   : > { %v3182_v5 = vadd.f32 %v3176_v2, %v3164_v25  ;;  %v3177_v7 = vmax.f32 %v3151_v10, %v3171_v3  ;;  %v6382_v10 = vld [vmem:[#allocation8 + $0x4a0] ss:$28 sps:$4 sm:$0xff]   ;;  %v6387_v57 = vld [vmem:[#allocation8 + $0x4d4] ss:$28 sps:$4 sm:$0xff]   ;;  %v6393_v3 = vld [vmem:[#allocation8 + $0x50c] ss:$28 sps:$4 sm:$0xff]  }
 0x705   : > { %v3155_v9 = vpop.f32.mrb[92].mxu0  ;;  %v3102_v6 = vadd.f32 %v5658_v17, %v5126_v24  ;;  %v3385_v18 = vld [vmem:[#allocation2] sm:$0xff]  ;;  %v6390_v58 = vld [vmem:[#allocation8 + $0x4dc] ss:$28 sps:$4 sm:$0xff]   ;;  %v6391_v25 = vld [vmem:[#allocation8 + $0x508] ss:$28 sps:$4 sm:$0xff]  }
 0x706   : > { %3188 = vst [vmem:[#allocation2 + $0x11] sm:$0xff] %v3182_v5  ;;  %v3183_v11 = vadd.f32 %v3177_v7, %v3165_v21  ;;  %v3156_v12 = vadd.f32 %v3155_v9, %v3099_v30  ;;  %v5909_v13 = vpop.f32.mrb[93].mxu0  ;;  %v6385_v1 = vld [vmem:[#allocation8 + $0x4d0] ss:$28 sps:$4 sm:$0xff]   ;;  %v6388_v2 = vld [vmem:[#allocation8 + $0x4d8] ss:$28 sps:$4 sm:$0xff]  }
 0x707   : > { %v3158_v16 = vpop.f32.mrb[94].mxu0  ;;  %v3386_v19 = vld [vmem:[#allocation2 + $0x8] sm:$0xff]  ;;  %v6396_v4 = vld [vmem:[#allocation8 + $0x514] ss:$28 sps:$4 sm:$0xff]  }
 0x708   : > { %3189 = vst [vmem:[#allocation2 + $0x19] sm:$0xff] %v3183_v11  ;;  %v3172_v22 = vmul.f32 0.1, %v3156_v12  ;;  %v3159_v23 = vadd.f32 %v3158_v16, %v3102_v6  ;;  %v5910_v27 = vpop.f32.mrb[95].mxu0  ;;  %v7007_v28 = vpack.c.bf16 %v3386_v19, %v3385_v18  ;;  %v7009_v29 = vpack.c.bf16 %v3183_v11, %v3182_v5  ;;  %v6394_v17 = vld [vmem:[#allocation8 + $0x510] ss:$28 sps:$4 sm:$0xff]  }
 0x709   : > { %v6399_v30 = vld [vmem:[#allocation8 + $0x14] ss:$28 sps:$4 sm:$0xff]   ;;  %v6409_v16 = vld [vmem:[#allocation8 + $0x84] ss:$28 sps:$4 sm:$0xff]  }
 0x70a   : > { %v3178_v24 = vmax.f32 %v3156_v12, %v3172_v22  ;;  %v3173_v26 = vmul.f32 0.1, %v3159_v23  ;;  %4345 = vmatmul.mubr.bf16.vlgmr.msra.gmra.mrb[84].mxu1 %v7007_v28  ;;  %4471 = vmatmul.mubr.bf16.vlgmr.msra.gmra.mrb[96].mxu0 %v7007_v28  ;;  %v6400_v5 = vld [vmem:[#allocation8 + $0x1d8] ss:$28 sps:$4 sm:$0xff]   ;;  %v6397_v9 = vld [vmem:[#allocation8 + $0x10] ss:$28 sps:$4 sm:$0xff]  }
 0x70b   : > { %4376 = vmatpush1.bf16.msra.mxu1 %v6349_v14  ;;  %4502 = vmatpush1.bf16.msra.mxu0 %v6352_v15  ;;  %v3403_v21 = vld [vmem:[#allocation2 + $0x2] sm:$0xff]  ;;  %v6404_v12 = vld [vmem:[#allocation8 + $0x4c] ss:$28 sps:$4 sm:$0xff]   ;;  %v6407_v22 = vld [vmem:[#allocation8 + $0x80] ss:$28 sps:$4 sm:$0xff]  }
 0x70c   : > { %v3184_v32 = vadd.f32 %v3178_v24, %v3166_v42  ;;  %v3179_v34 = vmax.f32 %v3159_v23, %v3173_v26  ;;  %4377 = vmatprep.subr.bf16.mxu1 %v6357_v20  ;;  %4503 = vmatprep.subr.bf16.mxu0 %v6360_v38  ;;  %v6401_v6 = vld [vmem:[#allocation8 + $0x18] ss:$28 sps:$4 sm:$0xff]   ;;  %v6405_v13 = vld [vmem:[#allocation8 + $0x210] ss:$28 sps:$4 sm:$0xff]   ;;  %v6402_v14 = vld [vmem:[#allocation8 + $0x48] ss:$28 sps:$4 sm:$0xff]  }
 0x70d   : > { %4354 = vmatprep.mubr.bf16.mxu1 %v7009_v29  ;;  %4480 = vmatprep.mubr.bf16.mxu0 %v7009_v29  ;;  %v3387_v56 = vld [vmem:[#allocation2 + $0x10] sm:$0xff]  ;;  %v6406_v15 = vld [vmem:[#allocation8 + $0x50] ss:$28 sps:$4 sm:$0xff]   ;;  %v6414_v38 = vld [vmem:[#allocation8 + $0xbc] ss:$28 sps:$4 sm:$0xff]  }
 0x70e   : > { %3190 = vst [vmem:[#allocation2 + $0x21] sm:$0xff] %v3184_v32  ;;  %v3185_v62 = vadd.f32 %v3179_v34, %v3167_v37  ;;  %v3404_v7 = vld [vmem:[#allocation2 + $0xa] sm:$0xff]  ;;  %v6410_v18 = vld [vmem:[#allocation8 + $0x248] ss:$28 sps:$4 sm:$0xff]  }
 0x70f   : > { %4378 = vmatpush1.bf16.msra.mxu1 %v6355_v31  ;;  %4504 = vmatpush1.bf16.msra.mxu0 %v6358_v60  ;;  %v3388_v41 = vld [vmem:[#allocation2 + $0x18] sm:$0xff]  ;;  %v7029_v11 = vpack.c.bf16 %v3404_v7, %v3403_v21  ;;  %v6415_v24 = vld [vmem:[#allocation8 + $0x280] ss:$28 sps:$4 sm:$0xff]   ;;  %v6412_v26 = vld [vmem:[#allocation8 + $0xb8] ss:$28 sps:$4 sm:$0xff]  }
 0x710   : > { %3191 = vst [vmem:[#allocation2 + $0x29] sm:$0xff] %v3185_v62  ;;  %4379 = vmatprep.subr.bf16.mxu1 %v6363_v35  ;;  %4505 = vmatprep.subr.bf16.mxu0 %v6366_v36  ;;  %v7015_v43 = vpack.c.bf16 %v3388_v41, %v3387_v56  ;;  %v7017_v44 = vpack.c.bf16 %v3185_v62, %v3184_v32  ;;  %v3405_v20 = vld [vmem:[#allocation2 + $0x12] sm:$0xff]  ;;  %v6419_v31 = vld [vmem:[#allocation8 + $0xf4] ss:$28 sps:$4 sm:$0xff]  }
 0x711   : > { %v6411_v23 = vld [vmem:[#allocation8 + $0x88] ss:$28 sps:$4 sm:$0xff]   ;;  %v6416_v42 = vld [vmem:[#allocation8 + $0xc0] ss:$28 sps:$4 sm:$0xff]   ;;  %v6420_v60 = vld [vmem:[#allocation8 + $0x2b8] ss:$28 sps:$4 sm:$0xff]  }
 0x712   : > { %4355 = vmatmul.mubr.bf16.gmra.mrb[88].mxu1 %v7015_v43  ;;  %4481 = vmatmul.mubr.bf16.gmra.mrb[100].mxu0 %v7015_v43  ;;  %v6417_v35 = vld [vmem:[#allocation8 + $0xf0] ss:$28 sps:$4 sm:$0xff]   ;;  %v6421_v37 = vld [vmem:[#allocation8 + $0xf8] ss:$28 sps:$4 sm:$0xff]   ;;  %v6429_v41 = vld [vmem:[#allocation8 + $0x164] ss:$28 sps:$4 sm:$0xff]  }
 0x713   : > { %4380 = vmatpush1.bf16.msra.mxu1 %v6361_v33  ;;  %4506 = vmatpush1.bf16.msra.mxu0 %v6364_v39  ;;  %v6424_v62 = vld [vmem:[#allocation8 + $0x12c] ss:$28 sps:$4 sm:$0xff]   ;;  %v6463_v7 = vld [vmem:[#allocation8 + $0x324] ss:$28 sps:$4 sm:$0xff]  }
 0x714   : > { %4381 = vmatprep.subr.bf16.mxu1 %v6369_v63  ;;  %4507 = vmatprep.subr.bf16.mxu0 %v6372_v40  ;;  %v6425_v33 = vld [vmem:[#allocation8 + $0x2f0] ss:$28 sps:$4 sm:$0xff]   ;;  %v6422_v39 = vld [vmem:[#allocation8 + $0x128] ss:$28 sps:$4 sm:$0xff]   ;;  %v6427_v40 = vld [vmem:[#allocation8 + $0x160] ss:$28 sps:$4 sm:$0xff]  }
 0x715   : > { %4364 = vmatprep.mubr.bf16.mxu1 %v7017_v44  ;;  %4490 = vmatprep.mubr.bf16.mxu0 %v7017_v44  ;;  %v3389_v8 = vld [vmem:[#allocation2 + $0x20] sm:$0xff]  ;;  %v6430_v63 = vld [vmem:[#allocation8 + $0x328] ss:$28 sps:$4 sm:$0xff]   ;;  %v6461_v21 = vld [vmem:[#allocation8 + $0x320] ss:$28 sps:$4 sm:$0xff]  }
 0x716   : > { %v3406_v19 = vld [vmem:[#allocation2 + $0x1a] sm:$0xff] }
 0x717   : > { %4382 = vmatpush1.bf16.msra.mxu1 %v6367_v45  ;;  %4508 = vmatpush1.bf16.msra.mxu0 %v6370_v46  ;;  %v3390_v51 = vld [vmem:[#allocation2 + $0x28] sm:$0xff]  ;;  %v7035_v27 = vpack.c.bf16 %v3406_v19, %v3405_v20  ;;  %v6426_v56 = vld [vmem:[#allocation8 + $0x130] ss:$28 sps:$4 sm:$0xff]   ;;  %v6431_v45 = vld [vmem:[#allocation8 + $0x168] ss:$28 sps:$4 sm:$0xff]  }
 0x718   : > { %4383 = vmatprep.subr.bf16.mxu1 %v6375_v47  ;;  %4509 = vmatprep.subr.bf16.mxu0 %v6378_v48  ;;  %v7023_v52 = vpack.c.bf16 %v3390_v51, %v3389_v8  ;;  %v3407_v32 = vld [vmem:[#allocation2 + $0x22] sm:$0xff]  ;;  %v3408_v34 = vld [vmem:[#allocation2 + $0x2a] sm:$0xff]  ;;  %v6443_v51 = vld [vmem:[#allocation8 + $0x20c] ss:$28 sps:$4 sm:$0xff]  }
 0x719   : > { %v7041_v36 = vpack.c.bf16 %v3408_v34, %v3407_v32  ;;  %v6434_v46 = vld [vmem:[#allocation8 + $0x19c] ss:$28 sps:$4 sm:$0xff]   ;;  %v6477_v19 = vld [vmem:[#allocation8 + $0x404] ss:$28 sps:$4 sm:$0xff]   ;;  %v7087_v32 = vld [vmem:[%s7190_s6] sm:$0xff] }
 0x71a   : > { %4365 = vmatmul.mubr.bf16.gmra.mrb[92].mxu1 %v7023_v52  ;;  %4491 = vmatmul.mubr.bf16.gmra.mrb[104].mxu0 %v7023_v52  ;;  %v6435_v47 = vld [vmem:[#allocation8 + $0x360] ss:$28 sps:$4 sm:$0xff]   ;;  %v6432_v48 = vld [vmem:[#allocation8 + $0x198] ss:$28 sps:$4 sm:$0xff]  }
 0x71b   : > { %4384 = vmatpush1.bf16.msra.mxu1 %v6373_v49  ;;  %4510 = vmatpush1.bf16.msra.mxu0 %v6376_v0  ;;  %v6436_v49 = vld [vmem:[#allocation8 + $0x1a0] ss:$28 sps:$4 sm:$0xff]   ;;  %v6439_v0 = vld [vmem:[#allocation8 + $0x1d4] ss:$28 sps:$4 sm:$0xff]  }
 0x71c   : > { %4385 = vmatprep.subr.bf16.mxu1 %v6381_v53  ;;  %4511 = vmatprep.subr.bf16.mxu0 %v6384_v54  ;;  %v6440_v8 = vld [vmem:[#allocation8 + $0x398] ss:$28 sps:$4 sm:$0xff]   ;;  %v6441_v53 = vld [vmem:[#allocation8 + $0x208] ss:$28 sps:$4 sm:$0xff]   ;;  %v6444_v54 = vld [vmem:[#allocation8 + $0x3d0] ss:$28 sps:$4 sm:$0xff]  }
 0x71d   : > { %4407 = vmatprep.mubr.bf16.mxu1 %v6603_v61  ;;  %4533 = vmatprep.mubr.bf16.mxu0 %v6603_v61  ;;  %v6475_v20 = vld [vmem:[#allocation8 + $0x400] ss:$28 sps:$4 sm:$0xff]  }
 0x71f   : > { %4386 = vmatpush1.bf16.msra.mxu1 %v6379_v55  ;;  %4512 = vmatpush1.bf16.msra.mxu0 %v6382_v10  ;;  %v6447_v55 = vld [vmem:[#allocation8 + $0x244] ss:$28 sps:$4 sm:$0xff]  }
 0x720   : > { %4387 = vmatprep.subr.bf16.mxu1 %v6387_v57  ;;  %4513 = vmatprep.subr.bf16.mxu0 %v6390_v58  ;;  %v6445_v10 = vld [vmem:[#allocation8 + $0x240] ss:$28 sps:$4 sm:$0xff]   ;;  %v6448_v57 = vld [vmem:[#allocation8 + $0x408] ss:$28 sps:$4 sm:$0xff]  }
 0x721   : > { %v6451_v58 = vld [vmem:[#allocation8 + $0x27c] ss:$28 sps:$4 sm:$0xff]  }
 0x723   : > { %4388 = vmatpush1.bf16.msra.mxu1 %v6385_v1  ;;  %4514 = vmatpush1.bf16.msra.mxu0 %v6388_v2  ;;  %v6449_v1 = vld [vmem:[#allocation8 + $0x278] ss:$28 sps:$4 sm:$0xff]   ;;  %v6452_v2 = vld [vmem:[#allocation8 + $0x440] ss:$28 sps:$4 sm:$0xff]  }
 0x724   : > { %4389 = vmatprep.subr.bf16.mxu1 %v6393_v3  ;;  %4515 = vmatprep.subr.bf16.mxu0 %v6396_v4  ;;  %v6455_v3 = vld [vmem:[#allocation8 + $0x2b4] ss:$28 sps:$4 sm:$0xff]  }
 0x725   : > { %v6453_v4 = vld [vmem:[#allocation8 + $0x2b0] ss:$28 sps:$4 sm:$0xff]  }
 0x727   : > { %4390 = vmatpush1.bf16.msra.mxu1 %v6391_v25  ;;  %4516 = vmatpush1.bf16.msra.mxu0 %v6394_v17  ;;  %v6456_v25 = vld [vmem:[#allocation8 + $0x478] ss:$28 sps:$4 sm:$0xff]   ;;  %v6459_v17 = vld [vmem:[#allocation8 + $0x2ec] ss:$28 sps:$4 sm:$0xff]  }
 0x728   : > { %4564 = vmatprep.subr.bf16.mxu1 %v6399_v30  ;;  %5670 = vmatprep.subr.bf16.mxu0 %v6400_v5  ;;  %v6457_v30 = vld [vmem:[#allocation8 + $0x2e8] ss:$28 sps:$4 sm:$0xff]   ;;  %v6460_v5 = vld [vmem:[#allocation8 + $0x4b0] ss:$28 sps:$4 sm:$0xff]  }
 0x72a   : > { %4408 = vmatmul.mubr.bf16.vlgmr.msra.gmra.mrb[84].mxu1 %v7029_v11  ;;  %4534 = vmatmul.mubr.bf16.vlgmr.msra.gmra.mrb[96].mxu0 %v7029_v11 }
 0x72b   : > { %4565 = vmatpush1.bf16.msra.mxu1 %v6397_v9  ;;  %5671 = vmatpush3.bf16.msra.mxu0 %v6401_v6  ;;  %v6464_v9 = vld [vmem:[#allocation8 + $0x4e8] ss:$28 sps:$4 sm:$0xff]   ;;  %v6467_v6 = vld [vmem:[#allocation8 + $0x35c] ss:$28 sps:$4 sm:$0xff]  }
 0x72c   : > { %4566 = vmatprep.subr.bf16.mxu1 %v6404_v12  ;;  %5672 = vmatprep.subr.bf16.mxu0 %v6405_v13  ;;  %v6465_v12 = vld [vmem:[#allocation8 + $0x358] ss:$28 sps:$4 sm:$0xff]   ;;  %v6468_v13 = vld [vmem:[#allocation8 + $0x520] ss:$28 sps:$4 sm:$0xff]  }
 0x72d   : > { %4417 = vmatprep.mubr.bf16.mxu1 %v6603_v61  ;;  %4543 = vmatprep.mubr.bf16.mxu0 %v6603_v61 }
 0x72f   : > { %4567 = vmatpush1.bf16.msra.mxu1 %v6402_v14  ;;  %5673 = vmatpush3.bf16.msra.mxu0 %v6406_v15  ;;  %v6471_v14 = vld [vmem:[#allocation8 + $0x394] ss:$28 sps:$4 sm:$0xff]  }
 0x730   : > { %4568 = vmatprep.subr.bf16.mxu1 %v6409_v16  ;;  %5674 = vmatprep.subr.bf16.mxu0 %v6410_v18  ;;  %v6469_v15 = vld [vmem:[#allocation8 + $0x390] ss:$28 sps:$4 sm:$0xff]   ;;  %v6472_v18 = vld [vmem:[#allocation8 + $0x3c8] ss:$28 sps:$4 sm:$0xff]  }
 0x731   : > { %v6474_v16 = vld [vmem:[#allocation8 + $0x3cc] ss:$28 sps:$4 sm:$0xff]  }
 0x732   : > { %4418 = vmatmul.mubr.bf16.gmra.mrb[88].mxu1 %v7035_v27  ;;  %4544 = vmatmul.mubr.bf16.gmra.mrb[100].mxu0 %v7035_v27 }
 0x733   : > { %4569 = vmatpush1.bf16.msra.mxu1 %v6407_v22  ;;  %5675 = vmatpush3.bf16.msra.mxu0 %v6411_v23  ;;  %v6480_v22 = vld [vmem:[#allocation8 + $0x43c] ss:$28 sps:$4 sm:$0xff]   ;;  %v6481_v23 = vld [vmem:[#allocation8 + $0x470] ss:$28 sps:$4 sm:$0xff]  }
 0x734   : > { %4570 = vmatprep.subr.bf16.mxu1 %v6414_v38  ;;  %5676 = vmatprep.subr.bf16.mxu0 %v6415_v24  ;;  %v6486_v38 = vld [vmem:[#allocation8 + $0x4ac] ss:$28 sps:$4 sm:$0xff]   ;;  %v6487_v24 = vld [vmem:[#allocation8 + $0x4e0] ss:$28 sps:$4 sm:$0xff]  }
 0x735   : > { %4427 = vmatprep.mubr.bf16.mxu1 %v6603_v61  ;;  %4553 = vmatprep.mubr.bf16.mxu0 %v6603_v61 }
 0x737   : > { %4571 = vmatpush1.bf16.msra.mxu1 %v6412_v26  ;;  %5677 = vmatpush3.bf16.msra.mxu0 %v6416_v42  ;;  %v6490_v26 = vld [vmem:[#allocation8 + $0x518] ss:$28 sps:$4 sm:$0xff]  }
 0x738   : > { %4572 = vmatprep.subr.bf16.mxu1 %v6419_v31  ;;  %5678 = vmatprep.subr.bf16.mxu0 %v6420_v60 }
 0x73a   : > { %4428 = vmatmul.mubr.bf16.gmra.mrb[92].mxu1 %v7041_v36  ;;  %4554 = vmatmul.mubr.bf16.gmra.mrb[104].mxu0 %v7041_v36 }
 0x73b   : > { %4573 = vmatpush1.bf16.msra.mxu1 %v6417_v35  ;;  %4596 = vmatprep.mubr.bf16.mxu1 %v7003_v59 }
 0x73c   : > { %5679 = vmatpush3.bf16.msra.mxu0 %v6421_v37  ;;  %4722 = vmatprep.mubr.bf16.mxu0 %v7003_v59  ;;  %v6437_v59 = vld [vmem:[#allocation8 + $0x1d0] ss:$28 sps:$4 sm:$0xff]  }
 0x73d   : > { %4574 = vmatprep.subr.bf16.mxu1 %v6424_v62  ;;  %5680 = vmatprep.subr.bf16.mxu0 %v6425_v33 }
 0x73f   : > { %4575 = vmatpush1.bf16.msra.mxu1 %v6422_v39 }
 0x740   : > { %5681 = vmatpush3.bf16.msra.mxu0 %v6426_v56  ;;  %4576 = vmatprep.subr.bf16.mxu1 %v6429_v41 }
 0x741   : > { %5682 = vmatprep.subr.bf16.mxu0 %v6430_v63 }
 0x743   : > { %4577 = vmatpush1.bf16.msra.mxu1 %v6427_v40 }
 0x744   : > { %5683 = vmatpush3.bf16.msra.mxu0 %v6431_v45  ;;  %4578 = vmatprep.subr.bf16.mxu1 %v6434_v46 }
 0x745   : > { %5684 = vmatprep.subr.bf16.mxu0 %v6435_v47 }
 0x747   : > { %4579 = vmatpush1.bf16.msra.mxu1 %v6432_v48 }
 0x748   : > { %5685 = vmatpush3.bf16.msra.mxu0 %v6436_v49  ;;  %4580 = vmatprep.subr.bf16.mxu1 %v6439_v0 }
 0x749   : > { %5911 = vmatprep.subr.bf16.mxu0 %v6839_v50 }
 0x74b   : > { %4723 = vmatmul.mubr.bf16.vlgmr.msra.gmra.mrb[108].mxu0 %v7007_v28  ;;  %4581 = vmatpush1.bf16.msra.mxu1 %v6437_v59 }
 0x74c   : > { %4730 = vmatprep.mubr.bf16.mxu0 %v7009_v29  ;;  %5912 = vmatpush3.bf16.msra.mxu0 %v6440_v8 }
 0x74d   : > { %4582 = vmatprep.subr.bf16.mxu1 %v6443_v51  ;;  %5913 = vmatprep.subr.bf16.mxu0 %v6839_v50 }
 0x74f   : > { %4583 = vmatpush1.bf16.msra.mxu1 %v6441_v53 }
 0x750   : > { %5914 = vmatpush3.bf16.msra.mxu0 %v6444_v54  ;;  %4584 = vmatprep.subr.bf16.mxu1 %v6447_v55 }
 0x751   : > { %5915 = vmatprep.subr.bf16.mxu0 %v6839_v50 }
 0x753   : > { %4731 = vmatmul.mubr.bf16.gmra.mrb[112].mxu0 %v7015_v43  ;;  %4585 = vmatpush1.bf16.msra.mxu1 %v6445_v10 }
 0x754   : > { %4738 = vmatprep.mubr.bf16.mxu0 %v7017_v44  ;;  %5916 = vmatpush3.bf16.msra.mxu0 %v6448_v57 }
 0x755   : > { %4586 = vmatprep.subr.bf16.mxu1 %v6451_v58  ;;  %5917 = vmatprep.subr.bf16.mxu0 %v6839_v50 }
 0x757   : > { %4587 = vmatpush1.bf16.msra.mxu1 %v6449_v1 }
 0x758   : > { %5918 = vmatpush3.bf16.msra.mxu0 %v6452_v2  ;;  %4588 = vmatprep.subr.bf16.mxu1 %v6455_v3 }
 0x759   : > { %5919 = vmatprep.subr.bf16.mxu0 %v6839_v50 }
 0x75b   : > { %4739 = vmatmul.mubr.bf16.gmra.mrb[116].mxu0 %v7023_v52  ;;  %4589 = vmatpush1.bf16.msra.mxu1 %v6453_v4 }
 0x75c   : > { %5920 = vmatpush3.bf16.msra.mxu0 %v6456_v25  ;;  %4590 = vmatprep.subr.bf16.mxu1 %v6459_v17 }
 0x75d   : > { %5921 = vmatprep.subr.bf16.mxu0 %v6839_v50  ;;  %5927 = vmatprep.mubr.msk.bf16.mxu0 %vm6602_vm3, %v6839_v50 }
 0x75f   : > { %4591 = vmatpush1.bf16.msra.mxu1 %v6457_v30 }
 0x760   : > { %5922 = vmatpush3.bf16.msra.mxu0 %v6460_v5  ;;  %4592 = vmatprep.subr.bf16.mxu1 %v6463_v7 }
 0x761   : > { %5923 = vmatprep.subr.bf16.mxu0 %v6839_v50 }
 0x763   : > { %4593 = vmatpush1.bf16.msra.mxu1 %v6461_v21 }
 0x764   : > { %5924 = vmatpush3.bf16.msra.mxu0 %v6464_v9  ;;  %4594 = vmatprep.subr.bf16.mxu1 %v6467_v6 }
 0x765   : > { %5925 = vmatprep.subr.bf16.mxu0 %v6839_v50 }
 0x767   : > { %4595 = vmatpush1.bf16.msra.mxu1 %v6465_v12 }
 0x768   : > { %5926 = vmatpush3.bf16.msra.mxu0 %v6468_v13  ;;  %4627 = vmatprep.subr.bf16.mxu1 %v6471_v14 }
 0x76a   : > { %4597 = vmatmul.mubr.bf16.vlgmr.msra.gmra.mrb[96].mxu1 %v7007_v28  ;;  %v6478_v28 = vld [vmem:[#allocation8 + $0x438] ss:$28 sps:$4 sm:$0xff]  }
 0x76b   : > { %5928 = vmatmul.mubr.bf16.vlgmr.msra.gmra.mrb[120].mxu0 %v7029_v11  ;;  %4606 = vmatprep.mubr.bf16.mxu1 %v7009_v29  ;;  %v6483_v29 = vld [vmem:[#allocation8 + $0x474] ss:$28 sps:$4 sm:$0xff]  }
 0x76c   : > { %4628 = vmatpush1.bf16.msra.mxu1 %v6469_v15  ;;  %5931 = vmatprep.mubr.msk.bf16.mxu0 %vm6602_vm3, %v6839_v50 }
 0x76d   : > { %4629 = vmatprep.subr.bf16.mxu1 %v6474_v16 }
 0x770   : > { %4630 = vmatpush1.bf16.msra.mxu1 %v6472_v18 }
 0x771   : > { %4631 = vmatprep.subr.bf16.mxu1 %v6477_v19 }
 0x772   : > { %4607 = vmatmul.mubr.bf16.gmra.mrb[100].mxu1 %v7015_v43  ;;  %v6484_v43 = vld [vmem:[#allocation8 + $0x4a8] ss:$28 sps:$4 sm:$0xff]  }
 0x773   : > { %5932 = vmatmul.mubr.bf16.gmra.mrb[124].mxu0 %v7035_v27  ;;  %4616 = vmatprep.mubr.bf16.mxu1 %v7017_v44  ;;  %v6489_v44 = vld [vmem:[#allocation8 + $0x4e4] ss:$28 sps:$4 sm:$0xff]  }
 0x774   : > { %4632 = vmatpush1.bf16.msra.mxu1 %v6475_v20  ;;  %5935 = vmatprep.mubr.msk.bf16.mxu0 %vm6602_vm3, %v6839_v50  ;;  %v6492_v50 = vld [vmem:[#allocation8 + $0x51c] ss:$28 sps:$4 sm:$0xff]  }
 0x775   : > { %4633 = vmatprep.subr.bf16.mxu1 %v6480_v22 }
 0x778   : > { %4634 = vmatpush1.bf16.msra.mxu1 %v6478_v28 }
 0x779   : > { %4635 = vmatprep.subr.bf16.mxu1 %v6483_v29 }
 0x77a   : > { %4617 = vmatmul.mubr.bf16.gmra.mrb[104].mxu1 %v7023_v52  ;;  %v3413_v52 = vlaneseq }
 0x77b   : > { %5936 = vmatmul.mubr.bf16.gmra.mrb[128].mxu0 %v7041_v36  ;;  %4659 = vmatprep.mubr.bf16.mxu1 %v6603_v61 }
 0x77c   : > { %4636 = vmatpush1.bf16.msra.mxu1 %v6481_v23  ;;  %v7080_v42 = vshrl.u32 %v3413_v52, 7 }
 0x77d   : > { %4637 = vmatprep.subr.bf16.mxu1 %v6486_v38 }
 0x77e   : > { %v3415_v31 = vsub.s32 0, %v7080_v42  ;;  %v3423_v60 = vsub.s32 2, %v7080_v42 }
 0x780   : > { %4638 = vmatpush1.bf16.msra.mxu1 %v6484_v43  ;;  %v7096_v34 = vrot.slane %v7087_v32, %v3423_v60 }
 0x781   : > { %4639 = vmatprep.subr.bf16.mxu1 %v6489_v44 }
 0x784   : > { %4640 = vmatpush1.bf16.msra.mxu1 %v6487_v24 }
 0x785   : > { %4641 = vmatprep.subr.bf16.mxu1 %v6492_v50 }
 0x788   : > { %4642 = vmatpush1.bf16.msra.mxu1 %v6490_v26 }
 0x78b   : > { %4660 = vmatmul.mubr.bf16.vlgmr.msra.gmra.mrb[96].mxu1 %v7029_v11  ;;  %v3419_v11 = vsub.s32 1, %v7080_v42 }
 0x78c   : > { %4669 = vmatprep.mubr.bf16.mxu1 %v6603_v61 }
 0x78d   : > { %v7099_v35 = vrot.slane %v7087_v32, %v3419_v11 }
 0x793   : > { %4670 = vmatmul.mubr.bf16.gmra.mrb[100].mxu1 %v7035_v27  ;;  %v3427_v27 = vsub.s32 3, %v7080_v42 }
 0x794   : > { %4679 = vmatprep.mubr.bf16.mxu1 %v6603_v61  ;;  %v7093_v61 = vrot.slane %v7087_v32, %v3415_v31 }
 0x79b   : > { %4680 = vmatmul.mubr.bf16.gmra.mrb[104].mxu1 %v7041_v36  ;;  %v7102_v36 = vrot.slane %v7087_v32, %v3427_v27 }
 0x7fd   : > { %v4409_v37 = vpop.f32.mrb[84].mxu1  ;;  %v4535_v62 = vpop.f32.mrb[96].mxu0 }
 0x7fe   : > { %v5939_v33 = vadd.f32 %v4409_v37, %v7093_v61  ;;  %v5951_v39 = vadd.f32 %v4535_v62, %v7096_v34  ;;  %v4411_v56 = vpop.f32.mrb[85].mxu1  ;;  %v4537_v41 = vpop.f32.mrb[97].mxu0 }
 0x7ff   : > { %v5940_v63 = vadd.f32 %v4411_v56, %v7099_v35  ;;  %v5952_v40 = vadd.f32 %v4537_v41, %v7102_v36  ;;  %v4413_v45 = vpop.f32.mrb[86].mxu1  ;;  %v4539_v46 = vpop.f32.mrb[98].mxu0  ;;  %v3439_v56 = vsub.s32 6, %v7080_v42 }
 0x800   : > { %4804 = vst [vmem:[%s7107_s10] sm:$0xff] %v5939_v33  ;;  %4806 = vst [vmem:[%s7107_s10 + $0x10] sm:$0xff] %v5951_v39  ;;  %v5941_v47 = vadd.f32 %v4413_v45, %v7093_v61  ;;  %v5953_v48 = vadd.f32 %v4539_v46, %v7096_v34  ;;  %v4415_v49 = vpop.f32.mrb[87].mxu1  ;;  %v4541_v0 = vpop.f32.mrb[99].mxu0 }
 0x801   : > { %4805 = vst [vmem:[%s7107_s10 + $0x8] sm:$0xff] %v5940_v63  ;;  %4807 = vst [vmem:[%s7107_s10 + $0x18] sm:$0xff] %v5952_v40  ;;  %v5942_v59 = vadd.f32 %v4415_v49, %v7099_v35  ;;  %v5954_v8 = vadd.f32 %v4541_v0, %v7102_v36  ;;  %v3440_v41 = vrot.slane %v7087_v32, %v3439_v56 }
 0x802   : > { %4811 = vst [vmem:[%s7107_s10 + $0x38] sm:$0xff] %v5941_v47  ;;  %4813 = vst [vmem:[%s7107_s10 + $0x48] sm:$0xff] %v5953_v48 }
 0x803   : > { %4812 = vst [vmem:[%s7107_s10 + $0x40] sm:$0xff] %v5942_v59  ;;  %4814 = vst [vmem:[%s7107_s10 + $0x50] sm:$0xff] %v5954_v8 }
 0x805   : > { %v4419_v51 = vpop.f32.mrb[88].mxu1  ;;  %v4545_v53 = vpop.f32.mrb[100].mxu0 }
 0x806   : > { %v5943_v54 = vadd.f32 %v4419_v51, %v7093_v61  ;;  %v5955_v55 = vadd.f32 %v4545_v53, %v7096_v34  ;;  %v4421_v10 = vpop.f32.mrb[89].mxu1  ;;  %v4547_v57 = vpop.f32.mrb[101].mxu0 }
 0x807   : > { %v5944_v58 = vadd.f32 %v4421_v10, %v7099_v35  ;;  %v5956_v1 = vadd.f32 %v4547_v57, %v7102_v36  ;;  %v4423_v2 = vpop.f32.mrb[90].mxu1  ;;  %v4549_v3 = vpop.f32.mrb[102].mxu0 }
 0x808   : > { %4818 = vst [vmem:[%s7107_s10 + $0x70] sm:$0xff] %v5943_v54  ;;  %4820 = vst [vmem:[%s7107_s10 + $0x80] sm:$0xff] %v5955_v55  ;;  %v5945_v4 = vadd.f32 %v4423_v2, %v7093_v61  ;;  %v5957_v25 = vadd.f32 %v4549_v3, %v7096_v34  ;;  %v4425_v17 = vpop.f32.mrb[91].mxu1  ;;  %v4551_v30 = vpop.f32.mrb[103].mxu0 }
 0x809   : > { %4819 = vst [vmem:[%s7107_s10 + $0x78] sm:$0xff] %v5944_v58  ;;  %4821 = vst [vmem:[%s7107_s10 + $0x88] sm:$0xff] %v5956_v1  ;;  %v5946_v5 = vadd.f32 %v4425_v17, %v7099_v35  ;;  %v5958_v7 = vadd.f32 %v4551_v30, %v7102_v36 }
 0x80a   : > { %4825 = vst [vmem:[%s7107_s10 + $0xa8] sm:$0xff] %v5945_v4  ;;  %4827 = vst [vmem:[%s7107_s10 + $0xb8] sm:$0xff] %v5957_v25 }
 0x80b   : > { %4826 = vst [vmem:[%s7107_s10 + $0xb0] sm:$0xff] %v5946_v5  ;;  %4828 = vst [vmem:[%s7107_s10 + $0xc0] sm:$0xff] %v5958_v7  ;;  %v3431_v5 = vsub.s32 4, %v7080_v42  ;;  %v3435_v7 = vsub.s32 5, %v7080_v42 }
 0x80d   : > { %v4429_v21 = vpop.f32.mrb[92].mxu1  ;;  %v4555_v9 = vpop.f32.mrb[104].mxu0 }
 0x80e   : > { %v5947_v6 = vadd.f32 %v4429_v21, %v7093_v61  ;;  %v5959_v12 = vadd.f32 %v4555_v9, %v7096_v34  ;;  %v4431_v13 = vpop.f32.mrb[93].mxu1  ;;  %v4557_v14 = vpop.f32.mrb[105].mxu0  ;;  %v3432_v21 = vrot.slane %v7087_v32, %v3431_v5  ;;  %v3436_v9 = vrot.slane %v7087_v32, %v3435_v7 }
 0x80f   : > { %v5948_v15 = vadd.f32 %v4431_v13, %v7099_v35  ;;  %v5960_v16 = vadd.f32 %v4557_v14, %v7102_v36  ;;  %v4433_v18 = vpop.f32.mrb[94].mxu1  ;;  %v4559_v19 = vpop.f32.mrb[106].mxu0 }
 0x810   : > { %4832 = vst [vmem:[%s7107_s10 + $0xe0] sm:$0xff] %v5947_v6  ;;  %4834 = vst [vmem:[%s7107_s10 + $0xf0] sm:$0xff] %v5959_v12  ;;  %v5949_v20 = vadd.f32 %v4433_v18, %v7093_v61  ;;  %v5961_v22 = vadd.f32 %v4559_v19, %v7096_v34  ;;  %v4435_v28 = vpop.f32.mrb[95].mxu1  ;;  %v4561_v29 = vpop.f32.mrb[107].mxu0 }
 0x811   : > { %4833 = vst [vmem:[%s7107_s10 + $0xe8] sm:$0xff] %v5948_v15  ;;  %4835 = vst [vmem:[%s7107_s10 + $0xf8] sm:$0xff] %v5960_v16  ;;  %v5950_v23 = vadd.f32 %v4435_v28, %v7099_v35  ;;  %v5962_v38 = vadd.f32 %v4561_v29, %v7102_v36 }
 0x812   : > { %4839 = vst [vmem:[%s7107_s10 + $0x118] sm:$0xff] %v5949_v20  ;;  %4841 = vst [vmem:[%s7107_s10 + $0x128] sm:$0xff] %v5961_v22 }
 0x813   : > { %4840 = vst [vmem:[%s7107_s10 + $0x120] sm:$0xff] %v5950_v23  ;;  %4842 = vst [vmem:[%s7107_s10 + $0x130] sm:$0xff] %v5962_v38 }
 0x81e   : > { %v5686_v43 = vpop.f32.mrb[108].mxu0 }
 0x81f   : > { %v5687_v44 = vpop.f32.mrb[109].mxu0 }
 0x820   : > { %v5688_v24 = vadd.f32 %v5687_v44, %v5686_v43  ;;  %v5689_v50 = vpop.f32.mrb[110].mxu0 }
 0x821   : > { %v5690_v26 = vpop.f32.mrb[111].mxu0 }
 0x822   : > { %v5691_v52 = vadd.f32 %v5690_v26, %v5689_v50  ;;  %v4725_v63 = vadd.f32 %v5688_v24, %v3440_v41 }
 0x824   : > { %v4728_v47 = vadd.f32 %v5691_v52, %v3440_v41 }
 0x826   : > { %v5692_v31 = vpop.f32.mrb[112].mxu0 }
 0x827   : > { %v5693_v60 = vpop.f32.mrb[113].mxu0 }
 0x828   : > { %v5694_v11 = vadd.f32 %v5693_v60, %v5692_v31  ;;  %v5695_v27 = vpop.f32.mrb[114].mxu0 }
 0x829   : > { %v5696_v61 = vpop.f32.mrb[115].mxu0 }
 0x82a   : > { %v5697_v34 = vadd.f32 %v5696_v61, %v5695_v27  ;;  %v4733_v59 = vadd.f32 %v5694_v11, %v3440_v41 }
 0x82c   : > { %v4736_v54 = vadd.f32 %v5697_v34, %v3440_v41 }
 0x82e   : > { %v5698_v35 = vpop.f32.mrb[116].mxu0 }
 0x82f   : > { %v5699_v37 = vpop.f32.mrb[117].mxu0 }
 0x830   : > { %v5700_v36 = vadd.f32 %v5699_v37, %v5698_v35  ;;  %v5701_v62 = vpop.f32.mrb[118].mxu0 }
 0x831   : > { %v5702_v33 = vpop.f32.mrb[119].mxu0 }
 0x832   : > { %v5703_v39 = vadd.f32 %v5702_v33, %v5701_v62  ;;  %v4741_v58 = vadd.f32 %v5700_v36, %v3440_v41 }
 0x834   : > { %v4744_v4 = vadd.f32 %v5703_v39, %v3440_v41 }
 0x83e   : > { %v4781_v40 = vpop.f32.mrb[120].mxu0 }
 0x83f   : > { %v4782_v45 = vadd.f32 %v4781_v40, %v4725_v63  ;;  %v5929_v46 = vpop.f32.mrb[121].mxu0 }
 0x840   : > { %v4784_v48 = vpop.f32.mrb[122].mxu0 }
 0x841   : > { %4810 = vst [vmem:[%s7107_s10 + $0x30] sm:$0xff] %v4782_v45  ;;  %v4785_v49 = vadd.f32 %v4784_v48, %v4728_v47  ;;  %v5930_v0 = vpop.f32.mrb[123].mxu0 }
 0x843   : > { %4817 = vst [vmem:[%s7107_s10 + $0x68] sm:$0xff] %v4785_v49 }
 0x846   : > { %v4789_v8 = vpop.f32.mrb[124].mxu0 }
 0x847   : > { %v4790_v51 = vadd.f32 %v4789_v8, %v4733_v59  ;;  %v5933_v53 = vpop.f32.mrb[125].mxu0 }
 0x848   : > { %v4792_v55 = vpop.f32.mrb[126].mxu0 }
 0x849   : > { %4824 = vst [vmem:[%s7107_s10 + $0xa0] sm:$0xff] %v4790_v51  ;;  %v4793_v10 = vadd.f32 %v4792_v55, %v4736_v54  ;;  %v5934_v57 = vpop.f32.mrb[127].mxu0 }
 0x84b   : > { %4831 = vst [vmem:[%s7107_s10 + $0xd8] sm:$0xff] %v4793_v10 }
 0x84e   : > { %v4797_v1 = vpop.f32.mrb[128].mxu0 }
 0x84f   : > { %v4798_v2 = vadd.f32 %v4797_v1, %v4741_v58  ;;  %v5937_v3 = vpop.f32.mrb[129].mxu0 }
 0x850   : > { %v4800_v25 = vpop.f32.mrb[130].mxu0 }
 0x851   : > { %4838 = vst [vmem:[%s7107_s10 + $0x110] sm:$0xff] %v4798_v2  ;;  %v4801_v17 = vadd.f32 %v4800_v25, %v4744_v4  ;;  %v5938_v30 = vpop.f32.mrb[131].mxu0 }
 0x853   : > { %4845 = vst [vmem:[%s7107_s10 + $0x148] sm:$0xff] %v4801_v17 }
 0x85e   : > { %v4661_v6 = vpop.f32.mrb[96].mxu1 }
 0x85f   : > { %v5963_v12 = vadd.f32 %v4661_v6, %v3432_v21  ;;  %v4663_v13 = vpop.f32.mrb[97].mxu1 }
 0x860   : > { %v5964_v14 = vadd.f32 %v4663_v13, %v3436_v9  ;;  %v4665_v15 = vpop.f32.mrb[98].mxu1 }
 0x861   : > { %4808 = vst [vmem:[%s7107_s10 + $0x20] sm:$0xff] %v5963_v12  ;;  %v5965_v16 = vadd.f32 %v4665_v15, %v3432_v21  ;;  %v4667_v18 = vpop.f32.mrb[99].mxu1 }
 0x862   : > { %4809 = vst [vmem:[%s7107_s10 + $0x28] sm:$0xff] %v5964_v14  ;;  %v5966_v19 = vadd.f32 %v4667_v18, %v3436_v9 }
 0x863   : > { %4815 = vst [vmem:[%s7107_s10 + $0x58] sm:$0xff] %v5965_v16 }
 0x864   : > { %4816 = vst [vmem:[%s7107_s10 + $0x60] sm:$0xff] %v5966_v19 }
 0x866   : > { %v4671_v42 = vpop.f32.mrb[100].mxu1 }
 0x867   : > { %v5967_v20 = vadd.f32 %v4671_v42, %v3432_v21  ;;  %v4673_v32 = vpop.f32.mrb[101].mxu1 }
 0x868   : > { %v5968_v22 = vadd.f32 %v4673_v32, %v3436_v9  ;;  %v4675_v28 = vpop.f32.mrb[102].mxu1 }
 0x869   : > { %4822 = vst [vmem:[%s7107_s10 + $0x90] sm:$0xff] %v5967_v20  ;;  %v5969_v29 = vadd.f32 %v4675_v28, %v3432_v21  ;;  %v4677_v23 = vpop.f32.mrb[103].mxu1 }
 0x86a   : > { %4823 = vst [vmem:[%s7107_s10 + $0x98] sm:$0xff] %v5968_v22  ;;  %v5970_v38 = vadd.f32 %v4677_v23, %v3436_v9 }
 0x86b   : > { %4829 = vst [vmem:[%s7107_s10 + $0xc8] sm:$0xff] %v5969_v29 }
 0x86c   : > { %4830 = vst [vmem:[%s7107_s10 + $0xd0] sm:$0xff] %v5970_v38 }
 0x86e   : > { %v4681_v43 = vpop.f32.mrb[104].mxu1 }
 0x86f   : > { %v5971_v44 = vadd.f32 %v4681_v43, %v3432_v21  ;;  %v4683_v24 = vpop.f32.mrb[105].mxu1 }
 0x870   : > { %v5972_v50 = vadd.f32 %v4683_v24, %v3436_v9  ;;  %v4685_v26 = vpop.f32.mrb[106].mxu1 }
 0x871   : > { %4836 = vst [vmem:[%s7107_s10 + $0x100] sm:$0xff] %v5971_v44  ;;  %v5973_v52 = vadd.f32 %v4685_v26, %v3432_v21  ;;  %v4687_v31 = vpop.f32.mrb[107].mxu1 }
 0x872   : > { %4837 = vst [vmem:[%s7107_s10 + $0x108] sm:$0xff] %v5972_v50  ;;  %v5974_v60 = vadd.f32 %v4687_v31, %v3436_v9 }
 0x873   : > { %4843 = vst [vmem:[%s7107_s10 + $0x138] sm:$0xff] %v5973_v52 }
 0x874   : > { %4844 = vst [vmem:[%s7107_s10 + $0x140] sm:$0xff] %v5974_v60 }
 0x875 PF: > { %s19_s24 = sadd.s32 1, %s6592_s24  }
 0x876   : > { %p16_p3 = scmp.ge.s32.totalorder %s19_s24, 4  }
 0x878   :  { %18 = sbr.rel (!%p16_p3) target bundleno = 2 (0x2), region = 101 }
 0x87f   :  { %4867 = vsyncpa [#allocation5], 1 }
 0x880   :  { %4869 = vsyncpa [#allocation5 + $0x1], 1 }
 0x881   :  { %4870 = vsyncpa [#allocation7], 1 }

</bundles_post_ra>
